<compile_context>
chip_gen: v7x
topology: tpu7x:2x2x1
jax: 0.10.0
libtpu: 0.0.40
codegen_flags: <defaults>
</compile_context>

<pallas_src>
import jax
import jax.numpy as jnp
from jax.experimental import pallas as pl
from jax.experimental.pallas import tpu as pltpu


# ---------------- Pallas kernel ----------------


def siamese_kernel(x1_ref, x2_ref,
                   w1_ref, b1_ref,
                   w2_ref,
                   wfc_ref, bfc_ref,
                   out_ref):
    """One batch tile: two-branch MLP embedding + abs-diff + fc (lane-dense out)."""
    tb = x1_ref.shape[0]

    def embed(x_ref):
        # Cast the freshly DMA'd f32 tile to bf16 for the MXU (no extra HBM pass).
        x = x_ref[...].astype(jnp.bfloat16)
        h = jnp.dot(x, w1_ref[...], preferred_element_type=jnp.float32)   # (TB, H) f32
        # bf16 epilogue: bias + ReLU in bf16 (b1 stored bf16), feeds MXU directly.
        h = jnp.maximum(h.astype(jnp.bfloat16) + b1_ref[...], 0)
        # Note: layer-2 bias (b2) is intentionally omitted — it cancels in |e1 - e2|.
        return jnp.dot(h, w2_ref[...], preferred_element_type=jnp.float32)  # (TB, E) f32

    d = jnp.abs(embed(x1_ref) - embed(x2_ref))                 # (TB, E) f32, VPU

    # fc with out_features=1 as VPU multiply + cross-lane reduce (XLU), then a
    # lane-dense (1, TB) row store; bfc is an SMEM scalar.
    row = jnp.sum(d * wfc_ref[...], axis=-1)                   # (TB,)
    out_ref[...] = (row + bfc_ref[0]).reshape(1, tb)


# ---------------- wrapper ----------------


def _pick_tb(B):
    """Largest multiple-of-128 tile dividing B, capped at 2048, leaving >=2 steps."""
    cap = min(2048, B if B < 256 else B // 2)
    best = None
    t = 128
    while t <= cap:
        if B % t == 0:
            best = t
        t += 128
    return best if best is not None else B


def siamese_forward(x1, x2, params, *, tb=None):
    w1, b1, w2, b2, wfc, bfc = params       # b2 unused in kernel (cancels exactly)
    del b2
    B, d_in = x1.shape
    hidden = w1.shape[1]
    emb = w2.shape[1]
    if tb is None:
        tb = _pick_tb(B)
    assert B % tb == 0, "batch must be a multiple of the batch tile"

    def resident(shape):   # full-array block, same index every step -> stays in VMEM
        return pl.BlockSpec(shape, lambda i: (0, 0))

    out_row = pl.pallas_call(
        siamese_kernel,
        out_shape=jax.ShapeDtypeStruct((1, B), jnp.float32),   # lane-dense output
        grid=(B // tb,),
        in_specs=[
            pl.BlockSpec((tb, d_in), lambda i: (i, 0)),        # x1 batch tile (f32)
            pl.BlockSpec((tb, d_in), lambda i: (i, 0)),        # x2 batch tile (f32)
            resident((d_in, hidden)),                          # w1 (bf16)
            resident((1, hidden)),                             # b1 (bf16)
            resident((hidden, emb)),                           # w2 (bf16)
            resident((1, emb)),                                # wfc as (1, E) f32
            pl.BlockSpec(memory_space=pltpu.MemorySpace.SMEM), # bfc scalar, 1-D
        ],
        out_specs=pl.BlockSpec((1, tb), lambda i: (0, i)),
        compiler_params=pltpu.CompilerParams(
            dimension_semantics=("parallel",),
            vmem_limit_bytes=32 * 1024 * 1024,
        ),
    )(x1, x2, w1, b1, w2, wfc, bfc)

    return out_row.reshape(B, 1)


# ---------------- deterministic parameter / input setup ----------------


def make_params(key, d_in, hidden, emb_dim):
    ks = jax.random.split(key, 6)
    # Weights stored pre-transposed as (in, out) == PyTorch weight.T; matmul
    # weights & b1 kept in bf16 at rest, fc weight / biases in f32.
    w1 = (jax.random.normal(ks[0], (d_in, hidden), jnp.float32) * 0.05
          ).astype(jnp.bfloat16)
    b1 = (jax.random.normal(ks[1], (1, hidden), jnp.float32) * 0.05
          ).astype(jnp.bfloat16)
    w2 = (jax.random.normal(ks[2], (hidden, emb_dim), jnp.float32) * 0.05
          ).astype(jnp.bfloat16)
    b2 = jax.random.normal(ks[3], (1, emb_dim), jnp.float32) * 0.05   # cancels in |e1-e2|
    wfc = jax.random.normal(ks[4], (1, emb_dim), jnp.float32) * 0.05
    bfc = jax.random.normal(ks[5], (1,), jnp.float32) * 0.05
    return (w1, b1, w2, b2, wfc, bfc)


def reference_forward(x1, x2, params):
    """Pure-JAX reference with matching precision (bf16 matmul, f32 accum).

    Includes the b2 bias (as the PyTorch module would); it cancels in the
    branch difference up to f32 rounding.
    """
    w1, b1, w2, b2, wfc, bfc = params

    def embed(x):
        x = x.astype(jnp.bfloat16)
        h = jnp.dot(x, w1, preferred_element_type=jnp.float32)
        h = jnp.maximum(h.astype(jnp.bfloat16) + b1, 0)
        return jnp.dot(h, w2, preferred_element_type=jnp.float32) + b2

    d = jnp.abs(embed(x1) - embed(x2))
    return jnp.sum(d * wfc, axis=-1, keepdims=True) + bfc[0]


if __name__ == "__main__":
    # Modest shapes, but tiled so that TB=512 >> 128 and the grid still has
    # 2 steps (both v7x TensorCores get work).
    B, TB, D_IN, HIDDEN, EMB = 1024, 512, 128, 256, 128

    key = jax.random.PRNGKey(0)
    kx1, kx2, kp = jax.random.split(key, 3)

    x1 = jax.random.normal(kx1, (B, D_IN), jnp.float32)
    x2 = jax.random.normal(kx2, (B, D_IN), jnp.float32)
    params = make_params(kp, D_IN, HIDDEN, EMB)

    out = jax.block_until_ready(siamese_forward(x1, x2, params, tb=TB))
    ref = jax.block_until_ready(reference_forward(x1, x2, params))

    assert out.shape == (B, 1)
    err = jnp.max(jnp.abs(out - ref))
    assert jnp.allclose(out, ref, atol=1e-2, rtol=1e-2), f"mismatch, max err {err}"

    print("KERNEL_OK")
</pallas_src>

<mosaic_0001>
module attributes {stable_mosaic.version = 11 : i64} {
  func.func @siamese_kernel(%arg0: i32, %arg1: memref<512x128xf32, #tpu.memory_space<vmem>>, %arg2: memref<512x128xf32, #tpu.memory_space<vmem>>, %arg3: memref<128x256xbf16, #tpu.memory_space<vmem>>, %arg4: memref<1x256xbf16, #tpu.memory_space<vmem>>, %arg5: memref<256x128xbf16, #tpu.memory_space<vmem>>, %arg6: memref<1x128xf32, #tpu.memory_space<vmem>>, %arg7: memref<1xf32, #tpu.memory_space<smem>>, %arg8: memref<1x512xf32, #tpu.memory_space<vmem>>) attributes {dimension_semantics = [#tpu.dimension_semantics<parallel>], iteration_bounds = array<i64: 2>, scalar_prefetch = 0 : i64, scratch_operands = 0 : i64, tpu.core_type = #tpu.core_type<tc>, window_params = [{transform_indices = @transform_0, window_bounds = array<i64: 512, 128>}, {transform_indices = @transform_1, window_bounds = array<i64: 512, 128>}, {pipeline_mode = #tpu.pipeline_mode<synchronous>, transform_indices = @transform_2, window_bounds = array<i64: 128, 256>}, {pipeline_mode = #tpu.pipeline_mode<synchronous>, transform_indices = @transform_3, window_bounds = array<i64: 1, 256>}, {pipeline_mode = #tpu.pipeline_mode<synchronous>, transform_indices = @transform_4, window_bounds = array<i64: 256, 128>}, {pipeline_mode = #tpu.pipeline_mode<synchronous>, transform_indices = @transform_5, window_bounds = array<i64: 1, 128>}, {transform_indices = @transform_6, window_bounds = array<i64: 1>}, {transform_indices = @transform_7, window_bounds = array<i64: 1, 512>}]} {
    %c0 = arith.constant 0 : index
    %c0_0 = arith.constant 0 : index
    %0 = vector.load %arg1[%c0, %c0_0] : memref<512x128xf32, #tpu.memory_space<vmem>>, vector<512x128xf32>
    %1 = arith.truncf %0 : vector<512x128xf32> to vector<512x128xbf16>
    %c0_1 = arith.constant 0 : index
    %c0_2 = arith.constant 0 : index
    %2 = vector.load %arg3[%c0_1, %c0_2] : memref<128x256xbf16, #tpu.memory_space<vmem>>, vector<128x256xbf16>
    %cst = arith.constant dense<0.000000e+00> : vector<512x256xf32>
    %3 = tpu.matmul %1, %2, %cst {dimension_numbers = #tpu.dot_dimension_numbers<[1], [0], [0], [1], [0, 0, 1, 1], [], []>} : vector<512x128xbf16>, vector<128x256xbf16>, vector<512x256xf32> -> vector<512x256xf32>
    %4 = arith.truncf %3 : vector<512x256xf32> to vector<512x256xbf16>
    %c0_3 = arith.constant 0 : index
    %c0_4 = arith.constant 0 : index
    %5 = vector.load %arg4[%c0_3, %c0_4] : memref<1x256xbf16, #tpu.memory_space<vmem>>, vector<1x256xbf16>
    %6 = vector.broadcast %5 : vector<1x256xbf16> to vector<512x256xbf16>
    %7 = arith.addf %4, %6 : vector<512x256xbf16>
    %cst_5 = arith.constant 0.000000e+00 : bf16
    %8 = vector.broadcast %cst_5 : bf16 to vector<512x256xbf16>
    %9 = arith.maximumf %7, %8 : vector<512x256xbf16>
    %c0_6 = arith.constant 0 : index
    %c0_7 = arith.constant 0 : index
    %10 = vector.load %arg5[%c0_6, %c0_7] : memref<256x128xbf16, #tpu.memory_space<vmem>>, vector<256x128xbf16>
    %cst_8 = arith.constant dense<0.000000e+00> : vector<512x128xf32>
    %11 = tpu.matmul %9, %10, %cst_8 {dimension_numbers = #tpu.dot_dimension_numbers<[1], [0], [0], [1], [0, 0, 1, 1], [], []>} : vector<512x256xbf16>, vector<256x128xbf16>, vector<512x128xf32> -> vector<512x128xf32>
    %c0_9 = arith.constant 0 : index
    %c0_10 = arith.constant 0 : index
    %12 = vector.load %arg2[%c0_9, %c0_10] : memref<512x128xf32, #tpu.memory_space<vmem>>, vector<512x128xf32>
    %13 = arith.truncf %12 : vector<512x128xf32> to vector<512x128xbf16>
    %c0_11 = arith.constant 0 : index
    %c0_12 = arith.constant 0 : index
    %14 = vector.load %arg3[%c0_11, %c0_12] : memref<128x256xbf16, #tpu.memory_space<vmem>>, vector<128x256xbf16>
    %cst_13 = arith.constant dense<0.000000e+00> : vector<512x256xf32>
    %15 = tpu.matmul %13, %14, %cst_13 {dimension_numbers = #tpu.dot_dimension_numbers<[1], [0], [0], [1], [0, 0, 1, 1], [], []>} : vector<512x128xbf16>, vector<128x256xbf16>, vector<512x256xf32> -> vector<512x256xf32>
    %16 = arith.truncf %15 : vector<512x256xf32> to vector<512x256xbf16>
    %c0_14 = arith.constant 0 : index
    %c0_15 = arith.constant 0 : index
    %17 = vector.load %arg4[%c0_14, %c0_15] : memref<1x256xbf16, #tpu.memory_space<vmem>>, vector<1x256xbf16>
    %18 = vector.broadcast %17 : vector<1x256xbf16> to vector<512x256xbf16>
    %19 = arith.addf %16, %18 : vector<512x256xbf16>
    %cst_16 = arith.constant 0.000000e+00 : bf16
    %20 = vector.broadcast %cst_16 : bf16 to vector<512x256xbf16>
    %21 = arith.maximumf %19, %20 : vector<512x256xbf16>
    %c0_17 = arith.constant 0 : index
    %c0_18 = arith.constant 0 : index
    %22 = vector.load %arg5[%c0_17, %c0_18] : memref<256x128xbf16, #tpu.memory_space<vmem>>, vector<256x128xbf16>
    %cst_19 = arith.constant dense<0.000000e+00> : vector<512x128xf32>
    %23 = tpu.matmul %21, %22, %cst_19 {dimension_numbers = #tpu.dot_dimension_numbers<[1], [0], [0], [1], [0, 0, 1, 1], [], []>} : vector<512x256xbf16>, vector<256x128xbf16>, vector<512x128xf32> -> vector<512x128xf32>
    %24 = arith.subf %11, %23 : vector<512x128xf32>
    %25 = math.absf %24 : vector<512x128xf32>
    %c0_20 = arith.constant 0 : index
    %c0_21 = arith.constant 0 : index
    %26 = vector.load %arg6[%c0_20, %c0_21] : memref<1x128xf32, #tpu.memory_space<vmem>>, vector<1x128xf32>
    %27 = vector.broadcast %26 : vector<1x128xf32> to vector<512x128xf32>
    %28 = arith.mulf %25, %27 : vector<512x128xf32>
    %cst_22 = arith.constant dense<0.000000e+00> : vector<512xf32>
    %29 = vector.multi_reduction <add>, %28, %cst_22 [1] : vector<512x128xf32> to vector<512xf32>
    %c0_23 = arith.constant 0 : index
    %30 = memref.load %arg7[%c0_23] : memref<1xf32, #tpu.memory_space<smem>>
    %31 = vector.broadcast %30 : f32 to vector<512xf32>
    %32 = arith.addf %29, %31 : vector<512xf32>
    %33 = vector.shape_cast %32 : vector<512xf32> to vector<1x512xf32>
    %c0_24 = arith.constant 0 : index
    %c0_25 = arith.constant 0 : index
    %34 = vector.load %arg8[%c0_24, %c0_25] : memref<1x512xf32, #tpu.memory_space<vmem>>, vector<1x512xf32>
    tpu.vector_store %arg8[%c0_24, %c0_25], %33 {strides = array<i32>} : memref<1x512xf32, #tpu.memory_space<vmem>>, vector<1x512xf32>,
    return
  }
  func.func @transform_0(%arg0: i32) -> (i32, i32) {
    %c0_i32 = arith.constant 0 : i32
    %c0_i32_0 = arith.constant 0 : i32
    return %arg0, %c0_i32 : i32, i32
  }
  func.func @transform_1(%arg0: i32) -> (i32, i32) {
    %c0_i32 = arith.constant 0 : i32
    %c0_i32_0 = arith.constant 0 : i32
    return %arg0, %c0_i32 : i32, i32
  }
  func.func @transform_2(%arg0: i32) -> (i32, i32) {
    %c0_i32 = arith.constant 0 : i32
    %c0_i32_0 = arith.constant 0 : i32
    %c0_i32_1 = arith.constant 0 : i32
    return %c0_i32, %c0_i32_0 : i32, i32
  }
  func.func @transform_3(%arg0: i32) -> (i32, i32) {
    %c0_i32 = arith.constant 0 : i32
    %c0_i32_0 = arith.constant 0 : i32
    %c0_i32_1 = arith.constant 0 : i32
    return %c0_i32, %c0_i32_0 : i32, i32
  }
  func.func @transform_4(%arg0: i32) -> (i32, i32) {
    %c0_i32 = arith.constant 0 : i32
    %c0_i32_0 = arith.constant 0 : i32
    %c0_i32_1 = arith.constant 0 : i32
    return %c0_i32, %c0_i32_0 : i32, i32
  }
  func.func @transform_5(%arg0: i32) -> (i32, i32) {
    %c0_i32 = arith.constant 0 : i32
    %c0_i32_0 = arith.constant 0 : i32
    %c0_i32_1 = arith.constant 0 : i32
    return %c0_i32, %c0_i32_0 : i32, i32
  }
  func.func @transform_6(%arg0: i32) -> i32 {
    %c0_i32 = arith.constant 0 : i32
    %c0_i32_0 = arith.constant 0 : i32
    return %c0_i32 : i32
  }
  func.func @transform_7(%arg0: i32) -> (i32, i32) {
    %c0_i32 = arith.constant 0 : i32
    %c0_i32_0 = arith.constant 0 : i32
    return %c0_i32, %arg0 : i32, i32
  }
}

</mosaic_0001>

<bundles_post_ra>
// kernel: tpu_custom_call.1
= control target key start
LH: loop header
LB: loop body
LE: loop exit
PB: predicated region body
PF: predicated region fallthrough
CT: control target
= control target key end

     0   :  { %s12501_s0 = inlined_call_operand.hbm [shape: f32[1024,128], index: 0, kind: input, shape index: {}]   ;;  %s12502_s1 = inlined_call_operand.hbm [shape: f32[1024,128], index: 1, kind: input, shape index: {}]   ;;  %s12503_s2 = inlined_call_operand.hbm [shape: bf16[128,256], index: 2, kind: input, shape index: {}]   ;;  %s12504_s3 = inlined_call_operand.vmem [shape: bf16[1,256], index: 3, kind: input, shape index: {}]   ;;  %s12505_s4 = inlined_call_operand.hbm [shape: bf16[256,128], index: 4, kind: input, shape index: {}]   ;;  %s12506_s5 = inlined_call_operand.vmem [shape: f32[1,128], index: 5, kind: input, shape index: {}]   ;;  %s12507_s6 = inlined_call_operand.<no memory space> [shape: f32[1], index: 6, kind: input, shape index: {}]   ;;  %s12508_s7 = inlined_call_operand.hbm [shape: f32[1,1024], index: 7, kind: output, shape index: {}]  }
   0x1   :  { %12603 = sst [smem:[#allocation71_spill]] %s12501_s0 }
   0x2   :  { %12604 = sst [smem:[#allocation72_spill]] %s12503_s2 }
   0x3   :  { %12605 = sst [smem:[#allocation73_spill]] %s12505_s4 }
   0x4   :  { %12 = sst [smem:[#allocation2]] %s12507_s6 }
   0x5   :  { %13 = vsyncpa [#allocation4], 0 }
   0x6   :  { %15 = vsyncpa [#allocation4 + $0x1], 0 }
   0x7   :  { %16 = vsyncpa [#allocation7], 0 }
   0x8   :  { %18 = vsyncpa [#allocation7 + $0x1], 0 }
   0x9   :  { %19 = vsyncpa [#allocation10], 0 }
   0xa   :  { %20 = vsyncpa [#allocation5], 0 }
   0xb   :  { %22 = vsyncpa [#allocation5 + $0x1], 0  ;;  %s9294_s26 = smov 0   ;;  %s9296_s27 = smov 0  }
   0xc   :  { %s9298_s28 = smov 0   ;;  %s9300_s29 = smov 0  }
   0xd LB: > { %s9315_s6 = sadd.s32 4294967295, %s9238_s29   ;;  %s8831_s30 = sadd.s32 4294967294, %s9238_s29   ;;  %s9238_s29 = sphi %s9300_s29, %s12853_s29   ;;  %s9234_s28 = sphi %s9298_s28, %s12852_s28   ;;  %s9230_s27 = sphi %s9296_s27, %s12851_s27   ;;  %s9226_s26 = sphi %s9294_s26, %s12850_s26  }
   0xe   : > { %p48_p0 = scmp.ne.s32.totalorder %s9230_s27, %s9226_s26  ;;  %p12509_p1 = scmp.eq.s32.totalorder %s9315_s6, 0 }
   0xf   : > { %p209_p3 = scmp.eq.s32.totalorder %s8831_s30, 1  ;;  %p8832_p5 = scmp.ge.s32.totalorder %s9238_s29, 1 }
  0x10   : > { %p9324_p4 = por %p12509_p1, %p48_p0  ;;  %p216_p7 = scmp.lt.s32.totalorder %s9238_s29, 3 }
  0x11   : > { %p9329_p6 = por %p209_p3, %p48_p0  ;;  %s9240_s11 = smov [#allocation8]  }
  0x12   : > { %s12606_s8 = scalar_select %p9324_p4, 1, 0 }
  0x13   : > { %s12607_s9 = scalar_select %p9329_p6, 1, 0 }
  0x14   : > { %p9334_p8 = pnand %p8832_p5, %p216_p7  ;;  %s228_s12 = sshll.u32 %s9240_s11, 4  ;;  %s9338_s12 = int_to_ptr.vmem [resolvable:$true] %s228_s12 }
  0x15   : > { %s9241_s14 = smov [#allocation9]   ;;  %s12610_s2 = sld [smem:[#allocation72_spill]] }
  0x16   : > { %p8936_p9 = pneg %p9334_p8  ;;  %s244_s15 = sshll.u32 %s9241_s14, 4  ;;  %s9349_s15 = int_to_ptr.vmem [resolvable:$true] %s244_s15 }
  0x18   : > { %p9345_p11 = pnand %p8936_p9, %p12509_p1 }
  0x1a   : > { %p9046_p13 = pneg %p9345_p11 }
  0x1b   : > { %s9044_s18 = scalar_lea.hbm %s12610_s2, 2048 }
  0x1c   : > { %p9045_p12 = scmp.ne.s32.totalorder %s12610_s2, %s9044_s18  ;;  %p9051_p5 = scmp.lt.u32.totalorder %s9044_s18, %s12610_s2 }
  0x1e   : > { %p9047_p0 = pnand %p9046_p13, %p9045_p12 }
  0x20   : > { %p9048_p3 = pneg %p9047_p0 }
  0x22   : > { %p9053_p7 = pnand %p9051_p5, %p9048_p3 }
  0x24   : > { %9056 = shalt.err (!%p9053_p7)
}
  0x25   : > { %s9057_s23 = scalar_lea.vmem %s9338_s12, 2048  ;;  %p9065_p2 = scmp.lt.s32.totalorder %s9338_s12, %s9338_s12 }
  0x26   : > { %p9058_p9 = scmp.ne.s32.totalorder %s9338_s12, %s9057_s23  ;;  %p9066_p12 = scmp.lt.s32.totalorder %s9057_s23, %s9057_s23 }
  0x28   : > { %p9060_p10 = pnand %p9058_p9, %p9046_p13  ;;  %p9067_p0 = por %p9066_p12, %p9065_p2 }
  0x2a   : > { %p9061_p1 = pneg %p9060_p10 }
  0x2c   : > { %p9068_p6 = pnand %p9067_p0, %p9061_p1 }
  0x2e   : > { %9071 = shalt.err (!%p9068_p6)
}
  0x2f   : > { %s12510_s24 = smov 128   ;;  %s12512_s25 = smov 8  }
  0x30   : > { %8939 = dma.hbm_to_vmem [thread:$0]  (!%p9345_p11), %s12610_s2, 2048, %s9338_s12, [#allocation7], %s12510_s24, %s12510_s24, %s12512_s25  }
  0x31   : > { %s12611_s4 = sld [smem:[#allocation73_spill]] }
  0x37   : > { %s9072_s17 = scalar_lea.hbm %s12611_s4, 2048 }
  0x38   : > { %p9073_p1 = scmp.ne.s32.totalorder %s12611_s4, %s9072_s17  ;;  %p9079_p10 = scmp.lt.u32.totalorder %s9072_s17, %s12611_s4 }
  0x3a   : > { %p9075_p2 = pnand %p9073_p1, %p9046_p13 }
  0x3c   : > { %p9076_p6 = pneg %p9075_p2 }
  0x3e   : > { %p9081_p3 = pnand %p9079_p10, %p9076_p6 }
  0x40   : > { %9084 = shalt.err (!%p9081_p3)
}
  0x41   : > { %s9085_s12 = scalar_lea.vmem %s9349_s15, 2048  ;;  %p9093_p12 = scmp.lt.s32.totalorder %s9349_s15, %s9349_s15 }
  0x42   : > { %p9086_p5 = scmp.ne.s32.totalorder %s9349_s15, %s9085_s12  ;;  %p9094_p0 = scmp.lt.s32.totalorder %s9085_s12, %s9085_s12 }
  0x44   : > { %p9088_p7 = pnand %p9086_p5, %p9046_p13  ;;  %p9095_p1 = por %p9094_p0, %p9093_p12 }
  0x46   : > { %p9089_p9 = pneg %p9088_p7 }
  0x48   : > { %p9096_p2 = pnand %p9095_p1, %p9089_p9 }
  0x4a   : > { %9099 = shalt.err (!%p9096_p2)
}
  0x4b   : > { %s9244_s22 = smov 64   ;;  %s9245_s23 = smov 4  }
  0x4c   : > { %8942 = dma.hbm_to_vmem [thread:$0]  (!%p9345_p11), %s12611_s4, 2048, %s9349_s15, [#allocation10], %s9244_s22, %s9244_s22, %s9245_s23  }
  0x4d   : > { %s9407_s14 = sadd.s32 1, %s9238_s29   ;;  %s35_s17 = sadd.s32 1, %s9234_s28 }
  0x4e   : > { %s32_s16 = ssub.s32 %s9238_s29, %s9407_s14  ;;  %p42_p6 = scmp.ne.s32.totalorder %s9234_s28, %s9230_s27 }
  0x4f   : > { %p33_p13 = scmp.eq.s32.totalorder %s32_s16, 0  ;;  %p43_p10 = scmp.eq.s32.totalorder %s9238_s29, 0 }
  0x50   : > { %p12612_p5 = scmp.eq.s32.totalorder %s9315_s6, 1  ;;  %p8956_p9 = scmp.lt.s32.totalorder %s9238_s29, 2 }
  0x51   : > { %s9416_s18 = scalar_select %p33_p13, %s9234_s28, %s35_s17  }
  0x52   : > { %p44_p3 = por %p43_p10, %p42_p6  ;;  %p9420_p7 = por %p12612_p5, %p42_p6 }
  0x53   : > { %s264_s13 = sand.u32 1, %s9234_s28   ;;  %s8887_s15 = sshll.u32 %s9238_s29, 13 }
  0x54   : > { %s12613_s19 = scalar_select %p9420_p7, 1, 0 }
  0x55   : > { %s8836_s20 = sshll.u32 %s264_s13, 9  ;;  %s12614_s0 = sld [smem:[#allocation71_spill]] }
  0x56   : > { %s268_s23 = scalar_lea.vmem [#allocation3], %s8836_s20  ;;  %p9434_p11 = pnand %p8956_p9, %p44_p3 }
  0x57   : > { %s275_s30 = sshll.u32 %s268_s23, 4  ;;  %s9441_s21 = scalar_lea.hbm %s12502_s1, %s8887_s15  ;;  %s9432_s30 = int_to_ptr.vmem [resolvable:$true] %s275_s30 }
  0x58   : > { %s289_s12 = scalar_lea.vmem [#allocation6], %s8836_s20  ;;  %s9445_s25 = scalar_lea.sflag [#allocation4], %s264_s13 }
  0x59   : > { %s9443_s24 = sshll.u32 %s289_s12, 4  ;;  %p9102_p0 = pneg %p9434_p11  ;;  %s9477_s24 = int_to_ptr.vmem [resolvable:$true] %s9443_s24 }
  0x5b   : > { %s9430_s22 = scalar_lea.hbm %s12614_s0, %s8887_s15  ;;  %s9105_s16 = scalar_lea.hbm %s12614_s0, 16384 }
  0x5c   : > { %s9100_s23 = scalar_lea.hbm %s9430_s22, 8192  ;;  %p9106_p13 = scmp.lt.u32.totalorder %s9430_s22, %s12614_s0 }
  0x5d   : > { %p9101_p12 = scmp.ne.s32.totalorder %s9430_s22, %s9100_s23  ;;  %p9107_p6 = scmp.lt.u32.totalorder %s9105_s16, %s9100_s23 }
  0x5e   : > { %p9109_p3 = scmp.lt.u32.totalorder %s9100_s23, %s9430_s22 }
  0x5f   : > { %p9103_p1 = pnand %p9102_p0, %p9101_p12  ;;  %p9108_p10 = por %p9107_p6, %p9106_p13 }
  0x61   : > { %p9104_p2 = pneg %p9103_p1  ;;  %p9110_p5 = por %p9109_p3, %p9108_p10 }
  0x63   : > { %p9111_p9 = pnand %p9110_p5, %p9104_p2 }
  0x65   : > { %9114 = shalt.err (!%p9111_p9)
}
  0x66   : > { %s9115_s13 = scalar_lea.vmem %s9432_s30, 8192  ;;  %s9246_s2 = smov [#allocation3]  }
  0x67   : > { %p9116_p12 = scmp.ne.s32.totalorder %s9432_s30, %s9115_s13  ;;  %s9120_s4 = sshll.u32 %s9246_s2, 4  ;;  %s9121_s4 = int_to_ptr.vmem [resolvable:$false] %s9120_s4 }
  0x68   : > { %s9122_s20 = scalar_lea.vmem %s9121_s4, 16384  ;;  %p9123_p4 = scmp.lt.s32.totalorder %s9432_s30, %s9121_s4 }
  0x69   : > { %p9118_p1 = pnand %p9116_p12, %p9102_p0  ;;  %p9124_p13 = scmp.lt.s32.totalorder %s9122_s20, %s9115_s13 }
  0x6b   : > { %p9119_p7 = pneg %p9118_p1  ;;  %p9125_p6 = por %p9124_p13, %p9123_p4 }
  0x6d   : > { %p9126_p10 = pnand %p9125_p6, %p9119_p7 }
  0x6f   : > { %9129 = shalt.err (!%p9126_p10)
}
  0x70   : > { %s12616_s12 = smov 8   ;;  %s12617_s23 = smov 128  }
  0x71   : > { %8946 = dma.hbm_to_vmem [thread:$0]  (!%p9434_p11), %s9430_s22, 8192, %s9432_s30, %s9445_s25, %s12617_s23, %s12617_s23, %s12616_s12  }
  0x72   : > { %s285_s16 = sand.u32 1, %s9238_s29   ;;  %s9130_s15 = scalar_lea.hbm %s9441_s21, 8192 }
  0x73   : > { %s9480_s17 = scalar_lea.sflag [#allocation7], %s285_s16  ;;  %p9131_p4 = scmp.ne.s32.totalorder %s9441_s21, %s9130_s15 }
  0x74   : > { %s9135_s4 = scalar_lea.hbm %s12502_s1, 16384  ;;  %p9136_p3 = scmp.lt.u32.totalorder %s9441_s21, %s12502_s1 }
  0x75   : > { %p9133_p7 = pnand %p9131_p4, %p9102_p0  ;;  %p9137_p5 = scmp.lt.u32.totalorder %s9135_s4, %s9130_s15 }
  0x76   : > { %p9139_p12 = scmp.lt.u32.totalorder %s9130_s15, %s9441_s21 }
  0x77   : > { %p9134_p2 = pneg %p9133_p7  ;;  %p9138_p9 = por %p9137_p5, %p9136_p3 }
  0x79   : > { %p9140_p1 = por %p9139_p12, %p9138_p9 }
  0x7b   : > { %p9141_p13 = pnand %p9140_p1, %p9134_p2 }
  0x7d   : > { %9144 = shalt.err (!%p9141_p13)
}
  0x7e   : > { %s9145_s25 = scalar_lea.vmem %s9477_s24, 8192  ;;  %s9247_s22 = smov [#allocation6]  }
  0x7f   : > { %p9146_p6 = scmp.ne.s32.totalorder %s9477_s24, %s9145_s25  ;;  %s9150_s30 = sshll.u32 %s9247_s22, 4  ;;  %s9151_s30 = int_to_ptr.vmem [resolvable:$false] %s9150_s30 }
  0x80   : > { %s9152_s0 = scalar_lea.vmem %s9151_s30, 16384  ;;  %p9153_p7 = scmp.lt.s32.totalorder %s9477_s24, %s9151_s30 }
  0x81   : > { %p9148_p10 = pnand %p9146_p6, %p9102_p0  ;;  %p9154_p3 = scmp.lt.s32.totalorder %s9152_s0, %s9145_s25 }
  0x83   : > { %p9149_p4 = pneg %p9148_p10  ;;  %p9155_p5 = por %p9154_p3, %p9153_p7 }
  0x85   : > { %p9156_p9 = pnand %p9155_p5, %p9149_p4 }
  0x87   : > { %9159 = shalt.err (!%p9156_p9)
}
  0x88   : > { %8949 = dma.hbm_to_vmem [thread:$0]  (!%p9434_p11), %s9441_s21, 8192, %s9477_s24, %s9480_s17, %s12617_s23, %s12617_s23, %s12616_s12  }
  0x89   : > { %308 = sbr.rel (%p9334_p8) target bundleno = 1918 (0x77e), region = 48 }
  0x90   : > { %s9512_s16 = sand.u32 1, %s9230_s27   ;;  %p12618_p0 = scmp.ne.s32.totalorder %s12606_s8, 0 }
  0x91   : > { %s8843_s15 = sshll.u32 %s9512_s16, 9  ;;  %s311_s13 = scalar_lea.sflag [#allocation4], %s9512_s16 }
  0x92   : > { %s9516_s2 = scalar_lea.vmem [#allocation3], %s8843_s15 }
  0x93   : > { %9205 = dma.done.wait (%p12618_p0), %s311_s13, 8192  }
  0x94   : > { %9207 = vsyncadd (%p12618_p0), %s311_s13, 4294959104  ;;  %s319_s24 = sand.u32 1, %s9315_s6   ;;  %s9523_s11 = scalar_lea.vmem [#allocation6], %s8843_s15 }
  0x95   : > { %s320_s10 = scalar_lea.sflag [#allocation7], %s319_s24 }
  0x96   : > { %9209 = dma.done.wait (%p12618_p0), %s320_s10, 8192  }
  0x97   : > { %9211 = vsyncadd (%p12618_p0), %s320_s10, 4294959104  ;;  %p12619_p8 = scmp.eq.s32.totalorder %s9315_s6, 0 }
  0x99   : > { %9213 = dma.done.wait (%p12619_p8), [#allocation7], 2048   ;;  %p12620_p11 = pmov %p12619_p8 }
  0x9a   : > { %p12621_p2 = pmov %p12619_p8 }
  0x9b   : > { %9215 = vsyncadd (%p12620_p11), [#allocation7], 4294965248 }
  0x9c   : > { %9217 = dma.done.wait (%p12621_p2), [#allocation10], 2048   ;;  %p12622_p12 = pmov %p12621_p2 }
  0x9d   : > { %v12540_v0 = vmov 0   ;;  %v9002_v1 = vld [vmem:[#allocation8 + $0x4] ss:$8 sps:$4 sm:$0xff]   ;;  %v9004_v2 = vld [vmem:[#allocation8] ss:$8 sps:$4 sm:$0xff]   ;;  %v373_v20 = vld [vmem:[%s9516_s2 + $0x10] sm:$0xff] }
  0x9e   : > { %9219 = vsyncadd (%p12622_p12), [#allocation10], 4294965248  ;;  %595 = vmatprep.mubr.bf16.mxu0 %v12540_v0  ;;  %1274 = vmatprep.subr.bf16.mxu1 %v12540_v0  ;;  %v9005_v3 = vld [vmem:[#allocation8 + $0x14] ss:$8 sps:$4 sm:$0xff]   ;;  %v9007_v4 = vld [vmem:[#allocation8 + $0x10] ss:$8 sps:$4 sm:$0xff]  }
  0x9f   : > { %9000 = vset.pattern.permute.xlu1 %v12540_v0  ;;  %9001 = vset.pattern.permute.xlu0 %v12540_v0  ;;  %v9008_v5 = vld [vmem:[#allocation8 + $0x24] ss:$8 sps:$4 sm:$0xff]   ;;  %v9010_v6 = vld [vmem:[#allocation8 + $0x20] ss:$8 sps:$4 sm:$0xff]   ;;  %v9011_v7 = vld [vmem:[#allocation8 + $0x34] ss:$8 sps:$4 sm:$0xff]  }
  0xa0   : > { %563 = vmatprep.subr.bf16.mxu0 %v9002_v1  ;;  %v9013_v8 = vld [vmem:[#allocation8 + $0x30] ss:$8 sps:$4 sm:$0xff]   ;;  %v9014_v9 = vld [vmem:[#allocation8 + $0x44] ss:$8 sps:$4 sm:$0xff]   ;;  %v9016_v10 = vld [vmem:[#allocation8 + $0x40] ss:$8 sps:$4 sm:$0xff]  }
  0xa1   : > { %564 = vmatpush1.bf16.msra.mxu0 %v9004_v2  ;;  %v9017_v11 = vld [vmem:[#allocation8 + $0x54] ss:$8 sps:$4 sm:$0xff]   ;;  %v9019_v12 = vld [vmem:[#allocation8 + $0x50] ss:$8 sps:$4 sm:$0xff]   ;;  %v9020_v13 = vld [vmem:[#allocation8 + $0x64] ss:$8 sps:$4 sm:$0xff]  }
  0xa2   : > { %565 = vmatprep.subr.bf16.mxu0 %v9005_v3  ;;  %v9022_v14 = vld [vmem:[#allocation8 + $0x60] ss:$8 sps:$4 sm:$0xff]   ;;  %v9023_v15 = vld [vmem:[#allocation8 + $0x74] ss:$8 sps:$4 sm:$0xff]   ;;  %v9025_v16 = vld [vmem:[#allocation8 + $0x70] ss:$8 sps:$4 sm:$0xff]  }
  0xa3   : > { %v371_v17 = vld [vmem:[%s9516_s2] sm:$0xff]  ;;  %v372_v18 = vld [vmem:[%s9516_s2 + $0x8] sm:$0xff]  ;;  %v374_v21 = vld [vmem:[%s9516_s2 + $0x18] sm:$0xff]  ;;  %s2820_s17 = sld [smem:[#allocation2]]  ;;  %vm8337_vm0 = vcmask 130112   ;;  %vm8344_vm1 = vcmask 195712  }
  0xa4   : > { %v435_v19 = vpack.c.bf16 %v372_v18, %v371_v17  ;;  %v436_v22 = vpack.c.bf16 %v374_v21, %v373_v20  ;;  %v375_v23 = vld [vmem:[%s9516_s2 + $0x20] sm:$0xff]  ;;  %v376_v24 = vld [vmem:[%s9516_s2 + $0x28] sm:$0xff]  ;;  %v377_v26 = vld [vmem:[%s9516_s2 + $0x30] sm:$0xff]  ;;  %vm8351_vm2 = vcmask 261312   ;;  %vm8358_vm3 = vcmask 326912   ;;  %s8847_s30 = sshll.u32 %s9512_s16, 2 }
  0xa5   : > { %566 = vmatpush1.bf16.msra.mxu0 %v9007_v4  ;;  %v437_v25 = vpack.c.bf16 %v376_v24, %v375_v23  ;;  %v378_v27 = vld [vmem:[%s9516_s2 + $0x38] sm:$0xff]  ;;  %v379_v29 = vld [vmem:[%s9516_s2 + $0x40] sm:$0xff]  ;;  %v380_v30 = vld [vmem:[%s9516_s2 + $0x48] sm:$0xff]  ;;  %vm8365_vm4 = vcmask 392512   ;;  %vm8372_vm5 = vcmask 458112   ;;  %vm8379_vm6 = vcmask 523712  }
  0xa6   : > { %567 = vmatprep.subr.bf16.mxu0 %v9008_v5  ;;  %v438_v28 = vpack.c.bf16 %v378_v27, %v377_v26  ;;  %v9555_v31 = vld [vmem:[#allocation9] sm:$0xff]   ;;  %v439_v32 = vpack.c.bf16 %v380_v30, %v379_v29  ;;  %v9560_v33 = vld [vmem:[#allocation9 + $0x8] sm:$0xff]   ;;  %v381_v34 = vld [vmem:[%s9516_s2 + $0x50] sm:$0xff]  ;;  %vm8386_vm7 = vcmask 589312   ;;  %vm8393_vm8 = vcmask 654912   ;;  %s8889_s0 = sshll.u32 %s9315_s6, 6 }
  0xa7   : > { %1275 = vmatpush1.bf16.msra.mxu1 %v9555_v31  ;;  %v382_v35 = vld [vmem:[%s9516_s2 + $0x58] sm:$0xff]  ;;  %v9566_v36 = vld [vmem:[#allocation9 + $0x10] sm:$0xff]   ;;  %v383_v39 = vld [vmem:[%s9516_s2 + $0x60] sm:$0xff]  ;;  %vm8400_vm9 = vcmask 720512   ;;  %vm8407_vm10 = vcmask 786112   ;;  %vm8414_vm11 = vcmask 851712   ;;  %s12457_s10 = scalar_lea.hbm %s12508_s7, %s8889_s0 }
  0xa8   : > { %1276 = vmatprep.subr.bf16.mxu1 %v12540_v0  ;;  %v440_v37 = vpack.c.bf16 %v382_v35, %v381_v34  ;;  %v9571_v38 = vld [vmem:[#allocation9 + $0x18] sm:$0xff]   ;;  %v384_v40 = vld [vmem:[%s9516_s2 + $0x68] sm:$0xff]  ;;  %v9577_v41 = vld [vmem:[#allocation9 + $0x20] sm:$0xff]   ;;  %vm8421_vm12 = vcmask 917312   ;;  %vm8428_vm13 = vcmask 982912   ;;  %vm8435_vm14 = vcmask 1048512  }
  0xa9   : > { %568 = vmatpush1.bf16.msra.mxu0 %v9010_v6  ;;  %v441_v42 = vpack.c.bf16 %v384_v40, %v383_v39  ;;  %v9582_v43 = vld [vmem:[#allocation9 + $0x28] sm:$0xff]   ;;  %v385_v44 = vld [vmem:[%s9516_s2 + $0x70] sm:$0xff]  ;;  %v386_v45 = vld [vmem:[%s9516_s2 + $0x78] sm:$0xff]  ;;  %s366_s15 = scalar_lea.vmem [#allocation11], %s8847_s30  ;;  %p12847_p13 = scmp.ne.s32.totalorder %s12613_s19, 0 }
  0xaa   : > { %569 = vmatprep.subr.bf16.mxu0 %v9011_v7  ;;  %v9588_v46 = vld [vmem:[#allocation9 + $0x30] sm:$0xff]   ;;  %v442_v47 = vpack.c.bf16 %v386_v45, %v385_v44  ;;  %v9593_v48 = vld [vmem:[#allocation9 + $0x38] sm:$0xff]   ;;  %v387_v49 = vld [vmem:[%s9516_s2 + $0x80] sm:$0xff]  ;;  %s8719_s13 = sshll.u32 %s366_s15, 4  ;;  %s9250_s8 = smov [#allocation11]   ;;  %s12459_s13 = int_to_ptr.vmem [resolvable:$true] %s8719_s13 }
  0xab   : > { %1277 = vmatpush1.bf16.msra.mxu1 %v9560_v33  ;;  %v388_v50 = vld [vmem:[%s9516_s2 + $0x88] sm:$0xff]  ;;  %v9599_v51 = vld [vmem:[#allocation9 + $0x40] sm:$0xff]   ;;  %v389_v54 = vld [vmem:[%s9516_s2 + $0x90] sm:$0xff]  ;;  %s9160_s6 = scalar_lea.vmem %s12459_s13, 64  ;;  %s9164_s21 = sshll.u32 %s9250_s8, 4  ;;  %s9165_s21 = int_to_ptr.vmem [resolvable:$false] %s9164_s21 }
  0xac   : > { %1278 = vmatprep.subr.bf16.mxu1 %v12540_v0  ;;  %v443_v52 = vpack.c.bf16 %v388_v50, %v387_v49  ;;  %v9604_v53 = vld [vmem:[#allocation9 + $0x48] sm:$0xff]   ;;  %v390_v55 = vld [vmem:[%s9516_s2 + $0x98] sm:$0xff]  ;;  %v9610_v56 = vld [vmem:[#allocation9 + $0x50] sm:$0xff]   ;;  %p9161_p1 = scmp.ne.s32.totalorder %s12459_s13, %s9160_s6  ;;  %s9166_s12 = scalar_lea.vmem %s9165_s21, 128 }
  0xad   : > { %570 = vmatpush1.bf16.msra.mxu0 %v9013_v8  ;;  %v444_v57 = vpack.c.bf16 %v390_v55, %v389_v54  ;;  %v9615_v58 = vld [vmem:[#allocation9 + $0x58] sm:$0xff]   ;;  %v391_v59 = vld [vmem:[%s9516_s2 + $0xa0] sm:$0xff]  ;;  %v392_v60 = vld [vmem:[%s9516_s2 + $0xa8] sm:$0xff]  ;;  %v9249_v55 = vmov 1966171168   ;;  %p9167_p4 = scmp.lt.s32.totalorder %s12459_s13, %s9165_s21  ;;  %p9168_p7 = scmp.lt.s32.totalorder %s9166_s12, %s9160_s6 }
  0xae   : > { %571 = vmatprep.subr.bf16.mxu0 %v9014_v9  ;;  %v9621_v61 = vld [vmem:[#allocation9 + $0x60] sm:$0xff]   ;;  %v445_v62 = vpack.c.bf16 %v392_v60, %v391_v59  ;;  %v393_v63 = vld [vmem:[%s9516_s2 + $0xb0] sm:$0xff]  ;;  %v12516_v59 = vlaneseq  ;;  %p9162_p6 = pnand %p9161_p1, %p12847_p13 }
  0xaf   : > { %1279 = vmatpush1.bf16.msra.mxu1 %v9566_v36  ;;  %v403_v18 = vld [vmem:[%s9516_s2 + $0x100] sm:$0xff]  ;;  %v405_v21 = vld [vmem:[%s9516_s2 + $0x110] sm:$0xff]  ;;  %p9169_p3 = por %p9168_p7, %p9167_p4 }
  0xb0   : > { %1280 = vmatprep.subr.bf16.mxu1 %v12540_v0  ;;  %v407_v24 = vld [vmem:[%s9516_s2 + $0x120] sm:$0xff]  ;;  %v409_v27 = vld [vmem:[%s9516_s2 + $0x130] sm:$0xff]  ;;  %p9163_p10 = pneg %p9162_p6 }
  0xb1   : > { %572 = vmatpush1.bf16.msra.mxu0 %v9016_v10  ;;  %v411_v30 = vld [vmem:[%s9516_s2 + $0x140] sm:$0xff]  ;;  %v413_v35 = vld [vmem:[%s9516_s2 + $0x150] sm:$0xff] }
  0xb2   : > { %573 = vmatprep.subr.bf16.mxu0 %v9017_v11  ;;  %v415_v40 = vld [vmem:[%s9516_s2 + $0x160] sm:$0xff]  ;;  %v417_v45 = vld [vmem:[%s9516_s2 + $0x170] sm:$0xff]  ;;  %p9170_p5 = pnand %p9169_p3, %p9163_p10 }
  0xb3   : > { %1281 = vmatpush1.bf16.msra.mxu1 %v9571_v38  ;;  %v419_v50 = vld [vmem:[%s9516_s2 + $0x180] sm:$0xff]  ;;  %v421_v60 = vld [vmem:[%s9516_s2 + $0x190] sm:$0xff] }
  0xb4   : > { %1282 = vmatprep.subr.bf16.mxu1 %v12540_v0 }
  0xb5   : > { %574 = vmatpush1.bf16.msra.mxu0 %v9019_v12 }
  0xb6   : > { %575 = vmatprep.subr.bf16.mxu0 %v9020_v13 }
  0xb7   : > { %1283 = vmatpush1.bf16.msra.mxu1 %v9577_v41 }
  0xb8   : > { %1284 = vmatprep.subr.bf16.mxu1 %v12540_v0 }
  0xb9   : > { %576 = vmatpush1.bf16.msra.mxu0 %v9022_v14 }
  0xba   : > { %577 = vmatprep.subr.bf16.mxu0 %v9023_v15 }
  0xbb   : > { %1285 = vmatpush1.bf16.msra.mxu1 %v9582_v43 }
  0xbc   : > { %1286 = vmatprep.subr.bf16.mxu1 %v12540_v0 }
  0xbd   : > { %578 = vmatpush1.bf16.msra.mxu0 %v9025_v16 }
  0xbe   : > { %1659 = vmatprep.subr.bf16.mxu0 %v9002_v1  ;;  %v394_v1 = vld [vmem:[%s9516_s2 + $0xb8] sm:$0xff] }
  0xbf   : > { %1287 = vmatpush1.bf16.msra.mxu1 %v9588_v46 }
  0xc0   : > { %596 = vmatmul.mubr.bf16.vlgmr.msra.gmra.mrb[0].mxu0 %v435_v19  ;;  %1288 = vmatprep.subr.bf16.mxu1 %v12540_v0  ;;  %v404_v19 = vld [vmem:[%s9516_s2 + $0x108] sm:$0xff] }
  0xc1   : > { %1660 = vmatpush1.bf16.msra.mxu0 %v9004_v2  ;;  %605 = vmatprep.mubr.bf16.mxu0 %v12540_v0  ;;  %v9629_v2 = vld [vmem:[#allocation9 + $0x68] sm:$0xff]   ;;  %v451_v20 = vpack.c.bf16 %v404_v19, %v403_v18 }
  0xc2   : > { %1661 = vmatprep.subr.bf16.mxu0 %v9005_v3  ;;  %v446_v3 = vpack.c.bf16 %v394_v1, %v393_v63 }
  0xc3   : > { %1289 = vmatpush1.bf16.msra.mxu1 %v9593_v48 }
  0xc4   : > { %1290 = vmatprep.subr.bf16.mxu1 %v12540_v0 }
  0xc5   : > { %1662 = vmatpush1.bf16.msra.mxu0 %v9007_v4  ;;  %v9633_v4 = vld [vmem:[#allocation9 + $0x70] sm:$0xff]  }
  0xc6   : > { %1663 = vmatprep.subr.bf16.mxu0 %v9008_v5  ;;  %v395_v5 = vld [vmem:[%s9516_s2 + $0xc0] sm:$0xff] }
  0xc7   : > { %1291 = vmatpush1.bf16.msra.mxu1 %v9599_v51 }
  0xc8   : > { %606 = vmatmul.mubr.bf16.gmra.mrb[4].mxu0 %v436_v22  ;;  %1292 = vmatprep.subr.bf16.mxu1 %v12540_v0  ;;  %v406_v22 = vld [vmem:[%s9516_s2 + $0x118] sm:$0xff] }
  0xc9   : > { %615 = vmatprep.mubr.bf16.mxu0 %v12540_v0  ;;  %1664 = vmatpush1.bf16.msra.mxu0 %v9010_v6  ;;  %v396_v6 = vld [vmem:[%s9516_s2 + $0xc8] sm:$0xff]  ;;  %v452_v23 = vpack.c.bf16 %v406_v22, %v405_v21 }
  0xca   : > { %1665 = vmatprep.subr.bf16.mxu0 %v9011_v7  ;;  %v9640_v7 = vld [vmem:[#allocation9 + $0x78] sm:$0xff]  }
  0xcb   : > { %1293 = vmatpush1.bf16.msra.mxu1 %v9604_v53 }
  0xcc   : > { %1294 = vmatprep.subr.bf16.mxu1 %v12540_v0 }
  0xcd   : > { %1666 = vmatpush1.bf16.msra.mxu0 %v9013_v8  ;;  %v447_v8 = vpack.c.bf16 %v396_v6, %v395_v5  ;;  %v8864_v5 = vld.sshfl [vmem:[%s12504_s3] sm:$0x11 pattern:$0x75316420] }
  0xce   : > { %1667 = vmatprep.subr.bf16.mxu0 %v9014_v9  ;;  %v397_v9 = vld [vmem:[%s9516_s2 + $0xd0] sm:$0xff] }
  0xcf   : > { %1295 = vmatpush1.bf16.msra.mxu1 %v9610_v56 }
  0xd0   : > { %616 = vmatmul.mubr.bf16.gmra.mrb[8].mxu0 %v437_v25  ;;  %1296 = vmatprep.subr.bf16.mxu1 %v12540_v0  ;;  %v408_v25 = vld [vmem:[%s9516_s2 + $0x128] sm:$0xff] }
  0xd1   : > { %625 = vmatprep.mubr.bf16.mxu0 %v12540_v0  ;;  %1668 = vmatpush1.bf16.msra.mxu0 %v9016_v10  ;;  %v398_v10 = vld [vmem:[%s9516_s2 + $0xd8] sm:$0xff]  ;;  %v453_v26 = vpack.c.bf16 %v408_v25, %v407_v24 }
  0xd2   : > { %1669 = vmatprep.subr.bf16.mxu0 %v9017_v11  ;;  %v448_v11 = vpack.c.bf16 %v398_v10, %v397_v9  ;;  %v424_v9 = vld [vmem:[%s9516_s2 + $0x1a8] sm:$0xff]  ;;  %v989_v10 = vcombine.high %v8864_v5, %v8864_v5 }
  0xd3   : > { %1297 = vmatpush1.bf16.msra.mxu1 %v9615_v58 }
  0xd4   : > { %1298 = vmatprep.subr.bf16.mxu1 %v12540_v0 }
  0xd5   : > { %1670 = vmatpush1.bf16.msra.mxu0 %v9019_v12  ;;  %v399_v12 = vld [vmem:[%s9516_s2 + $0xe0] sm:$0xff] }
  0xd6   : > { %1671 = vmatprep.subr.bf16.mxu0 %v9020_v13  ;;  %v400_v13 = vld [vmem:[%s9516_s2 + $0xe8] sm:$0xff] }
  0xd7   : > { %1299 = vmatpush1.bf16.msra.mxu1 %v9621_v61 }
  0xd8   : > { %626 = vmatmul.mubr.bf16.gmra.mrb[12].mxu0 %v438_v28  ;;  %1300 = vmatprep.subr.bf16.mxu1 %v12540_v0  ;;  %v410_v28 = vld [vmem:[%s9516_s2 + $0x138] sm:$0xff] }
  0xd9   : > { %635 = vmatprep.mubr.bf16.mxu0 %v12540_v0  ;;  %1672 = vmatpush1.bf16.msra.mxu0 %v9022_v14  ;;  %v449_v14 = vpack.c.bf16 %v400_v13, %v399_v12  ;;  %v454_v29 = vpack.c.bf16 %v410_v28, %v409_v27 }
  0xda   : > { %1673 = vmatprep.subr.bf16.mxu0 %v9023_v15  ;;  %v401_v15 = vld [vmem:[%s9516_s2 + $0xf0] sm:$0xff] }
  0xdb   : > { %1301 = vmatpush1.bf16.msra.mxu1 %v9629_v2 }
  0xdc   : > { %1302 = vmatprep.subr.bf16.mxu1 %v12540_v0 }
  0xdd   : > { %1674 = vmatpush1.bf16.msra.mxu0 %v9025_v16  ;;  %v402_v16 = vld [vmem:[%s9516_s2 + $0xf8] sm:$0xff] }
  0xde   : > { %2204 = vmatprep.subr.bf16.mxu0 %v12540_v0  ;;  %v450_v17 = vpack.c.bf16 %v402_v16, %v401_v15  ;;  %v425_v16 = vld [vmem:[%s9516_s2 + $0x1b0] sm:$0xff] }
  0xdf   : > { %1303 = vmatpush1.bf16.msra.mxu1 %v9633_v4 }
  0xe0   : > { %636 = vmatmul.mubr.bf16.gmra.mrb[16].mxu0 %v439_v32  ;;  %1304 = vmatprep.subr.bf16.mxu1 %v12540_v0  ;;  %v412_v32 = vld [vmem:[%s9516_s2 + $0x148] sm:$0xff] }
  0xe1   : > { %645 = vmatprep.mubr.bf16.mxu0 %v12540_v0  ;;  %v455_v34 = vpack.c.bf16 %v412_v32, %v411_v30  ;;  %v427_v30 = vld [vmem:[%s9516_s2 + $0x1c0] sm:$0xff]  ;;  %v428_v32 = vld [vmem:[%s9516_s2 + $0x1c8] sm:$0xff] }
  0xe3   : > { %1305 = vmatpush1.bf16.msra.mxu1 %v9640_v7 }
  0xe4   : > { %8890 = vmatprep.subr.bf16.mxu1 %v12540_v0 }
  0xe8   : > { %646 = vmatmul.mubr.bf16.gmra.mrb[20].mxu0 %v440_v37  ;;  %v414_v37 = vld [vmem:[%s9516_s2 + $0x158] sm:$0xff] }
  0xe9   : > { %655 = vmatprep.mubr.bf16.mxu0 %v12540_v0  ;;  %v456_v39 = vpack.c.bf16 %v414_v37, %v413_v35 }
  0xf0   : > { %656 = vmatmul.mubr.bf16.gmra.mrb[24].mxu0 %v441_v42  ;;  %v416_v42 = vld [vmem:[%s9516_s2 + $0x168] sm:$0xff] }
  0xf1   : > { %665 = vmatprep.mubr.bf16.mxu0 %v12540_v0  ;;  %v457_v44 = vpack.c.bf16 %v416_v42, %v415_v40  ;;  %v463_v40 = vpack.c.bf16 %v428_v32, %v427_v30 }
  0xf8   : > { %666 = vmatmul.mubr.bf16.gmra.mrb[28].mxu0 %v442_v47  ;;  %v418_v47 = vld [vmem:[%s9516_s2 + $0x178] sm:$0xff] }
  0xf9   : > { %675 = vmatprep.mubr.bf16.mxu0 %v12540_v0  ;;  %v458_v49 = vpack.c.bf16 %v418_v47, %v417_v45 }
 0x100   : > { %676 = vmatmul.mubr.bf16.gmra.mrb[32].mxu0 %v443_v52  ;;  %v420_v52 = vld [vmem:[%s9516_s2 + $0x188] sm:$0xff] }
 0x101   : > { %685 = vmatprep.mubr.bf16.mxu0 %v12540_v0  ;;  %v459_v54 = vpack.c.bf16 %v420_v52, %v419_v50  ;;  %v429_v52 = vld [vmem:[%s9516_s2 + $0x1d0] sm:$0xff] }
 0x108   : > { %686 = vmatmul.mubr.bf16.gmra.mrb[36].mxu0 %v444_v57  ;;  %v991_v57 = vunpack.c.l.s4 %v9249_v55 }
 0x109   : > { %695 = vmatprep.mubr.bf16.mxu0 %v12540_v0 }
 0x10a   : > { %v992_v1 = vunpack.c.0.s8 %v991_v57 }
 0x110   : > { %696 = vmatmul.mubr.bf16.gmra.mrb[40].mxu0 %v445_v62  ;;  %v422_v62 = vld [vmem:[%s9516_s2 + $0x198] sm:$0xff] }
 0x111   : > { %705 = vmatprep.mubr.bf16.mxu0 %v12540_v0  ;;  %v460_v63 = vpack.c.bf16 %v422_v62, %v421_v60 }
 0x118   : > { %706 = vmatmul.mubr.bf16.gmra.mrb[44].mxu0 %v446_v3  ;;  %v9684_v3 = vshrl.u32 %v12516_v59, 7 }
 0x119   : > { %715 = vmatprep.mubr.bf16.mxu0 %v12540_v0 }
 0x11a   : > { %v9690_v6 = vsub.s32 %v992_v1, %v9684_v3  ;;  %v9698_v15 = vsub.s32 0, %v9684_v3 }
 0x11c   : > { %12623 = vst [vmem:[#allocation17_spill] sm:$0xff] %v9690_v6  ;;  %v996_v12 = vrot.slane %v8864_v5, %v9690_v6  ;;  %v1003_v13 = vrot.slane %v989_v10, %v9690_v6  ;;  %12624 = vst [vmem:[#allocation18_spill] sm:$0xff] %v9698_v15 }
 0x11e   : > { %v1012_v18 = vpack.i.b16 %v1003_v13, %v1003_v13  ;;  %v432_v13 = vld [vmem:[%s9516_s2 + $0x1e8] sm:$0xff] }
 0x120   : > { %716 = vmatmul.mubr.bf16.gmra.mrb[48].mxu0 %v447_v8  ;;  %v423_v8 = vld [vmem:[%s9516_s2 + $0x1a0] sm:$0xff]  ;;  %v9707_v24 = vrot.slane %v1012_v18, %v9698_v15 }
 0x121   : > { %725 = vmatprep.mubr.bf16.mxu0 %v12540_v0 }
 0x128   : > { %726 = vmatmul.mubr.bf16.gmra.mrb[52].mxu0 %v448_v11  ;;  %v461_v11 = vpack.c.bf16 %v424_v9, %v423_v8 }
 0x129   : > { %735 = vmatprep.mubr.bf16.mxu0 %v12540_v0 }
 0x130   : > { %736 = vmatmul.mubr.bf16.gmra.mrb[56].mxu0 %v449_v14  ;;  %v1005_v14 = vpack.i.b16 %v996_v12, %v996_v12  ;;  %v431_v12 = vld [vmem:[%s9516_s2 + $0x1e0] sm:$0xff] }
 0x131   : > { %745 = vmatprep.mubr.bf16.mxu0 %v12540_v0 }
 0x132   : > { %v9704_v21 = vrot.slane %v1005_v14, %v9698_v15 }
 0x138   : > { %746 = vmatmul.mubr.bf16.gmra.mrb[60].mxu0 %v450_v17  ;;  %v426_v17 = vld [vmem:[%s9516_s2 + $0x1b8] sm:$0xff] }
 0x139   : > { %755 = vmatprep.mubr.bf16.mxu0 %v12540_v0  ;;  %v462_v22 = vpack.c.bf16 %v426_v17, %v425_v16 }
 0x140   : > { %756 = vmatmul.mubr.bf16.gmra.mrb[64].mxu0 %v451_v20 }
 0x141   : > { %765 = vmatprep.mubr.bf16.mxu0 %v12540_v0 }
 0x148   : > { %766 = vmatmul.mubr.bf16.gmra.mrb[68].mxu0 %v452_v23 }
 0x149   : > { %775 = vmatprep.mubr.bf16.mxu0 %v12540_v0 }
 0x150   : > { %776 = vmatmul.mubr.bf16.gmra.mrb[72].mxu0 %v453_v26 }
 0x151   : > { %785 = vmatprep.mubr.bf16.mxu0 %v12540_v0 }
 0x158   : > { %786 = vmatmul.mubr.bf16.gmra.mrb[76].mxu0 %v454_v29 }
 0x159   : > { %795 = vmatprep.mubr.bf16.mxu0 %v12540_v0 }
 0x160   : > { %796 = vmatmul.mubr.bf16.gmra.mrb[80].mxu0 %v455_v34 }
 0x161   : > { %805 = vmatprep.mubr.bf16.mxu0 %v12540_v0 }
 0x168   : > { %806 = vmatmul.mubr.bf16.gmra.mrb[84].mxu0 %v456_v39 }
 0x169   : > { %815 = vmatprep.mubr.bf16.mxu0 %v12540_v0 }
 0x170   : > { %816 = vmatmul.mubr.bf16.gmra.mrb[88].mxu0 %v457_v44 }
 0x171   : > { %825 = vmatprep.mubr.bf16.mxu0 %v12540_v0 }
 0x178   : > { %826 = vmatmul.mubr.bf16.gmra.mrb[92].mxu0 %v458_v49 }
 0x179   : > { %835 = vmatprep.mubr.bf16.mxu0 %v12540_v0 }
 0x180   : > { %836 = vmatmul.mubr.bf16.gmra.mrb[96].mxu0 %v459_v54  ;;  %v430_v54 = vld [vmem:[%s9516_s2 + $0x1d8] sm:$0xff] }
 0x181   : > { %845 = vmatprep.mubr.bf16.mxu0 %v12540_v0 }
 0x188   : > { %846 = vmatmul.mubr.bf16.gmra.mrb[100].mxu0 %v460_v63  ;;  %v464_v63 = vpack.c.bf16 %v430_v54, %v429_v52 }
 0x189   : > { %855 = vmatprep.mubr.bf16.mxu0 %v12540_v0 }
 0x190   : > { %856 = vmatmul.mubr.bf16.gmra.mrb[104].mxu0 %v461_v11 }
 0x191   : > { %865 = vmatprep.mubr.bf16.mxu0 %v12540_v0 }
 0x193   : > { %v597_v19 = vpop.f32.mrb[0].mxu0 }
 0x194   : > { %v599_v20 = vpop.f32.mrb[1].mxu0 }
 0x195   : > { %v601_v23 = vpop.f32.mrb[2].mxu0 }
 0x196   : > { %v916_v25 = vpack.c.bf16 %v601_v23, %v597_v19  ;;  %v603_v26 = vpop.f32.mrb[3].mxu0  ;;  %v465_v19 = vpack.c.bf16 %v432_v13, %v431_v12 }
 0x197   : > { %v917_v27 = vpack.c.bf16 %v603_v26, %v599_v20 }
 0x198   : > { %v1018_v28 = vadd.bf16 %v9704_v21, %v916_v25  ;;  %866 = vmatmul.mubr.bf16.gmra.mrb[108].mxu0 %v462_v22 }
 0x199   : > { %v1019_v29 = vadd.bf16 %v9707_v24, %v917_v27  ;;  %875 = vmatprep.mubr.bf16.mxu0 %v12540_v0 }
 0x19a   : > { %v1082_v39 = vmax.bf16 %v12540_v0, %v1018_v28  ;;  %v433_v28 = vld [vmem:[%s9516_s2 + $0x1f0] sm:$0xff] }
 0x19b   : > { %v607_v34 = vpop.f32.mrb[4].mxu0  ;;  %v1083_v35 = vmax.bf16 %v12540_v0, %v1019_v29  ;;  %v434_v29 = vld [vmem:[%s9516_s2 + $0x1f8] sm:$0xff] }
 0x19c   : > { %v609_v37 = vpop.f32.mrb[5].mxu0 }
 0x19d   : > { %v611_v42 = vpop.f32.mrb[6].mxu0  ;;  %1306 = vmatprep.mubr.bf16.mxu1 %v1083_v35 }
 0x19e   : > { %v918_v44 = vpack.c.bf16 %v611_v42, %v607_v34  ;;  %v613_v45 = vpop.f32.mrb[7].mxu0  ;;  %1307 = vmatmul.mubr.bf16.vlgmr.msra.gmra.mrb[0].mxu1 %v1082_v39 }
 0x19f   : > { %v919_v47 = vpack.c.bf16 %v613_v45, %v609_v37  ;;  %8906 = vmatpush1.bf16.msra.mxu1 %v9555_v31  ;;  %v466_v37 = vpack.c.bf16 %v434_v29, %v433_v28 }
 0x1a0   : > { %v1020_v49 = vadd.bf16 %v9704_v21, %v918_v44  ;;  %876 = vmatmul.mubr.bf16.gmra.mrb[112].mxu0 %v463_v40  ;;  %8891 = vmatprep.subr.bf16.mxu1 %v12540_v0 }
 0x1a1   : > { %v1021_v50 = vadd.bf16 %v9707_v24, %v919_v47  ;;  %885 = vmatprep.mubr.bf16.mxu0 %v12540_v0 }
 0x1a2   : > { %v1084_v62 = vmax.bf16 %v12540_v0, %v1020_v49  ;;  %v1563_v49 = vld [vmem:[%s9523_s11] sm:$0xff] }
 0x1a3   : > { %v617_v55 = vpop.f32.mrb[8].mxu0  ;;  %v1085_v57 = vmax.bf16 %v12540_v0, %v1021_v50  ;;  %8907 = vmatpush1.bf16.msra.mxu1 %v9560_v33  ;;  %v1564_v50 = vld [vmem:[%s9523_s11 + $0x8] sm:$0xff] }
 0x1a4   : > { %v619_v60 = vpop.f32.mrb[9].mxu0  ;;  %8892 = vmatprep.subr.bf16.mxu1 %v12540_v0 }
 0x1a5   : > { %v621_v1 = vpop.f32.mrb[10].mxu0  ;;  %1314 = vmatprep.mubr.bf16.mxu1 %v1085_v57 }
 0x1a6   : > { %v920_v5 = vpack.c.bf16 %v621_v1, %v617_v55  ;;  %v623_v8 = vpop.f32.mrb[11].mxu0  ;;  %1315 = vmatmul.mubr.bf16.gmra.mrb[4].mxu1 %v1084_v62 }
 0x1a7   : > { %v921_v9 = vpack.c.bf16 %v623_v8, %v619_v60  ;;  %8908 = vmatpush1.bf16.msra.mxu1 %v9566_v36  ;;  %v1627_v60 = vpack.c.bf16 %v1564_v50, %v1563_v49 }
 0x1a8   : > { %v1022_v10 = vadd.bf16 %v9704_v21, %v920_v5  ;;  %886 = vmatmul.mubr.bf16.gmra.mrb[116].mxu0 %v464_v63  ;;  %8893 = vmatprep.subr.bf16.mxu1 %v12540_v0 }
 0x1a9   : > { %v1023_v11 = vadd.bf16 %v9707_v24, %v921_v9  ;;  %895 = vmatprep.mubr.bf16.mxu0 %v12540_v0 }
 0x1aa   : > { %v1086_v18 = vmax.bf16 %v12540_v0, %v1022_v10  ;;  %v1565_v10 = vld [vmem:[%s9523_s11 + $0x10] sm:$0xff] }
 0x1ab   : > { %v627_v14 = vpop.f32.mrb[12].mxu0  ;;  %v1087_v16 = vmax.bf16 %v12540_v0, %v1023_v11  ;;  %8909 = vmatpush1.bf16.msra.mxu1 %v9571_v38  ;;  %v1566_v11 = vld [vmem:[%s9523_s11 + $0x18] sm:$0xff] }
 0x1ac   : > { %v629_v17 = vpop.f32.mrb[13].mxu0  ;;  %8894 = vmatprep.subr.bf16.mxu1 %v12540_v0 }
 0x1ad   : > { %v631_v20 = vpop.f32.mrb[14].mxu0  ;;  %1322 = vmatprep.mubr.bf16.mxu1 %v1087_v16 }
 0x1ae   : > { %v922_v22 = vpack.c.bf16 %v631_v20, %v627_v14  ;;  %v633_v23 = vpop.f32.mrb[15].mxu0  ;;  %1323 = vmatmul.mubr.bf16.gmra.mrb[8].mxu1 %v1086_v18 }
 0x1af   : > { %v923_v25 = vpack.c.bf16 %v633_v23, %v629_v17  ;;  %8910 = vmatpush1.bf16.msra.mxu1 %v9577_v41  ;;  %v1628_v17 = vpack.c.bf16 %v1566_v11, %v1565_v10 }
 0x1b0   : > { %v1024_v26 = vadd.bf16 %v9704_v21, %v922_v22  ;;  %896 = vmatmul.mubr.bf16.gmra.mrb[120].mxu0 %v465_v19  ;;  %8895 = vmatprep.subr.bf16.mxu1 %v12540_v0 }
 0x1b1   : > { %v1025_v27 = vadd.bf16 %v9707_v24, %v923_v25  ;;  %905 = vmatprep.mubr.bf16.mxu0 %v12540_v0  ;;  %v1567_v25 = vld [vmem:[%s9523_s11 + $0x20] sm:$0xff] }
 0x1b2   : > { %v1088_v35 = vmax.bf16 %v12540_v0, %v1024_v26  ;;  %v1568_v26 = vld [vmem:[%s9523_s11 + $0x28] sm:$0xff] }
 0x1b3   : > { %v637_v30 = vpop.f32.mrb[16].mxu0  ;;  %v1089_v32 = vmax.bf16 %v12540_v0, %v1025_v27  ;;  %8911 = vmatpush1.bf16.msra.mxu1 %v9582_v43 }
 0x1b4   : > { %v639_v34 = vpop.f32.mrb[17].mxu0  ;;  %8896 = vmatprep.subr.bf16.mxu1 %v12540_v0 }
 0x1b5   : > { %v641_v39 = vpop.f32.mrb[18].mxu0  ;;  %1330 = vmatprep.mubr.bf16.mxu1 %v1089_v32 }
 0x1b6   : > { %v924_v40 = vpack.c.bf16 %v641_v39, %v637_v30  ;;  %v643_v42 = vpop.f32.mrb[19].mxu0  ;;  %1331 = vmatmul.mubr.bf16.gmra.mrb[12].mxu1 %v1088_v35  ;;  %v1629_v30 = vpack.c.bf16 %v1568_v26, %v1567_v25 }
 0x1b7   : > { %v925_v44 = vpack.c.bf16 %v643_v42, %v639_v34  ;;  %8912 = vmatpush1.bf16.msra.mxu1 %v9588_v46  ;;  %v1570_v42 = vld [vmem:[%s9523_s11 + $0x38] sm:$0xff] }
 0x1b8   : > { %v1026_v45 = vadd.bf16 %v9704_v21, %v924_v40  ;;  %906 = vmatmul.mubr.bf16.gmra.mrb[124].mxu0 %v466_v37  ;;  %8897 = vmatprep.subr.bf16.mxu1 %v12540_v0  ;;  %v1569_v40 = vld [vmem:[%s9523_s11 + $0x30] sm:$0xff] }
 0x1b9   : > { %v1027_v47 = vadd.bf16 %v9707_v24, %v925_v44  ;;  %1691 = vmatprep.mubr.bf16.mxu0 %v12540_v0  ;;  %v1630_v49 = vpack.c.bf16 %v1570_v42, %v1569_v40  ;;  %v1577_v40 = vld [vmem:[%s9523_s11 + $0x70] sm:$0xff]  ;;  %v1578_v42 = vld [vmem:[%s9523_s11 + $0x78] sm:$0xff] }
 0x1ba   : > { %v1090_v57 = vmax.bf16 %v12540_v0, %v1026_v45 }
 0x1bb   : > { %v647_v52 = vpop.f32.mrb[20].mxu0  ;;  %v1091_v54 = vmax.bf16 %v12540_v0, %v1027_v47  ;;  %8913 = vmatpush1.bf16.msra.mxu1 %v9593_v48 }
 0x1bc   : > { %v649_v55 = vpop.f32.mrb[21].mxu0  ;;  %8898 = vmatprep.subr.bf16.mxu1 %v12540_v0 }
 0x1bd   : > { %v651_v62 = vpop.f32.mrb[22].mxu0  ;;  %1338 = vmatprep.mubr.bf16.mxu1 %v1091_v54 }
 0x1be   : > { %v926_v63 = vpack.c.bf16 %v651_v62, %v647_v52  ;;  %v653_v1 = vpop.f32.mrb[23].mxu0  ;;  %1339 = vmatmul.mubr.bf16.gmra.mrb[16].mxu1 %v1090_v57  ;;  %v1572_v62 = vld [vmem:[%s9523_s11 + $0x48] sm:$0xff] }
 0x1bf   : > { %v927_v5 = vpack.c.bf16 %v653_v1, %v649_v55  ;;  %8914 = vmatpush1.bf16.msra.mxu1 %v9599_v51 }
 0x1c0   : > { %v1028_v8 = vadd.bf16 %v9704_v21, %v926_v63  ;;  %1692 = vmatmul.mubr.bf16.vlgmr.msra.gmra.mrb[128].mxu0 %v1627_v60  ;;  %8899 = vmatprep.subr.bf16.mxu1 %v12540_v0  ;;  %v1571_v60 = vld [vmem:[%s9523_s11 + $0x40] sm:$0xff] }
 0x1c1   : > { %v1029_v9 = vadd.bf16 %v9707_v24, %v927_v5  ;;  %1701 = vmatprep.mubr.bf16.mxu0 %v12540_v0  ;;  %2205 = vmatpush1.bf16.msra.mxu0 %v9555_v31 }
 0x1c2   : > { %2206 = vmatprep.subr.bf16.mxu0 %v12540_v0  ;;  %v1092_v16 = vmax.bf16 %v12540_v0, %v1028_v8  ;;  %v1631_v8 = vpack.c.bf16 %v1572_v62, %v1571_v60 }
 0x1c3   : > { %v657_v12 = vpop.f32.mrb[24].mxu0  ;;  %v1093_v13 = vmax.bf16 %v12540_v0, %v1029_v9  ;;  %8915 = vmatpush1.bf16.msra.mxu1 %v9604_v53 }
 0x1c4   : > { %v659_v14 = vpop.f32.mrb[25].mxu0  ;;  %8900 = vmatprep.subr.bf16.mxu1 %v12540_v0 }
 0x1c5   : > { %v661_v18 = vpop.f32.mrb[26].mxu0  ;;  %1346 = vmatprep.mubr.bf16.mxu1 %v1093_v13  ;;  %2207 = vmatpush1.bf16.msra.mxu0 %v9560_v33 }
 0x1c6   : > { %v928_v31 = vpack.c.bf16 %v661_v18, %v657_v12  ;;  %v663_v19 = vpop.f32.mrb[27].mxu0  ;;  %1347 = vmatmul.mubr.bf16.gmra.mrb[20].mxu1 %v1092_v16  ;;  %2208 = vmatprep.subr.bf16.mxu0 %v12540_v0  ;;  %v1574_v16 = vld [vmem:[%s9523_s11 + $0x58] sm:$0xff] }
 0x1c7   : > { %v929_v20 = vpack.c.bf16 %v663_v19, %v659_v14  ;;  %8916 = vmatpush1.bf16.msra.mxu1 %v9610_v56  ;;  %v1573_v14 = vld [vmem:[%s9523_s11 + $0x50] sm:$0xff] }
 0x1c8   : > { %v1030_v22 = vadd.bf16 %v9704_v21, %v928_v31  ;;  %1702 = vmatmul.mubr.bf16.gmra.mrb[132].mxu0 %v1628_v17  ;;  %8901 = vmatprep.subr.bf16.mxu1 %v12540_v0  ;;  %v1632_v19 = vpack.c.bf16 %v1574_v16, %v1573_v14 }
 0x1c9   : > { %v1031_v23 = vadd.bf16 %v9707_v24, %v929_v20  ;;  %1711 = vmatprep.mubr.bf16.mxu0 %v12540_v0  ;;  %2209 = vmatpush1.bf16.msra.mxu0 %v9566_v36 }
 0x1ca   : > { %2210 = vmatprep.subr.bf16.mxu0 %v12540_v0  ;;  %v1094_v29 = vmax.bf16 %v12540_v0, %v1030_v22 }
 0x1cb   : > { %v667_v33 = vpop.f32.mrb[28].mxu0  ;;  %v1095_v27 = vmax.bf16 %v12540_v0, %v1031_v23  ;;  %8917 = vmatpush1.bf16.msra.mxu1 %v9615_v58 }
 0x1cc   : > { %v669_v28 = vpop.f32.mrb[29].mxu0  ;;  %8902 = vmatprep.subr.bf16.mxu1 %v12540_v0 }
 0x1cd   : > { %v671_v32 = vpop.f32.mrb[30].mxu0  ;;  %1354 = vmatprep.mubr.bf16.mxu1 %v1095_v27  ;;  %2211 = vmatpush1.bf16.msra.mxu0 %v9571_v38  ;;  %v1576_v27 = vld [vmem:[%s9523_s11 + $0x68] sm:$0xff] }
 0x1ce   : > { %v930_v36 = vpack.c.bf16 %v671_v32, %v667_v33  ;;  %v673_v34 = vpop.f32.mrb[31].mxu0  ;;  %1355 = vmatmul.mubr.bf16.gmra.mrb[24].mxu1 %v1094_v29  ;;  %2212 = vmatprep.subr.bf16.mxu0 %v12540_v0  ;;  %v1575_v33 = vld [vmem:[%s9523_s11 + $0x60] sm:$0xff] }
 0x1cf   : > { %v931_v35 = vpack.c.bf16 %v673_v34, %v669_v28  ;;  %8918 = vmatpush1.bf16.msra.mxu1 %v9621_v61  ;;  %v1633_v32 = vpack.c.bf16 %v1576_v27, %v1575_v33 }
 0x1d0   : > { %v1032_v37 = vadd.bf16 %v9704_v21, %v930_v36  ;;  %1712 = vmatmul.mubr.bf16.gmra.mrb[136].mxu0 %v1629_v30  ;;  %8903 = vmatprep.subr.bf16.mxu1 %v12540_v0 }
 0x1d1   : > { %v1033_v39 = vadd.bf16 %v9707_v24, %v931_v35  ;;  %1721 = vmatprep.mubr.bf16.mxu0 %v12540_v0  ;;  %2213 = vmatpush1.bf16.msra.mxu0 %v9577_v41 }
 0x1d2   : > { %2214 = vmatprep.subr.bf16.mxu0 %v12540_v0  ;;  %v1096_v47 = vmax.bf16 %v12540_v0, %v1032_v37 }
 0x1d3   : > { %v677_v38 = vpop.f32.mrb[32].mxu0  ;;  %v1097_v44 = vmax.bf16 %v12540_v0, %v1033_v39  ;;  %8919 = vmatpush1.bf16.msra.mxu1 %v9629_v2 }
 0x1d4   : > { %v679_v45 = vpop.f32.mrb[33].mxu0  ;;  %8904 = vmatprep.subr.bf16.mxu1 %v12540_v0 }
 0x1d5   : > { %v681_v50 = vpop.f32.mrb[34].mxu0  ;;  %1362 = vmatprep.mubr.bf16.mxu1 %v1097_v44  ;;  %2215 = vmatpush1.bf16.msra.mxu0 %v9582_v43 }
 0x1d6   : > { %v932_v41 = vpack.c.bf16 %v681_v50, %v677_v38  ;;  %v683_v52 = vpop.f32.mrb[35].mxu0  ;;  %1363 = vmatmul.mubr.bf16.gmra.mrb[28].mxu1 %v1096_v47  ;;  %2216 = vmatprep.subr.bf16.mxu0 %v12540_v0  ;;  %v1634_v47 = vpack.c.bf16 %v1578_v42, %v1577_v40 }
 0x1d7   : > { %v933_v54 = vpack.c.bf16 %v683_v52, %v679_v45  ;;  %8920 = vmatpush1.bf16.msra.mxu1 %v9633_v4 }
 0x1d8   : > { %v1034_v55 = vadd.bf16 %v9704_v21, %v932_v41  ;;  %1722 = vmatmul.mubr.bf16.gmra.mrb[140].mxu0 %v1630_v49  ;;  %8905 = vmatprep.subr.bf16.mxu1 %v12540_v0 }
 0x1d9   : > { %v1035_v57 = vadd.bf16 %v9707_v24, %v933_v54  ;;  %1731 = vmatprep.mubr.bf16.mxu0 %v12540_v0  ;;  %2217 = vmatpush1.bf16.msra.mxu0 %v9588_v46 }
 0x1da   : > { %2218 = vmatprep.subr.bf16.mxu0 %v12540_v0  ;;  %v1098_v5 = vmax.bf16 %v12540_v0, %v1034_v55  ;;  %v1579_v55 = vld [vmem:[%s9523_s11 + $0x80] sm:$0xff] }
 0x1db   : > { %v687_v43 = vpop.f32.mrb[36].mxu0  ;;  %v1099_v63 = vmax.bf16 %v12540_v0, %v1035_v57  ;;  %8921 = vmatpush1.bf16.msra.mxu1 %v9640_v7  ;;  %v1580_v57 = vld [vmem:[%s9523_s11 + $0x88] sm:$0xff] }
 0x1dc   : > { %v689_v1 = vpop.f32.mrb[37].mxu0 }
 0x1dd   : > { %v691_v9 = vpop.f32.mrb[38].mxu0  ;;  %1370 = vmatprep.mubr.bf16.mxu1 %v1099_v63  ;;  %2219 = vmatpush1.bf16.msra.mxu0 %v9593_v48  ;;  %v1635_v63 = vpack.c.bf16 %v1580_v57, %v1579_v55 }
 0x1de   : > { %v934_v10 = vpack.c.bf16 %v691_v9, %v687_v43  ;;  %v693_v11 = vpop.f32.mrb[39].mxu0  ;;  %1371 = vmatmul.mubr.bf16.gmra.mrb[32].mxu1 %v1098_v5  ;;  %2220 = vmatprep.subr.bf16.mxu0 %v12540_v0 }
 0x1df   : > { %v935_v46 = vpack.c.bf16 %v693_v11, %v689_v1  ;;  %v1581_v11 = vld [vmem:[%s9523_s11 + $0x90] sm:$0xff] }
 0x1e0   : > { %v1036_v12 = vadd.bf16 %v9704_v21, %v934_v10  ;;  %1732 = vmatmul.mubr.bf16.gmra.mrb[144].mxu0 %v1631_v8 }
 0x1e1   : > { %v1037_v13 = vadd.bf16 %v9707_v24, %v935_v46  ;;  %1741 = vmatprep.mubr.bf16.mxu0 %v12540_v0  ;;  %2221 = vmatpush1.bf16.msra.mxu0 %v9599_v51  ;;  %v1582_v46 = vld [vmem:[%s9523_s11 + $0x98] sm:$0xff] }
 0x1e2   : > { %2222 = vmatprep.subr.bf16.mxu0 %v12540_v0  ;;  %v1100_v31 = vmax.bf16 %v12540_v0, %v1036_v12  ;;  %v1636_v16 = vpack.c.bf16 %v1582_v46, %v1581_v11 }
 0x1e3   : > { %v697_v48 = vpop.f32.mrb[40].mxu0  ;;  %v1101_v17 = vmax.bf16 %v12540_v0, %v1037_v13 }
 0x1e4   : > { %v699_v18 = vpop.f32.mrb[41].mxu0 }
 0x1e5   : > { %v701_v20 = vpop.f32.mrb[42].mxu0  ;;  %1378 = vmatprep.mubr.bf16.mxu1 %v1101_v17  ;;  %2223 = vmatpush1.bf16.msra.mxu0 %v9604_v53 }
 0x1e6   : > { %v936_v22 = vpack.c.bf16 %v701_v20, %v697_v48  ;;  %v703_v23 = vpop.f32.mrb[43].mxu0  ;;  %1379 = vmatmul.mubr.bf16.gmra.mrb[36].mxu1 %v1100_v31  ;;  %2224 = vmatprep.subr.bf16.mxu0 %v12540_v0 }
 0x1e7   : > { %v937_v51 = vpack.c.bf16 %v703_v23, %v699_v18  ;;  %v1584_v23 = vld [vmem:[%s9523_s11 + $0xa8] sm:$0xff] }
 0x1e8   : > { %v1038_v25 = vadd.bf16 %v9704_v21, %v936_v22  ;;  %1742 = vmatmul.mubr.bf16.gmra.mrb[148].mxu0 %v1632_v19  ;;  %v1583_v22 = vld [vmem:[%s9523_s11 + $0xa0] sm:$0xff] }
 0x1e9   : > { %v1039_v26 = vadd.bf16 %v9707_v24, %v937_v51  ;;  %1751 = vmatprep.mubr.bf16.mxu0 %v12540_v0  ;;  %2225 = vmatpush1.bf16.msra.mxu0 %v9610_v56  ;;  %v1637_v27 = vpack.c.bf16 %v1584_v23, %v1583_v22 }
 0x1ea   : > { %2226 = vmatprep.subr.bf16.mxu0 %v12540_v0  ;;  %v1102_v30 = vmax.bf16 %v12540_v0, %v1038_v25 }
 0x1eb   : > { %v707_v53 = vpop.f32.mrb[44].mxu0  ;;  %v1103_v28 = vmax.bf16 %v12540_v0, %v1039_v26 }
 0x1ec   : > { %v709_v29 = vpop.f32.mrb[45].mxu0 }
 0x1ed   : > { %v711_v36 = vpop.f32.mrb[46].mxu0  ;;  %1386 = vmatprep.mubr.bf16.mxu1 %v1103_v28  ;;  %2227 = vmatpush1.bf16.msra.mxu0 %v9615_v58 }
 0x1ee   : > { %v938_v34 = vpack.c.bf16 %v711_v36, %v707_v53  ;;  %v713_v35 = vpop.f32.mrb[47].mxu0  ;;  %1387 = vmatmul.mubr.bf16.gmra.mrb[40].mxu1 %v1102_v30  ;;  %2228 = vmatprep.subr.bf16.mxu0 %v12540_v0 }
 0x1ef   : > { %v939_v56 = vpack.c.bf16 %v713_v35, %v709_v29  ;;  %v1586_v35 = vld [vmem:[%s9523_s11 + $0xb8] sm:$0xff] }
 0x1f0   : > { %v1040_v37 = vadd.bf16 %v9704_v21, %v938_v34  ;;  %1752 = vmatmul.mubr.bf16.gmra.mrb[152].mxu0 %v1633_v32  ;;  %v1585_v34 = vld [vmem:[%s9523_s11 + $0xb0] sm:$0xff] }
 0x1f1   : > { %v1041_v39 = vadd.bf16 %v9707_v24, %v939_v56  ;;  %1761 = vmatprep.mubr.bf16.mxu0 %v12540_v0  ;;  %2229 = vmatpush1.bf16.msra.mxu0 %v9621_v61  ;;  %v1638_v42 = vpack.c.bf16 %v1586_v35, %v1585_v34 }
 0x1f2   : > { %2230 = vmatprep.subr.bf16.mxu0 %v12540_v0  ;;  %v1104_v45 = vmax.bf16 %v12540_v0, %v1040_v37 }
 0x1f3   : > { %v717_v58 = vpop.f32.mrb[48].mxu0  ;;  %v1105_v38 = vmax.bf16 %v12540_v0, %v1041_v39 }
 0x1f4   : > { %v719_v44 = vpop.f32.mrb[49].mxu0 }
 0x1f5   : > { %v721_v49 = vpop.f32.mrb[50].mxu0  ;;  %1394 = vmatprep.mubr.bf16.mxu1 %v1105_v38  ;;  %2231 = vmatpush1.bf16.msra.mxu0 %v9629_v2 }
 0x1f6   : > { %v940_v50 = vpack.c.bf16 %v721_v49, %v717_v58  ;;  %v723_v41 = vpop.f32.mrb[51].mxu0  ;;  %1395 = vmatmul.mubr.bf16.gmra.mrb[44].mxu1 %v1104_v45  ;;  %2232 = vmatprep.subr.bf16.mxu0 %v12540_v0 }
 0x1f7   : > { %v941_v61 = vpack.c.bf16 %v723_v41, %v719_v44  ;;  %v1588_v41 = vld [vmem:[%s9523_s11 + $0xc8] sm:$0xff] }
 0x1f8   : > { %v1042_v52 = vadd.bf16 %v9704_v21, %v940_v50  ;;  %1762 = vmatmul.mubr.bf16.gmra.mrb[156].mxu0 %v1634_v47  ;;  %v1587_v50 = vld [vmem:[%s9523_s11 + $0xc0] sm:$0xff] }
 0x1f9   : > { %v1043_v54 = vadd.bf16 %v9707_v24, %v941_v61  ;;  %1771 = vmatprep.mubr.bf16.mxu0 %v12540_v0  ;;  %2233 = vmatpush1.bf16.msra.mxu0 %v9633_v4  ;;  %v1639_v57 = vpack.c.bf16 %v1588_v41, %v1587_v50 }
 0x1fa   : > { %2234 = vmatprep.subr.bf16.mxu0 %v12540_v0  ;;  %v1106_v43 = vmax.bf16 %v12540_v0, %v1042_v52 }
 0x1fb   : > { %v727_v2 = vpop.f32.mrb[52].mxu0  ;;  %v1107_v60 = vmax.bf16 %v12540_v0, %v1043_v54 }
 0x1fc   : > { %v729_v62 = vpop.f32.mrb[53].mxu0 }
 0x1fd   : > { %v731_v1 = vpop.f32.mrb[54].mxu0  ;;  %1402 = vmatprep.mubr.bf16.mxu1 %v1107_v60  ;;  %2235 = vmatpush1.bf16.msra.mxu0 %v9640_v7 }
 0x1fe   : > { %v942_v5 = vpack.c.bf16 %v731_v1, %v727_v2  ;;  %v733_v8 = vpop.f32.mrb[55].mxu0  ;;  %1403 = vmatmul.mubr.bf16.gmra.mrb[48].mxu1 %v1106_v43 }
 0x1ff   : > { %v943_v9 = vpack.c.bf16 %v733_v8, %v729_v62  ;;  %v1590_v8 = vld [vmem:[%s9523_s11 + $0xd8] sm:$0xff] }
 0x200   : > { %v1044_v4 = vadd.bf16 %v9704_v21, %v942_v5  ;;  %1772 = vmatmul.mubr.bf16.gmra.mrb[160].mxu0 %v1635_v63  ;;  %v1589_v5 = vld [vmem:[%s9523_s11 + $0xd0] sm:$0xff] }
 0x201   : > { %v1045_v10 = vadd.bf16 %v9707_v24, %v943_v9  ;;  %1781 = vmatprep.mubr.bf16.mxu0 %v12540_v0  ;;  %v1640_v46 = vpack.c.bf16 %v1590_v8, %v1589_v5 }
 0x202   : > { %v1108_v7 = vmax.bf16 %v12540_v0, %v1044_v4 }
 0x203   : > { %v737_v12 = vpop.f32.mrb[56].mxu0  ;;  %v1109_v13 = vmax.bf16 %v12540_v0, %v1045_v10 }
 0x204   : > { %v739_v14 = vpop.f32.mrb[57].mxu0 }
 0x205   : > { %v741_v48 = vpop.f32.mrb[58].mxu0  ;;  %1410 = vmatprep.mubr.bf16.mxu1 %v1109_v13 }
 0x206   : > { %v944_v17 = vpack.c.bf16 %v741_v48, %v737_v12  ;;  %v743_v18 = vpop.f32.mrb[59].mxu0  ;;  %1411 = vmatmul.mubr.bf16.gmra.mrb[52].mxu1 %v1108_v7 }
 0x207   : > { %v945_v31 = vpack.c.bf16 %v743_v18, %v739_v14  ;;  %v1592_v18 = vld [vmem:[%s9523_s11 + $0xe8] sm:$0xff] }
 0x208   : > { %v1046_v19 = vadd.bf16 %v9704_v21, %v944_v17  ;;  %1782 = vmatmul.mubr.bf16.gmra.mrb[164].mxu0 %v1636_v16  ;;  %v1591_v17 = vld [vmem:[%s9523_s11 + $0xe0] sm:$0xff] }
 0x209   : > { %v1047_v20 = vadd.bf16 %v9707_v24, %v945_v31  ;;  %1791 = vmatprep.mubr.bf16.mxu0 %v12540_v0  ;;  %v1641_v23 = vpack.c.bf16 %v1592_v18, %v1591_v17 }
 0x20a   : > { %v1110_v33 = vmax.bf16 %v12540_v0, %v1046_v19 }
 0x20b   : > { %v747_v51 = vpop.f32.mrb[60].mxu0  ;;  %v1111_v25 = vmax.bf16 %v12540_v0, %v1047_v20 }
 0x20c   : > { %v749_v26 = vpop.f32.mrb[61].mxu0 }
 0x20d   : > { %v751_v53 = vpop.f32.mrb[62].mxu0  ;;  %1418 = vmatprep.mubr.bf16.mxu1 %v1111_v25 }
 0x20e   : > { %v946_v28 = vpack.c.bf16 %v751_v53, %v747_v51  ;;  %v753_v29 = vpop.f32.mrb[63].mxu0  ;;  %1419 = vmatmul.mubr.bf16.gmra.mrb[56].mxu1 %v1110_v33 }
 0x20f   : > { %v947_v30 = vpack.c.bf16 %v753_v29, %v749_v26  ;;  %v1594_v29 = vld [vmem:[%s9523_s11 + $0xf8] sm:$0xff] }
 0x210   : > { %v1048_v32 = vadd.bf16 %v9704_v21, %v946_v28  ;;  %1792 = vmatmul.mubr.bf16.gmra.mrb[168].mxu0 %v1637_v27  ;;  %v1593_v28 = vld [vmem:[%s9523_s11 + $0xf0] sm:$0xff] }
 0x211   : > { %v1049_v36 = vadd.bf16 %v9707_v24, %v947_v30  ;;  %1801 = vmatprep.mubr.bf16.mxu0 %v12540_v0  ;;  %v1642_v35 = vpack.c.bf16 %v1594_v29, %v1593_v28 }
 0x212   : > { %v1112_v40 = vmax.bf16 %v12540_v0, %v1048_v32 }
 0x213   : > { %v757_v56 = vpop.f32.mrb[64].mxu0  ;;  %v1113_v37 = vmax.bf16 %v12540_v0, %v1049_v36 }
 0x214   : > { %v759_v39 = vpop.f32.mrb[65].mxu0 }
 0x215   : > { %v761_v58 = vpop.f32.mrb[66].mxu0  ;;  %1426 = vmatprep.mubr.bf16.mxu1 %v1113_v37 }
 0x216   : > { %v948_v38 = vpack.c.bf16 %v761_v58, %v757_v56  ;;  %v763_v44 = vpop.f32.mrb[67].mxu0  ;;  %1427 = vmatmul.mubr.bf16.gmra.mrb[60].mxu1 %v1112_v40 }
 0x217   : > { %v949_v45 = vpack.c.bf16 %v763_v44, %v759_v39  ;;  %v1596_v44 = vld [vmem:[%s9523_s11 + $0x108] sm:$0xff] }
 0x218   : > { %v1050_v47 = vadd.bf16 %v9704_v21, %v948_v38  ;;  %1802 = vmatmul.mubr.bf16.gmra.mrb[172].mxu0 %v1638_v42  ;;  %v1595_v38 = vld [vmem:[%s9523_s11 + $0x100] sm:$0xff] }
 0x219   : > { %v1051_v49 = vadd.bf16 %v9707_v24, %v949_v45  ;;  %1811 = vmatprep.mubr.bf16.mxu0 %v12540_v0  ;;  %v1643_v41 = vpack.c.bf16 %v1596_v44, %v1595_v38 }
 0x21a   : > { %v1114_v55 = vmax.bf16 %v12540_v0, %v1050_v47 }
 0x21b   : > { %v767_v61 = vpop.f32.mrb[68].mxu0  ;;  %v1115_v52 = vmax.bf16 %v12540_v0, %v1051_v49 }
 0x21c   : > { %v769_v54 = vpop.f32.mrb[69].mxu0 }
 0x21d   : > { %v771_v2 = vpop.f32.mrb[70].mxu0  ;;  %1434 = vmatprep.mubr.bf16.mxu1 %v1115_v52 }
 0x21e   : > { %v950_v60 = vpack.c.bf16 %v771_v2, %v767_v61  ;;  %v773_v62 = vpop.f32.mrb[71].mxu0  ;;  %1435 = vmatmul.mubr.bf16.gmra.mrb[64].mxu1 %v1114_v55 }
 0x21f   : > { %v951_v43 = vpack.c.bf16 %v773_v62, %v769_v54  ;;  %v1598_v62 = vld [vmem:[%s9523_s11 + $0x118] sm:$0xff] }
 0x220   : > { %v1052_v63 = vadd.bf16 %v9704_v21, %v950_v60  ;;  %1812 = vmatmul.mubr.bf16.gmra.mrb[176].mxu0 %v1639_v57  ;;  %v1597_v60 = vld [vmem:[%s9523_s11 + $0x110] sm:$0xff] }
 0x221   : > { %v1053_v1 = vadd.bf16 %v9707_v24, %v951_v43  ;;  %1821 = vmatprep.mubr.bf16.mxu0 %v12540_v0  ;;  %v1644_v8 = vpack.c.bf16 %v1598_v62, %v1597_v60 }
 0x222   : > { %v1116_v11 = vmax.bf16 %v12540_v0, %v1052_v63 }
 0x223   : > { %v777_v9 = vpop.f32.mrb[72].mxu0  ;;  %v1117_v4 = vmax.bf16 %v12540_v0, %v1053_v1 }
 0x224   : > { %v779_v10 = vpop.f32.mrb[73].mxu0 }
 0x225   : > { %v781_v12 = vpop.f32.mrb[74].mxu0  ;;  %1442 = vmatprep.mubr.bf16.mxu1 %v1117_v4 }
 0x226   : > { %v952_v13 = vpack.c.bf16 %v781_v12, %v777_v9  ;;  %v783_v14 = vpop.f32.mrb[75].mxu0  ;;  %1443 = vmatmul.mubr.bf16.gmra.mrb[68].mxu1 %v1116_v11 }
 0x227   : > { %v953_v7 = vpack.c.bf16 %v783_v14, %v779_v10  ;;  %v1600_v14 = vld [vmem:[%s9523_s11 + $0x128] sm:$0xff] }
 0x228   : > { %v1054_v16 = vadd.bf16 %v9704_v21, %v952_v13  ;;  %1822 = vmatmul.mubr.bf16.gmra.mrb[180].mxu0 %v1640_v46  ;;  %v1599_v13 = vld [vmem:[%s9523_s11 + $0x120] sm:$0xff] }
 0x229   : > { %v1055_v48 = vadd.bf16 %v9707_v24, %v953_v7  ;;  %1831 = vmatprep.mubr.bf16.mxu0 %v12540_v0  ;;  %v1645_v18 = vpack.c.bf16 %v1600_v14, %v1599_v13 }
 0x22a   : > { %v1118_v22 = vmax.bf16 %v12540_v0, %v1054_v16 }
 0x22b   : > { %v787_v31 = vpop.f32.mrb[76].mxu0  ;;  %v1119_v19 = vmax.bf16 %v12540_v0, %v1055_v48 }
 0x22c   : > { %v789_v20 = vpop.f32.mrb[77].mxu0 }
 0x22d   : > { %v791_v51 = vpop.f32.mrb[78].mxu0  ;;  %1450 = vmatprep.mubr.bf16.mxu1 %v1119_v19 }
 0x22e   : > { %v954_v25 = vpack.c.bf16 %v791_v51, %v787_v31  ;;  %v793_v26 = vpop.f32.mrb[79].mxu0  ;;  %1451 = vmatmul.mubr.bf16.gmra.mrb[72].mxu1 %v1118_v22 }
 0x22f   : > { %v955_v33 = vpack.c.bf16 %v793_v26, %v789_v20  ;;  %v1602_v26 = vld [vmem:[%s9523_s11 + $0x138] sm:$0xff] }
 0x230   : > { %v1056_v27 = vadd.bf16 %v9704_v21, %v954_v25  ;;  %1832 = vmatmul.mubr.bf16.gmra.mrb[184].mxu0 %v1641_v23  ;;  %v1601_v25 = vld [vmem:[%s9523_s11 + $0x130] sm:$0xff] }
 0x231   : > { %v1057_v53 = vadd.bf16 %v9707_v24, %v955_v33  ;;  %1841 = vmatprep.mubr.bf16.mxu0 %v12540_v0  ;;  %v1646_v29 = vpack.c.bf16 %v1602_v26, %v1601_v25 }
 0x232   : > { %v1120_v34 = vmax.bf16 %v12540_v0, %v1056_v27 }
 0x233   : > { %v797_v30 = vpop.f32.mrb[80].mxu0  ;;  %v1121_v32 = vmax.bf16 %v12540_v0, %v1057_v53 }
 0x234   : > { %v799_v36 = vpop.f32.mrb[81].mxu0 }
 0x235   : > { %v801_v56 = vpop.f32.mrb[82].mxu0  ;;  %1458 = vmatprep.mubr.bf16.mxu1 %v1121_v32 }
 0x236   : > { %v956_v37 = vpack.c.bf16 %v801_v56, %v797_v30  ;;  %v803_v39 = vpop.f32.mrb[83].mxu0  ;;  %1459 = vmatmul.mubr.bf16.gmra.mrb[76].mxu1 %v1120_v34 }
 0x237   : > { %v957_v40 = vpack.c.bf16 %v803_v39, %v799_v36  ;;  %v1604_v39 = vld [vmem:[%s9523_s11 + $0x148] sm:$0xff] }
 0x238   : > { %v1058_v42 = vadd.bf16 %v9704_v21, %v956_v37  ;;  %1842 = vmatmul.mubr.bf16.gmra.mrb[188].mxu0 %v1642_v35  ;;  %v1603_v37 = vld [vmem:[%s9523_s11 + $0x140] sm:$0xff] }
 0x239   : > { %v1059_v58 = vadd.bf16 %v9707_v24, %v957_v40  ;;  %1851 = vmatprep.mubr.bf16.mxu0 %v12540_v0  ;;  %v1647_v44 = vpack.c.bf16 %v1604_v39, %v1603_v37  ;;  %v1611_v37 = vld [vmem:[%s9523_s11 + $0x180] sm:$0xff]  ;;  %v1612_v39 = vld [vmem:[%s9523_s11 + $0x188] sm:$0xff] }
 0x23a   : > { %v1122_v50 = vmax.bf16 %v12540_v0, %v1058_v42 }
 0x23b   : > { %v807_v45 = vpop.f32.mrb[84].mxu0  ;;  %v1123_v47 = vmax.bf16 %v12540_v0, %v1059_v58 }
 0x23c   : > { %v809_v49 = vpop.f32.mrb[85].mxu0 }
 0x23d   : > { %v811_v61 = vpop.f32.mrb[86].mxu0  ;;  %1466 = vmatprep.mubr.bf16.mxu1 %v1123_v47 }
 0x23e   : > { %v958_v52 = vpack.c.bf16 %v811_v61, %v807_v45  ;;  %v813_v54 = vpop.f32.mrb[87].mxu0  ;;  %1467 = vmatmul.mubr.bf16.gmra.mrb[80].mxu1 %v1122_v50 }
 0x23f   : > { %v959_v55 = vpack.c.bf16 %v813_v54, %v809_v49  ;;  %v1606_v54 = vld [vmem:[%s9523_s11 + $0x158] sm:$0xff] }
 0x240   : > { %v1060_v57 = vadd.bf16 %v9704_v21, %v958_v52  ;;  %1852 = vmatmul.mubr.bf16.gmra.mrb[192].mxu0 %v1643_v41  ;;  %v1605_v52 = vld [vmem:[%s9523_s11 + $0x150] sm:$0xff] }
 0x241   : > { %v1061_v2 = vadd.bf16 %v9707_v24, %v959_v55  ;;  %1861 = vmatprep.mubr.bf16.mxu0 %v12540_v0  ;;  %v1648_v62 = vpack.c.bf16 %v1606_v54, %v1605_v52 }
 0x242   : > { %v1124_v5 = vmax.bf16 %v12540_v0, %v1060_v57 }
 0x243   : > { %v817_v43 = vpop.f32.mrb[88].mxu0  ;;  %v1125_v63 = vmax.bf16 %v12540_v0, %v1061_v2 }
 0x244   : > { %v819_v1 = vpop.f32.mrb[89].mxu0 }
 0x245   : > { %v821_v9 = vpop.f32.mrb[90].mxu0  ;;  %1474 = vmatprep.mubr.bf16.mxu1 %v1125_v63 }
 0x246   : > { %v960_v4 = vpack.c.bf16 %v821_v9, %v817_v43  ;;  %v823_v10 = vpop.f32.mrb[91].mxu0  ;;  %1475 = vmatmul.mubr.bf16.gmra.mrb[84].mxu1 %v1124_v5 }
 0x247   : > { %v961_v11 = vpack.c.bf16 %v823_v10, %v819_v1  ;;  %v1608_v10 = vld [vmem:[%s9523_s11 + $0x168] sm:$0xff] }
 0x248   : > { %v1062_v46 = vadd.bf16 %v9704_v21, %v960_v4  ;;  %1862 = vmatmul.mubr.bf16.gmra.mrb[196].mxu0 %v1644_v8  ;;  %v1607_v4 = vld [vmem:[%s9523_s11 + $0x160] sm:$0xff] }
 0x249   : > { %v1063_v12 = vadd.bf16 %v9707_v24, %v961_v11  ;;  %1871 = vmatprep.mubr.bf16.mxu0 %v12540_v0  ;;  %v1649_v14 = vpack.c.bf16 %v1608_v10, %v1607_v4 }
 0x24a   : > { %v1126_v17 = vmax.bf16 %v12540_v0, %v1062_v46 }
 0x24b   : > { %v827_v7 = vpop.f32.mrb[92].mxu0  ;;  %v1127_v16 = vmax.bf16 %v12540_v0, %v1063_v12 }
 0x24c   : > { %v829_v48 = vpop.f32.mrb[93].mxu0 }
 0x24d   : > { %v831_v31 = vpop.f32.mrb[94].mxu0  ;;  %1482 = vmatprep.mubr.bf16.mxu1 %v1127_v16 }
 0x24e   : > { %v962_v19 = vpack.c.bf16 %v831_v31, %v827_v7  ;;  %v833_v20 = vpop.f32.mrb[95].mxu0  ;;  %1483 = vmatmul.mubr.bf16.gmra.mrb[88].mxu1 %v1126_v17 }
 0x24f   : > { %v963_v22 = vpack.c.bf16 %v833_v20, %v829_v48  ;;  %v1609_v20 = vld [vmem:[%s9523_s11 + $0x170] sm:$0xff] }
 0x250   : > { %v1064_v23 = vadd.bf16 %v9704_v21, %v962_v19  ;;  %1872 = vmatmul.mubr.bf16.gmra.mrb[200].mxu0 %v1645_v18 }
 0x251   : > { %v1065_v51 = vadd.bf16 %v9707_v24, %v963_v22  ;;  %1881 = vmatprep.mubr.bf16.mxu0 %v12540_v0  ;;  %v1610_v22 = vld [vmem:[%s9523_s11 + $0x178] sm:$0xff] }
 0x252   : > { %v1128_v28 = vmax.bf16 %v12540_v0, %v1064_v23 }
 0x253   : > { %v837_v33 = vpop.f32.mrb[96].mxu0  ;;  %v1129_v27 = vmax.bf16 %v12540_v0, %v1065_v51 }
 0x254   : > { %v839_v53 = vpop.f32.mrb[97].mxu0 }
 0x255   : > { %v841_v30 = vpop.f32.mrb[98].mxu0  ;;  %1490 = vmatprep.mubr.bf16.mxu1 %v1129_v27 }
 0x256   : > { %v964_v32 = vpack.c.bf16 %v841_v30, %v837_v33  ;;  %v843_v36 = vpop.f32.mrb[99].mxu0  ;;  %1491 = vmatmul.mubr.bf16.gmra.mrb[92].mxu1 %v1128_v28  ;;  %v1650_v28 = vpack.c.bf16 %v1610_v22, %v1609_v20 }
 0x257   : > { %v965_v34 = vpack.c.bf16 %v843_v36, %v839_v53 }
 0x258   : > { %v1066_v35 = vadd.bf16 %v9704_v21, %v964_v32  ;;  %1882 = vmatmul.mubr.bf16.gmra.mrb[204].mxu0 %v1646_v29 }
 0x259   : > { %v1067_v56 = vadd.bf16 %v9707_v24, %v965_v34  ;;  %1891 = vmatprep.mubr.bf16.mxu0 %v12540_v0 }
 0x25a   : > { %v1130_v38 = vmax.bf16 %v12540_v0, %v1066_v35 }
 0x25b   : > { %v847_v40 = vpop.f32.mrb[100].mxu0  ;;  %v1131_v42 = vmax.bf16 %v12540_v0, %v1067_v56 }
 0x25c   : > { %v849_v58 = vpop.f32.mrb[101].mxu0 }
 0x25d   : > { %v851_v45 = vpop.f32.mrb[102].mxu0  ;;  %1498 = vmatprep.mubr.bf16.mxu1 %v1131_v42 }
 0x25e   : > { %v966_v47 = vpack.c.bf16 %v851_v45, %v847_v40  ;;  %v853_v49 = vpop.f32.mrb[103].mxu0  ;;  %1499 = vmatmul.mubr.bf16.gmra.mrb[96].mxu1 %v1130_v38 }
 0x25f   : > { %v967_v50 = vpack.c.bf16 %v853_v49, %v849_v58  ;;  %v1651_v49 = vpack.c.bf16 %v1612_v39, %v1611_v37 }
 0x260   : > { %v1068_v41 = vadd.bf16 %v9704_v21, %v966_v47  ;;  %1892 = vmatmul.mubr.bf16.gmra.mrb[208].mxu0 %v1647_v44 }
 0x261   : > { %v1069_v61 = vadd.bf16 %v9707_v24, %v967_v50  ;;  %1901 = vmatprep.mubr.bf16.mxu0 %v12540_v0 }
 0x262   : > { %v1132_v60 = vmax.bf16 %v12540_v0, %v1068_v41 }
 0x263   : > { %v857_v55 = vpop.f32.mrb[104].mxu0  ;;  %v1133_v57 = vmax.bf16 %v12540_v0, %v1069_v61 }
 0x264   : > { %v859_v2 = vpop.f32.mrb[105].mxu0 }
 0x265   : > { %v861_v43 = vpop.f32.mrb[106].mxu0  ;;  %1506 = vmatprep.mubr.bf16.mxu1 %v1133_v57 }
 0x266   : > { %v968_v63 = vpack.c.bf16 %v861_v43, %v857_v55  ;;  %v863_v1 = vpop.f32.mrb[107].mxu0  ;;  %1507 = vmatmul.mubr.bf16.gmra.mrb[100].mxu1 %v1132_v60  ;;  %v1614_v60 = vld [vmem:[%s9523_s11 + $0x198] sm:$0xff] }
 0x267   : > { %v969_v5 = vpack.c.bf16 %v863_v1, %v859_v2  ;;  %v1613_v2 = vld [vmem:[%s9523_s11 + $0x190] sm:$0xff] }
 0x268   : > { %v1070_v8 = vadd.bf16 %v9704_v21, %v968_v63  ;;  %1902 = vmatmul.mubr.bf16.gmra.mrb[212].mxu0 %v1648_v62  ;;  %v1652_v4 = vpack.c.bf16 %v1614_v60, %v1613_v2 }
 0x269   : > { %v1071_v9 = vadd.bf16 %v9707_v24, %v969_v5  ;;  %1911 = vmatprep.mubr.bf16.mxu0 %v12540_v0 }
 0x26a   : > { %v1134_v13 = vmax.bf16 %v12540_v0, %v1070_v8 }
 0x26b   : > { %v867_v11 = vpop.f32.mrb[108].mxu0  ;;  %v1135_v46 = vmax.bf16 %v12540_v0, %v1071_v9 }
 0x26c   : > { %v869_v12 = vpop.f32.mrb[109].mxu0 }
 0x26d   : > { %v871_v7 = vpop.f32.mrb[110].mxu0  ;;  %1514 = vmatprep.mubr.bf16.mxu1 %v1135_v46 }
 0x26e   : > { %v970_v16 = vpack.c.bf16 %v871_v7, %v867_v11  ;;  %v873_v48 = vpop.f32.mrb[111].mxu0  ;;  %1515 = vmatmul.mubr.bf16.gmra.mrb[104].mxu1 %v1134_v13 }
 0x26f   : > { %v971_v17 = vpack.c.bf16 %v873_v48, %v869_v12  ;;  %v1616_v48 = vld [vmem:[%s9523_s11 + $0x1a8] sm:$0xff] }
 0x270   : > { %v1072_v18 = vadd.bf16 %v9704_v21, %v970_v16  ;;  %1912 = vmatmul.mubr.bf16.gmra.mrb[216].mxu0 %v1649_v14  ;;  %v1615_v16 = vld [vmem:[%s9523_s11 + $0x1a0] sm:$0xff] }
 0x271   : > { %v1073_v31 = vadd.bf16 %v9707_v24, %v971_v17  ;;  %v9962_v19 = vpop.f32.mrb[0].mxu1  ;;  %1921 = vmatprep.mubr.bf16.mxu0 %v12540_v0 }
 0x272   : > { %v1310_v23 = vpop.f32.mrb[1].mxu1  ;;  %v1136_v53 = vmax.bf16 %v12540_v0, %v1072_v18 }
 0x273   : > { %v877_v51 = vpop.f32.mrb[112].mxu0  ;;  %v9967_v25 = vpop.f32.mrb[2].mxu1  ;;  %v1137_v26 = vmax.bf16 %v12540_v0, %v1073_v31 }
 0x274   : > { %v879_v33 = vpop.f32.mrb[113].mxu0  ;;  %v1313_v27 = vpop.f32.mrb[3].mxu1 }
 0x275   : > { %v881_v29 = vpop.f32.mrb[114].mxu0  ;;  %1522 = vmatprep.mubr.bf16.mxu1 %v1137_v26  ;;  %v1653_v26 = vpack.c.bf16 %v1616_v48, %v1615_v16 }
 0x276   : > { %v972_v30 = vpack.c.bf16 %v881_v29, %v877_v51  ;;  %v883_v32 = vpop.f32.mrb[115].mxu0  ;;  %1523 = vmatmul.mubr.bf16.gmra.mrb[108].mxu1 %v1136_v53 }
 0x277   : > { %v973_v36 = vpack.c.bf16 %v883_v32, %v879_v33 }
 0x278   : > { %v1074_v34 = vadd.bf16 %v9704_v21, %v972_v30  ;;  %1922 = vmatmul.mubr.bf16.gmra.mrb[220].mxu0 %v1650_v28 }
 0x279   : > { %v1075_v35 = vadd.bf16 %v9707_v24, %v973_v36  ;;  %v9973_v56 = vpop.f32.mrb[4].mxu1  ;;  %1931 = vmatprep.mubr.bf16.mxu0 %v12540_v0  ;;  %v1617_v36 = vld [vmem:[%s9523_s11 + $0x1b0] sm:$0xff] }
 0x27a   : > { %v1318_v40 = vpop.f32.mrb[5].mxu1  ;;  %v1138_v47 = vmax.bf16 %v12540_v0, %v1074_v34  ;;  %v1618_v34 = vld [vmem:[%s9523_s11 + $0x1b8] sm:$0xff] }
 0x27b   : > { %v887_v42 = vpop.f32.mrb[116].mxu0  ;;  %v9978_v58 = vpop.f32.mrb[6].mxu1  ;;  %v1139_v38 = vmax.bf16 %v12540_v0, %v1075_v35 }
 0x27c   : > { %v889_v44 = vpop.f32.mrb[117].mxu0  ;;  %v1321_v45 = vpop.f32.mrb[7].mxu1 }
 0x27d   : > { %v891_v50 = vpop.f32.mrb[118].mxu0  ;;  %1530 = vmatprep.mubr.bf16.mxu1 %v1139_v38  ;;  %v1654_v45 = vpack.c.bf16 %v1618_v34, %v1617_v36 }
 0x27e   : > { %v974_v41 = vpack.c.bf16 %v891_v50, %v887_v42  ;;  %v893_v61 = vpop.f32.mrb[119].mxu0  ;;  %1531 = vmatmul.mubr.bf16.gmra.mrb[112].mxu1 %v1138_v47 }
 0x27f   : > { %v975_v52 = vpack.c.bf16 %v893_v61, %v889_v44 }
 0x280   : > { %v1076_v54 = vadd.bf16 %v9704_v21, %v974_v41  ;;  %1932 = vmatmul.mubr.bf16.gmra.mrb[224].mxu0 %v1651_v49 }
 0x281   : > { %v1077_v55 = vadd.bf16 %v9707_v24, %v975_v52  ;;  %v9984_v57 = vpop.f32.mrb[8].mxu1  ;;  %1941 = vmatprep.mubr.bf16.mxu0 %v12540_v0  ;;  %v1619_v52 = vld [vmem:[%s9523_s11 + $0x1c0] sm:$0xff] }
 0x282   : > { %v1326_v62 = vpop.f32.mrb[9].mxu1  ;;  %v1140_v9 = vmax.bf16 %v12540_v0, %v1076_v54  ;;  %v1620_v54 = vld [vmem:[%s9523_s11 + $0x1c8] sm:$0xff] }
 0x283   : > { %v897_v43 = vpop.f32.mrb[120].mxu0  ;;  %v9989_v63 = vpop.f32.mrb[10].mxu1  ;;  %v1141_v1 = vmax.bf16 %v12540_v0, %v1077_v55 }
 0x284   : > { %v899_v5 = vpop.f32.mrb[121].mxu0  ;;  %v1329_v8 = vpop.f32.mrb[11].mxu1 }
 0x285   : > { %v901_v10 = vpop.f32.mrb[122].mxu0  ;;  %1538 = vmatprep.mubr.bf16.mxu1 %v1141_v1  ;;  %v1655_v1 = vpack.c.bf16 %v1620_v54, %v1619_v52 }
 0x286   : > { %v976_v11 = vpack.c.bf16 %v901_v10, %v897_v43  ;;  %v903_v46 = vpop.f32.mrb[123].mxu0  ;;  %1539 = vmatmul.mubr.bf16.gmra.mrb[116].mxu1 %v1140_v9 }
 0x287   : > { %v977_v12 = vpack.c.bf16 %v903_v46, %v899_v5  ;;  %v1622_v46 = vld [vmem:[%s9523_s11 + $0x1d8] sm:$0xff] }
 0x288   : > { %v1078_v13 = vadd.bf16 %v9704_v21, %v976_v11  ;;  %1942 = vmatmul.mubr.bf16.gmra.mrb[228].mxu0 %v1652_v4  ;;  %v1621_v11 = vld [vmem:[%s9523_s11 + $0x1d0] sm:$0xff] }
 0x289   : > { %v1079_v14 = vadd.bf16 %v9707_v24, %v977_v12  ;;  %v9995_v7 = vpop.f32.mrb[12].mxu1  ;;  %1951 = vmatprep.mubr.bf16.mxu0 %v12540_v0 }
 0x28a   : > { %v1334_v17 = vpop.f32.mrb[13].mxu1  ;;  %v1142_v51 = vmax.bf16 %v12540_v0, %v1078_v13 }
 0x28b   : > { %v907_v18 = vpop.f32.mrb[124].mxu0  ;;  %v10000_v31 = vpop.f32.mrb[14].mxu1  ;;  %v1143_v20 = vmax.bf16 %v12540_v0, %v1079_v14  ;;  %v1656_v17 = vpack.c.bf16 %v1622_v46, %v1621_v11 }
 0x28c   : > { %v909_v22 = vpop.f32.mrb[125].mxu0  ;;  %v1337_v23 = vpop.f32.mrb[15].mxu1 }
 0x28d   : > { %v911_v33 = vpop.f32.mrb[126].mxu0  ;;  %1546 = vmatprep.mubr.bf16.mxu1 %v1143_v20 }
 0x28e   : > { %v978_v27 = vpack.c.bf16 %v911_v33, %v907_v18  ;;  %v913_v53 = vpop.f32.mrb[127].mxu0  ;;  %1547 = vmatmul.mubr.bf16.gmra.mrb[120].mxu1 %v1142_v51 }
 0x28f   : > { %v979_v28 = vpack.c.bf16 %v913_v53, %v909_v22  ;;  %v1624_v53 = vld [vmem:[%s9523_s11 + $0x1e8] sm:$0xff] }
 0x290   : > { %v1080_v29 = vadd.bf16 %v9704_v21, %v978_v27  ;;  %1952 = vmatmul.mubr.bf16.gmra.mrb[232].mxu0 %v1653_v26  ;;  %v1623_v27 = vld [vmem:[%s9523_s11 + $0x1e0] sm:$0xff] }
 0x291   : > { %v1081_v30 = vadd.bf16 %v9707_v24, %v979_v28  ;;  %v10006_v32 = vpop.f32.mrb[16].mxu1  ;;  %1961 = vmatprep.mubr.bf16.mxu0 %v12540_v0 }
 0x292   : > { %v1342_v35 = vpop.f32.mrb[17].mxu1  ;;  %v1144_v44 = vmax.bf16 %v12540_v0, %v1080_v29 }
 0x293   : > { %v10011_v37 = vpop.f32.mrb[18].mxu1  ;;  %v10013_v39 = vpop.f32.mrb[128].mxu0  ;;  %v1145_v40 = vmax.bf16 %v12540_v0, %v1081_v30 }
 0x294   : > { %v1345_v42 = vpop.f32.mrb[19].mxu1  ;;  %v10016_v38 = vpop.f32.mrb[129].mxu0 }
 0x295   : > { %1554 = vmatprep.mubr.bf16.mxu1 %v1145_v40  ;;  %v10019_v47 = vpop.f32.mrb[130].mxu0  ;;  %v1657_v42 = vpack.c.bf16 %v1624_v53, %v1623_v27 }
 0x296   : > { %v2012_v49 = vpack.c.bf16 %v10019_v47, %v10013_v39  ;;  %1555 = vmatmul.mubr.bf16.gmra.mrb[124].mxu1 %v1144_v44  ;;  %v1699_v50 = vpop.f32.mrb[131].mxu0 }
 0x297   : > { %v2013_v41 = vpack.c.bf16 %v1699_v50, %v10016_v38 }
 0x298   : > { %1962 = vmatmul.mubr.bf16.gmra.mrb[236].mxu0 %v1654_v45 }
 0x299   : > { %v10024_v61 = vpop.f32.mrb[20].mxu1  ;;  %1971 = vmatprep.mubr.bf16.mxu0 %v12540_v0  ;;  %v2077_v46 = vadd.bf16 %v2013_v41, %v9707_v24 }
 0x29a   : > { %v1350_v55 = vpop.f32.mrb[21].mxu1 }
 0x29b   : > { %v10029_v2 = vpop.f32.mrb[22].mxu1  ;;  %v10031_v60 = vpop.f32.mrb[132].mxu0  ;;  %v2141_v27 = vmax.bf16 %v12540_v0, %v2077_v46 }
 0x29c   : > { %v1353_v62 = vpop.f32.mrb[23].mxu1  ;;  %v10033_v43 = vpop.f32.mrb[133].mxu0 }
 0x29d   : > { %v10035_v5 = vpop.f32.mrb[134].mxu0  ;;  %v1625_v62 = vld [vmem:[%s9523_s11 + $0x1f0] sm:$0xff] }
 0x29e   : > { %v2014_v8 = vpack.c.bf16 %v10035_v5, %v10031_v60  ;;  %v10039_v9 = vpop.f32.mrb[135].mxu0 }
 0x29f   : > { %v2015_v4 = vpack.c.bf16 %v10039_v9, %v10033_v43 }
 0x2a0   : > { %1972 = vmatmul.mubr.bf16.gmra.mrb[240].mxu0 %v1655_v1  ;;  %v1626_v1 = vld [vmem:[%s9523_s11 + $0x1f8] sm:$0xff]  ;;  %s8705_s11 = scalar_lea.sflag [#allocation5], %s9512_s16 }
 0x2a1   : > { %v10043_v10 = vpop.f32.mrb[24].mxu1  ;;  %1981 = vmatprep.mubr.bf16.mxu0 %v12540_v0 }
 0x2a2   : > { %v1358_v12 = vpop.f32.mrb[25].mxu1 }
 0x2a3   : > { %v10048_v13 = vpop.f32.mrb[26].mxu1  ;;  %v1713_v14 = vpop.f32.mrb[136].mxu0 }
 0x2a4   : > { %v1361_v16 = vpop.f32.mrb[27].mxu1  ;;  %v1715_v48 = vpop.f32.mrb[137].mxu0 }
 0x2a5   : > { %v1717_v18 = vpop.f32.mrb[138].mxu0 }
 0x2a6   : > { %v2016_v20 = vpack.c.bf16 %v1717_v18, %v1713_v14  ;;  %v1719_v22 = vpop.f32.mrb[139].mxu0 }
 0x2a7   : > { %v2017_v23 = vpack.c.bf16 %v1719_v22, %v1715_v48 }
 0x2a8   : > { %v2080_v51 = vadd.bf16 %v2016_v20, %v9704_v21  ;;  %1982 = vmatmul.mubr.bf16.gmra.mrb[244].mxu0 %v1656_v17  ;;  %v1658_v20 = vpack.c.bf16 %v1626_v1, %v1625_v62  ;;  %v2078_v62 = vadd.bf16 %v2014_v8, %v9704_v21 }
 0x2a9   : > { %v2081_v26 = vadd.bf16 %v2017_v23, %v9707_v24  ;;  %v10052_v33 = vpop.f32.mrb[28].mxu1  ;;  %1991 = vmatprep.mubr.bf16.mxu0 %v12540_v0 }
 0x2aa   : > { %v1366_v28 = vpop.f32.mrb[29].mxu1  ;;  %v2144_v34 = vmax.bf16 %v12540_v0, %v2080_v51 }
 0x2ab   : > { %v10057_v29 = vpop.f32.mrb[30].mxu1  ;;  %v1723_v30 = vpop.f32.mrb[140].mxu0  ;;  %v2145_v36 = vmax.bf16 %v12540_v0, %v2081_v26 }
 0x2ac   : > { %v1369_v35 = vpop.f32.mrb[31].mxu1  ;;  %v1725_v40 = vpop.f32.mrb[141].mxu0 }
 0x2ad   : > { %v1727_v38 = vpop.f32.mrb[142].mxu0  ;;  %2252 = vmatprep.mubr.bf16.mxu1 %v2145_v36 }
 0x2ae   : > { %v2018_v44 = vpack.c.bf16 %v1727_v38, %v1723_v30  ;;  %v1729_v45 = vpop.f32.mrb[143].mxu0  ;;  %2253 = vmatmul.mubr.bf16.vlgmr.msra.gmra.mrb[128].mxu1 %v2144_v34  ;;  %v2076_v30 = vadd.bf16 %v2012_v49, %v9704_v21  ;;  %v2079_v34 = vadd.bf16 %v2015_v4, %v9707_v24 }
 0x2af   : > { %v2019_v50 = vpack.c.bf16 %v1729_v45, %v1725_v40 }
 0x2b0   : > { %v2082_v52 = vadd.bf16 %v2018_v44, %v9704_v21  ;;  %1992 = vmatmul.mubr.bf16.gmra.mrb[248].mxu0 %v1657_v42  ;;  %v2140_v39 = vmax.bf16 %v12540_v0, %v2076_v30  ;;  %v2143_v43 = vmax.bf16 %v12540_v0, %v2079_v34 }
 0x2b1   : > { %v2083_v54 = vadd.bf16 %v2019_v50, %v9707_v24  ;;  %v10063_v55 = vpop.f32.mrb[32].mxu1  ;;  %2001 = vmatprep.mubr.bf16.mxu0 %v12540_v0 }
 0x2b2   : > { %v1374_v11 = vpop.f32.mrb[33].mxu1  ;;  %v2146_v18 = vmax.bf16 %v12540_v0, %v2082_v52 }
 0x2b3   : > { %v10069_v12 = vpop.f32.mrb[34].mxu1  ;;  %v1733_v14 = vpop.f32.mrb[144].mxu0  ;;  %v2147_v16 = vmax.bf16 %v12540_v0, %v2083_v54 }
 0x2b4   : > { %v1377_v48 = vpop.f32.mrb[35].mxu1  ;;  %v1735_v17 = vpop.f32.mrb[145].mxu0 }
 0x2b5   : > { %v1737_v22 = vpop.f32.mrb[146].mxu0  ;;  %2260 = vmatprep.mubr.bf16.mxu1 %v2147_v16 }
 0x2b6   : > { %v2020_v23 = vpack.c.bf16 %v1737_v22, %v1733_v14  ;;  %v1739_v51 = vpop.f32.mrb[147].mxu0  ;;  %2261 = vmatmul.mubr.bf16.gmra.mrb[132].mxu1 %v2146_v18 }
 0x2b7   : > { %v2021_v26 = vpack.c.bf16 %v1739_v51, %v1735_v17 }
 0x2b8   : > { %v2084_v41 = vadd.bf16 %v2020_v23, %v9704_v21  ;;  %2002 = vmatmul.mubr.bf16.gmra.mrb[252].mxu0 %v1658_v20  ;;  %v2142_v20 = vmax.bf16 %v12540_v0, %v2078_v62 }
 0x2b9   : > { %v2085_v53 = vadd.bf16 %v2021_v26, %v9707_v24  ;;  %v10076_v28 = vpop.f32.mrb[36].mxu1  ;;  %2236 = vmatprep.mubr.bf16.mxu0 %v2141_v27 }
 0x2ba   : > { %v1382_v36 = vpop.f32.mrb[37].mxu1  ;;  %v2148_v45 = vmax.bf16 %v12540_v0, %v2084_v41 }
 0x2bb   : > { %v10086_v35 = vpop.f32.mrb[38].mxu1  ;;  %v1743_v40 = vpop.f32.mrb[148].mxu0  ;;  %v2149_v42 = vmax.bf16 %v12540_v0, %v2085_v53 }
 0x2bc   : > { %v1385_v38 = vpop.f32.mrb[39].mxu1  ;;  %v1745_v44 = vpop.f32.mrb[149].mxu0 }
 0x2bd   : > { %v1747_v50 = vpop.f32.mrb[150].mxu0  ;;  %2268 = vmatprep.mubr.bf16.mxu1 %v2149_v42 }
 0x2be   : > { %v2022_v47 = vpack.c.bf16 %v1747_v50, %v1743_v40  ;;  %v1749_v49 = vpop.f32.mrb[151].mxu0  ;;  %2269 = vmatmul.mubr.bf16.gmra.mrb[136].mxu1 %v2148_v45 }
 0x2bf   : > { %v2023_v52 = vpack.c.bf16 %v1749_v49, %v1745_v44 }
 0x2c0   : > { %v2086_v9 = vadd.bf16 %v2022_v47, %v9704_v21  ;;  %2237 = vmatmul.mubr.bf16.vlgmr.msra.gmra.mrb[0].mxu0 %v2140_v39 }
 0x2c1   : > { %v2087_v4 = vadd.bf16 %v2023_v52, %v9707_v24  ;;  %v10094_v54 = vpop.f32.mrb[40].mxu1  ;;  %2244 = vmatprep.mubr.bf16.mxu0 %v2143_v43 }
 0x2c2   : > { %v1390_v1 = vpop.f32.mrb[41].mxu1  ;;  %v2150_v17 = vmax.bf16 %v12540_v0, %v2086_v9 }
 0x2c3   : > { %v10100_v11 = vpop.f32.mrb[42].mxu1  ;;  %v1753_v46 = vpop.f32.mrb[152].mxu0  ;;  %v2151_v14 = vmax.bf16 %v12540_v0, %v2087_v4 }
 0x2c4   : > { %v1393_v16 = vpop.f32.mrb[43].mxu1  ;;  %v1755_v48 = vpop.f32.mrb[153].mxu0 }
 0x2c5   : > { %v1757_v18 = vpop.f32.mrb[154].mxu0  ;;  %2276 = vmatprep.mubr.bf16.mxu1 %v2151_v14 }
 0x2c6   : > { %v2024_v22 = vpack.c.bf16 %v1757_v18, %v1753_v46  ;;  %v1759_v23 = vpop.f32.mrb[155].mxu0  ;;  %2277 = vmatmul.mubr.bf16.gmra.mrb[140].mxu1 %v2150_v17 }
 0x2c7   : > { %v2025_v51 = vpack.c.bf16 %v1759_v23, %v1755_v48 }
 0x2c8   : > { %v2088_v60 = vadd.bf16 %v2024_v22, %v9704_v21  ;;  %2245 = vmatmul.mubr.bf16.gmra.mrb[4].mxu0 %v2142_v20 }
 0x2c9   : > { %v2089_v5 = vadd.bf16 %v2025_v51, %v9707_v24  ;;  %v10107_v8 = vpop.f32.mrb[44].mxu1 }
 0x2ca   : > { %v1398_v26 = vpop.f32.mrb[45].mxu1  ;;  %v2152_v34 = vmax.bf16 %v12540_v0, %v2088_v60 }
 0x2cb   : > { %v10109_v27 = vpop.f32.mrb[46].mxu1  ;;  %v1763_v41 = vpop.f32.mrb[156].mxu0  ;;  %v2153_v53 = vmax.bf16 %v12540_v0, %v2089_v5 }
 0x2cc   : > { %v1401_v30 = vpop.f32.mrb[47].mxu1  ;;  %v1765_v36 = vpop.f32.mrb[157].mxu0 }
 0x2cd   : > { %v1767_v40 = vpop.f32.mrb[158].mxu0  ;;  %2284 = vmatprep.mubr.bf16.mxu1 %v2153_v53 }
 0x2ce   : > { %v2026_v42 = vpack.c.bf16 %v1767_v40, %v1763_v41  ;;  %v1769_v38 = vpop.f32.mrb[159].mxu0  ;;  %2285 = vmatmul.mubr.bf16.gmra.mrb[144].mxu1 %v2152_v34 }
 0x2cf   : > { %v2027_v44 = vpack.c.bf16 %v1769_v38, %v1765_v36 }
 0x2d0   : > { %v2090_v45 = vadd.bf16 %v2026_v42, %v9704_v21 }
 0x2d1   : > { %v2091_v50 = vadd.bf16 %v2027_v44, %v9707_v24  ;;  %v10115_v39 = vpop.f32.mrb[48].mxu1 }
 0x2d2   : > { %v1406_v47 = vpop.f32.mrb[49].mxu1  ;;  %v2154_v62 = vmax.bf16 %v12540_v0, %v2090_v45 }
 0x2d3   : > { %v10117_v49 = vpop.f32.mrb[50].mxu1  ;;  %v1773_v52 = vpop.f32.mrb[160].mxu0  ;;  %v2155_v43 = vmax.bf16 %v12540_v0, %v2091_v50 }
 0x2d4   : > { %v1409_v9 = vpop.f32.mrb[51].mxu1  ;;  %v1775_v4 = vpop.f32.mrb[161].mxu0 }
 0x2d5   : > { %v1777_v1 = vpop.f32.mrb[162].mxu0  ;;  %2292 = vmatprep.mubr.bf16.mxu1 %v2155_v43 }
 0x2d6   : > { %v2028_v46 = vpack.c.bf16 %v1777_v1, %v1773_v52  ;;  %v1779_v14 = vpop.f32.mrb[163].mxu0  ;;  %2293 = vmatmul.mubr.bf16.gmra.mrb[148].mxu1 %v2154_v62 }
 0x2d7   : > { %v2029_v16 = vpack.c.bf16 %v1779_v14, %v1775_v4 }
 0x2d8   : > { %v2092_v48 = vadd.bf16 %v2028_v46, %v9704_v21 }
 0x2d9   : > { %v2093_v17 = vadd.bf16 %v2029_v16, %v9707_v24  ;;  %v10123_v18 = vpop.f32.mrb[52].mxu1 }
 0x2da   : > { %v1414_v20 = vpop.f32.mrb[53].mxu1  ;;  %v2156_v26 = vmax.bf16 %v12540_v0, %v2092_v48 }
 0x2db   : > { %v10125_v22 = vpop.f32.mrb[54].mxu1  ;;  %v1783_v23 = vpop.f32.mrb[164].mxu0  ;;  %v2157_v51 = vmax.bf16 %v12540_v0, %v2093_v17 }
 0x2dc   : > { %v1417_v60 = vpop.f32.mrb[55].mxu1  ;;  %v1785_v5 = vpop.f32.mrb[165].mxu0 }
 0x2dd   : > { %v1787_v41 = vpop.f32.mrb[166].mxu0  ;;  %2300 = vmatprep.mubr.bf16.mxu1 %v2157_v51 }
 0x2de   : > { %v2030_v53 = vpack.c.bf16 %v1787_v41, %v1783_v23  ;;  %v1789_v30 = vpop.f32.mrb[167].mxu0  ;;  %2301 = vmatmul.mubr.bf16.gmra.mrb[152].mxu1 %v2156_v26 }
 0x2df   : > { %v2031_v36 = vpack.c.bf16 %v1789_v30, %v1785_v5 }
 0x2e0   : > { %v2094_v34 = vadd.bf16 %v2030_v53, %v9704_v21 }
 0x2e1   : > { %v2095_v40 = vadd.bf16 %v2031_v36, %v9707_v24  ;;  %v10131_v42 = vpop.f32.mrb[56].mxu1 }
 0x2e2   : > { %v1422_v38 = vpop.f32.mrb[57].mxu1  ;;  %v2158_v43 = vmax.bf16 %v12540_v0, %v2094_v34 }
 0x2e3   : > { %v10133_v44 = vpop.f32.mrb[58].mxu1  ;;  %v1793_v45 = vpop.f32.mrb[168].mxu0  ;;  %v2159_v50 = vmax.bf16 %v12540_v0, %v2095_v40 }
 0x2e4   : > { %v1425_v47 = vpop.f32.mrb[59].mxu1  ;;  %v1795_v52 = vpop.f32.mrb[169].mxu0 }
 0x2e5   : > { %v1797_v9 = vpop.f32.mrb[170].mxu0  ;;  %2308 = vmatprep.mubr.bf16.mxu1 %v2159_v50 }
 0x2e6   : > { %v2032_v4 = vpack.c.bf16 %v1797_v9, %v1793_v45  ;;  %v1799_v62 = vpop.f32.mrb[171].mxu0  ;;  %2309 = vmatmul.mubr.bf16.gmra.mrb[156].mxu1 %v2158_v43 }
 0x2e7   : > { %v2033_v1 = vpack.c.bf16 %v1799_v62, %v1795_v52 }
 0x2e8   : > { %v2096_v46 = vadd.bf16 %v2032_v4, %v9704_v21 }
 0x2e9   : > { %v2097_v14 = vadd.bf16 %v2033_v1, %v9707_v24  ;;  %v10139_v16 = vpop.f32.mrb[60].mxu1 }
 0x2ea   : > { %v1430_v48 = vpop.f32.mrb[61].mxu1  ;;  %v2160_v5 = vmax.bf16 %v12540_v0, %v2096_v46 }
 0x2eb   : > { %v10141_v17 = vpop.f32.mrb[62].mxu1  ;;  %v1803_v20 = vpop.f32.mrb[172].mxu0  ;;  %v2161_v23 = vmax.bf16 %v12540_v0, %v2097_v14 }
 0x2ec   : > { %v1433_v51 = vpop.f32.mrb[63].mxu1  ;;  %v1805_v60 = vpop.f32.mrb[173].mxu0 }
 0x2ed   : > { %v1807_v26 = vpop.f32.mrb[174].mxu0  ;;  %2316 = vmatprep.mubr.bf16.mxu1 %v2161_v23 }
 0x2ee   : > { %v2034_v41 = vpack.c.bf16 %v1807_v26, %v1803_v20  ;;  %v1809_v53 = vpop.f32.mrb[175].mxu0  ;;  %2317 = vmatmul.mubr.bf16.gmra.mrb[160].mxu1 %v2160_v5 }
 0x2ef   : > { %v2035_v30 = vpack.c.bf16 %v1809_v53, %v1805_v60 }
 0x2f0   : > { %v2098_v36 = vadd.bf16 %v2034_v41, %v9704_v21 }
 0x2f1   : > { %v2099_v34 = vadd.bf16 %v2035_v30, %v9707_v24  ;;  %v10147_v40 = vpop.f32.mrb[64].mxu1 }
 0x2f2   : > { %v1438_v38 = vpop.f32.mrb[65].mxu1  ;;  %v2162_v9 = vmax.bf16 %v12540_v0, %v2098_v36 }
 0x2f3   : > { %v10149_v45 = vpop.f32.mrb[66].mxu1  ;;  %v1813_v50 = vpop.f32.mrb[176].mxu0  ;;  %v2163_v47 = vmax.bf16 %v12540_v0, %v2099_v34 }
 0x2f4   : > { %v1441_v52 = vpop.f32.mrb[67].mxu1  ;;  %v1815_v43 = vpop.f32.mrb[177].mxu0 }
 0x2f5   : > { %v1817_v4 = vpop.f32.mrb[178].mxu0  ;;  %2324 = vmatprep.mubr.bf16.mxu1 %v2163_v47 }
 0x2f6   : > { %v2036_v62 = vpack.c.bf16 %v1817_v4, %v1813_v50  ;;  %v1819_v1 = vpop.f32.mrb[179].mxu0  ;;  %2325 = vmatmul.mubr.bf16.gmra.mrb[164].mxu1 %v2162_v9 }
 0x2f7   : > { %v2037_v46 = vpack.c.bf16 %v1819_v1, %v1815_v43 }
 0x2f8   : > { %v2100_v14 = vadd.bf16 %v2036_v62, %v9704_v21 }
 0x2f9   : > { %v2101_v48 = vadd.bf16 %v2037_v46, %v9707_v24  ;;  %v10155_v20 = vpop.f32.mrb[68].mxu1 }
 0x2fa   : > { %v1446_v23 = vpop.f32.mrb[69].mxu1  ;;  %v2164_v53 = vmax.bf16 %v12540_v0, %v2100_v14 }
 0x2fb   : > { %v10157_v51 = vpop.f32.mrb[70].mxu1  ;;  %v1823_v60 = vpop.f32.mrb[180].mxu0  ;;  %v2165_v5 = vmax.bf16 %v12540_v0, %v2101_v48 }
 0x2fc   : > { %v1449_v26 = vpop.f32.mrb[71].mxu1  ;;  %v1825_v41 = vpop.f32.mrb[181].mxu0 }
 0x2fd   : > { %v1827_v30 = vpop.f32.mrb[182].mxu0  ;;  %2332 = vmatprep.mubr.bf16.mxu1 %v2165_v5 }
 0x2fe   : > { %v2038_v36 = vpack.c.bf16 %v1827_v30, %v1823_v60  ;;  %v1829_v34 = vpop.f32.mrb[183].mxu0  ;;  %2333 = vmatmul.mubr.bf16.gmra.mrb[168].mxu1 %v2164_v53 }
 0x2ff   : > { %v2039_v38 = vpack.c.bf16 %v1829_v34, %v1825_v41 }
 0x300   : > { %v2102_v50 = vadd.bf16 %v2038_v36, %v9704_v21 }
 0x301   : > { %v2103_v47 = vadd.bf16 %v2039_v38, %v9707_v24  ;;  %v10163_v52 = vpop.f32.mrb[72].mxu1 }
 0x302   : > { %v1454_v43 = vpop.f32.mrb[73].mxu1  ;;  %v2166_v14 = vmax.bf16 %v12540_v0, %v2102_v50 }
 0x303   : > { %v10165_v9 = vpop.f32.mrb[74].mxu1  ;;  %v1833_v4 = vpop.f32.mrb[184].mxu0  ;;  %v2167_v62 = vmax.bf16 %v12540_v0, %v2103_v47 }
 0x304   : > { %v1457_v1 = vpop.f32.mrb[75].mxu1  ;;  %v1835_v46 = vpop.f32.mrb[185].mxu0 }
 0x305   : > { %v1837_v48 = vpop.f32.mrb[186].mxu0  ;;  %2340 = vmatprep.mubr.bf16.mxu1 %v2167_v62 }
 0x306   : > { %v2040_v23 = vpack.c.bf16 %v1837_v48, %v1833_v4  ;;  %v1839_v60 = vpop.f32.mrb[187].mxu0  ;;  %2341 = vmatmul.mubr.bf16.gmra.mrb[172].mxu1 %v2166_v14 }
 0x307   : > { %v2041_v5 = vpack.c.bf16 %v1839_v60, %v1835_v46 }
 0x308   : > { %v2104_v26 = vadd.bf16 %v2040_v23, %v9704_v21 }
 0x309   : > { %v2105_v41 = vadd.bf16 %v2041_v5, %v9707_v24  ;;  %v10171_v53 = vpop.f32.mrb[76].mxu1 }
 0x30a   : > { %v1462_v30 = vpop.f32.mrb[77].mxu1  ;;  %v2168_v43 = vmax.bf16 %v12540_v0, %v2104_v26 }
 0x30b   : > { %v10173_v36 = vpop.f32.mrb[78].mxu1  ;;  %v1843_v34 = vpop.f32.mrb[188].mxu0  ;;  %v2169_v38 = vmax.bf16 %v12540_v0, %v2105_v41 }
 0x30c   : > { %v1465_v47 = vpop.f32.mrb[79].mxu1  ;;  %v1845_v50 = vpop.f32.mrb[189].mxu0 }
 0x30d   : > { %v1847_v4 = vpop.f32.mrb[190].mxu0  ;;  %2348 = vmatprep.mubr.bf16.mxu1 %v2169_v38 }
 0x30e   : > { %v2042_v62 = vpack.c.bf16 %v1847_v4, %v1843_v34  ;;  %v1849_v1 = vpop.f32.mrb[191].mxu0  ;;  %2349 = vmatmul.mubr.bf16.gmra.mrb[176].mxu1 %v2168_v43 }
 0x30f   : > { %v2043_v46 = vpack.c.bf16 %v1849_v1, %v1845_v50 }
 0x310   : > { %v2106_v14 = vadd.bf16 %v2042_v62, %v9704_v21 }
 0x311   : > { %v2107_v48 = vadd.bf16 %v2043_v46, %v9707_v24  ;;  %v10179_v23 = vpop.f32.mrb[80].mxu1 }
 0x312   : > { %v1470_v60 = vpop.f32.mrb[81].mxu1  ;;  %v2170_v38 = vmax.bf16 %v12540_v0, %v2106_v14 }
 0x313   : > { %v10181_v5 = vpop.f32.mrb[82].mxu1  ;;  %v1853_v41 = vpop.f32.mrb[192].mxu0  ;;  %v2171_v30 = vmax.bf16 %v12540_v0, %v2107_v48 }
 0x314   : > { %v1473_v47 = vpop.f32.mrb[83].mxu1  ;;  %v1855_v26 = vpop.f32.mrb[193].mxu0 }
 0x315   : > { %v1857_v34 = vpop.f32.mrb[194].mxu0  ;;  %2356 = vmatprep.mubr.bf16.mxu1 %v2171_v30 }
 0x316   : > { %v2044_v43 = vpack.c.bf16 %v1857_v34, %v1853_v41  ;;  %v1859_v50 = vpop.f32.mrb[195].mxu0  ;;  %2357 = vmatmul.mubr.bf16.gmra.mrb[180].mxu1 %v2170_v38 }
 0x317   : > { %v2045_v4 = vpack.c.bf16 %v1859_v50, %v1855_v26 }
 0x318   : > { %v2108_v62 = vadd.bf16 %v2044_v43, %v9704_v21 }
 0x319   : > { %v2109_v1 = vadd.bf16 %v2045_v4, %v9707_v24  ;;  %v10187_v46 = vpop.f32.mrb[84].mxu1 }
 0x31a   : > { %v1478_v60 = vpop.f32.mrb[85].mxu1  ;;  %v2172_v30 = vmax.bf16 %v12540_v0, %v2108_v62 }
 0x31b   : > { %v10189_v59 = vpop.f32.mrb[86].mxu1  ;;  %v1863_v48 = vpop.f32.mrb[196].mxu0  ;;  %v2173_v47 = vmax.bf16 %v12540_v0, %v2109_v1 }
 0x31c   : > { %12625 = vst [vmem:[#allocation19_spill] sm:$0xff] %v10189_v59  ;;  %v1481_v6 = vpop.f32.mrb[87].mxu1  ;;  %v1865_v14 = vpop.f32.mrb[197].mxu0 }
 0x31d   : > { %v1867_v41 = vpop.f32.mrb[198].mxu0  ;;  %2364 = vmatprep.mubr.bf16.mxu1 %v2173_v47 }
 0x31e   : > { %v2046_v38 = vpack.c.bf16 %v1867_v41, %v1863_v48  ;;  %v1869_v26 = vpop.f32.mrb[199].mxu0  ;;  %2365 = vmatmul.mubr.bf16.gmra.mrb[184].mxu1 %v2172_v30 }
 0x31f   : > { %v2047_v34 = vpack.c.bf16 %v1869_v26, %v1865_v14 }
 0x320   : > { %v2110_v43 = vadd.bf16 %v2046_v38, %v9704_v21 }
 0x321   : > { %v2111_v50 = vadd.bf16 %v2047_v34, %v9707_v24  ;;  %v10195_v4 = vpop.f32.mrb[88].mxu1 }
 0x322   : > { %12626 = vst [vmem:[#allocation20_spill] sm:$0xff] %v10195_v4  ;;  %v1486_v60 = vpop.f32.mrb[89].mxu1  ;;  %v2174_v47 = vmax.bf16 %v12540_v0, %v2110_v43 }
 0x323   : > { %v10197_v59 = vpop.f32.mrb[90].mxu1  ;;  %v1873_v1 = vpop.f32.mrb[200].mxu0  ;;  %v2175_v6 = vmax.bf16 %v12540_v0, %v2111_v50 }
 0x324   : > { %12627 = vst [vmem:[#allocation21_spill] sm:$0xff] %v10197_v59  ;;  %v1489_v15 = vpop.f32.mrb[91].mxu1  ;;  %v1875_v62 = vpop.f32.mrb[201].mxu0 }
 0x325   : > { %v1877_v48 = vpop.f32.mrb[202].mxu0  ;;  %2372 = vmatprep.mubr.bf16.mxu1 %v2175_v6 }
 0x326   : > { %v2048_v30 = vpack.c.bf16 %v1877_v48, %v1873_v1  ;;  %v1879_v14 = vpop.f32.mrb[203].mxu0  ;;  %2373 = vmatmul.mubr.bf16.gmra.mrb[188].mxu1 %v2174_v47 }
 0x327   : > { %v2049_v41 = vpack.c.bf16 %v1879_v14, %v1875_v62 }
 0x328   : > { %v2112_v38 = vadd.bf16 %v2048_v30, %v9704_v21 }
 0x329   : > { %v2113_v26 = vadd.bf16 %v2049_v41, %v9707_v24  ;;  %v10203_v34 = vpop.f32.mrb[92].mxu1 }
 0x32a   : > { %12628 = vst [vmem:[#allocation22_spill] sm:$0xff] %v10203_v34  ;;  %v1494_v60 = vpop.f32.mrb[93].mxu1  ;;  %v2176_v6 = vmax.bf16 %v12540_v0, %v2112_v38 }
 0x32b   : > { %v10205_v59 = vpop.f32.mrb[94].mxu1  ;;  %v1883_v50 = vpop.f32.mrb[204].mxu0  ;;  %v2177_v15 = vmax.bf16 %v12540_v0, %v2113_v26 }
 0x32c   : > { %12629 = vst [vmem:[#allocation23_spill] sm:$0xff] %v10205_v59  ;;  %v1497_v4 = vpop.f32.mrb[95].mxu1  ;;  %v1885_v43 = vpop.f32.mrb[205].mxu0 }
 0x32d   : > { %v1887_v1 = vpop.f32.mrb[206].mxu0  ;;  %2380 = vmatprep.mubr.bf16.mxu1 %v2177_v15 }
 0x32e   : > { %v2050_v47 = vpack.c.bf16 %v1887_v1, %v1883_v50  ;;  %v1889_v62 = vpop.f32.mrb[207].mxu0  ;;  %2381 = vmatmul.mubr.bf16.gmra.mrb[192].mxu1 %v2176_v6 }
 0x32f   : > { %v2051_v48 = vpack.c.bf16 %v1889_v62, %v1885_v43 }
 0x330   : > { %v2114_v30 = vadd.bf16 %v2050_v47, %v9704_v21 }
 0x331   : > { %v2115_v14 = vadd.bf16 %v2051_v48, %v9707_v24  ;;  %v10211_v41 = vpop.f32.mrb[96].mxu1 }
 0x332   : > { %12630 = vst [vmem:[#allocation24_spill] sm:$0xff] %v10211_v41  ;;  %v1502_v60 = vpop.f32.mrb[97].mxu1  ;;  %v2178_v15 = vmax.bf16 %v12540_v0, %v2114_v30 }
 0x333   : > { %v10213_v59 = vpop.f32.mrb[98].mxu1  ;;  %v1893_v26 = vpop.f32.mrb[208].mxu0  ;;  %v2179_v4 = vmax.bf16 %v12540_v0, %v2115_v14 }
 0x334   : > { %12631 = vst [vmem:[#allocation25_spill] sm:$0xff] %v10213_v59  ;;  %v1505_v34 = vpop.f32.mrb[99].mxu1  ;;  %v1895_v38 = vpop.f32.mrb[209].mxu0 }
 0x335   : > { %v1897_v50 = vpop.f32.mrb[210].mxu0  ;;  %2388 = vmatprep.mubr.bf16.mxu1 %v2179_v4 }
 0x336   : > { %v2052_v6 = vpack.c.bf16 %v1897_v50, %v1893_v26  ;;  %v1899_v43 = vpop.f32.mrb[211].mxu0  ;;  %2389 = vmatmul.mubr.bf16.gmra.mrb[196].mxu1 %v2178_v15 }
 0x337   : > { %v2053_v1 = vpack.c.bf16 %v1899_v43, %v1895_v38 }
 0x338   : > { %v2116_v47 = vadd.bf16 %v2052_v6, %v9704_v21 }
 0x339   : > { %v2117_v62 = vadd.bf16 %v2053_v1, %v9707_v24  ;;  %v10219_v48 = vpop.f32.mrb[100].mxu1 }
 0x33a   : > { %12632 = vst [vmem:[#allocation26_spill] sm:$0xff] %v10219_v48  ;;  %v1510_v60 = vpop.f32.mrb[101].mxu1  ;;  %v2180_v4 = vmax.bf16 %v12540_v0, %v2116_v47 }
 0x33b   : > { %v10221_v59 = vpop.f32.mrb[102].mxu1  ;;  %v1903_v14 = vpop.f32.mrb[212].mxu0  ;;  %v2181_v34 = vmax.bf16 %v12540_v0, %v2117_v62 }
 0x33c   : > { %12633 = vst [vmem:[#allocation27_spill] sm:$0xff] %v10221_v59  ;;  %v1513_v41 = vpop.f32.mrb[103].mxu1  ;;  %v1905_v30 = vpop.f32.mrb[213].mxu0 }
 0x33d   : > { %v1907_v26 = vpop.f32.mrb[214].mxu0  ;;  %2396 = vmatprep.mubr.bf16.mxu1 %v2181_v34 }
 0x33e   : > { %v2054_v15 = vpack.c.bf16 %v1907_v26, %v1903_v14  ;;  %v1909_v38 = vpop.f32.mrb[215].mxu0  ;;  %2397 = vmatmul.mubr.bf16.gmra.mrb[200].mxu1 %v2180_v4 }
 0x33f   : > { %v2055_v50 = vpack.c.bf16 %v1909_v38, %v1905_v30 }
 0x340   : > { %v2118_v6 = vadd.bf16 %v2054_v15, %v9704_v21 }
 0x341   : > { %v2119_v43 = vadd.bf16 %v2055_v50, %v9707_v24  ;;  %v10227_v1 = vpop.f32.mrb[104].mxu1 }
 0x342   : > { %12634 = vst [vmem:[#allocation28_spill] sm:$0xff] %v10227_v1  ;;  %v1518_v60 = vpop.f32.mrb[105].mxu1  ;;  %v2182_v34 = vmax.bf16 %v12540_v0, %v2118_v6 }
 0x343   : > { %v10229_v59 = vpop.f32.mrb[106].mxu1  ;;  %v1913_v62 = vpop.f32.mrb[216].mxu0  ;;  %v2183_v41 = vmax.bf16 %v12540_v0, %v2119_v43 }
 0x344   : > { %12635 = vst [vmem:[#allocation29_spill] sm:$0xff] %v10229_v59  ;;  %v1521_v48 = vpop.f32.mrb[107].mxu1  ;;  %v1915_v47 = vpop.f32.mrb[217].mxu0 }
 0x345   : > { %v1917_v14 = vpop.f32.mrb[218].mxu0  ;;  %2404 = vmatprep.mubr.bf16.mxu1 %v2183_v41 }
 0x346   : > { %v2056_v4 = vpack.c.bf16 %v1917_v14, %v1913_v62  ;;  %v1919_v30 = vpop.f32.mrb[219].mxu0  ;;  %2405 = vmatmul.mubr.bf16.gmra.mrb[204].mxu1 %v2182_v34 }
 0x347   : > { %v2057_v26 = vpack.c.bf16 %v1919_v30, %v1915_v47 }
 0x348   : > { %v2120_v15 = vadd.bf16 %v2056_v4, %v9704_v21 }
 0x349   : > { %v2121_v38 = vadd.bf16 %v2057_v26, %v9707_v24  ;;  %v10235_v50 = vpop.f32.mrb[108].mxu1 }
 0x34a   : > { %12636 = vst [vmem:[#allocation30_spill] sm:$0xff] %v10235_v50  ;;  %v1526_v60 = vpop.f32.mrb[109].mxu1  ;;  %v2184_v59 = vmax.bf16 %v12540_v0, %v2120_v15 }
 0x34b   : > { %v10238_v43 = vpop.f32.mrb[110].mxu1  ;;  %v1923_v48 = vpop.f32.mrb[220].mxu0  ;;  %v2185_v6 = vmax.bf16 %v12540_v0, %v2121_v38 }
 0x34c   : > { %12637 = vst [vmem:[#allocation31_spill] sm:$0xff] %v10238_v43  ;;  %v1529_v1 = vpop.f32.mrb[111].mxu1  ;;  %v1925_v41 = vpop.f32.mrb[221].mxu0 }
 0x34d   : > { %v1927_v62 = vpop.f32.mrb[222].mxu0  ;;  %2412 = vmatprep.mubr.bf16.mxu1 %v2185_v6 }
 0x34e   : > { %v2058_v34 = vpack.c.bf16 %v1927_v62, %v1923_v48  ;;  %v1929_v47 = vpop.f32.mrb[223].mxu0  ;;  %2413 = vmatmul.mubr.bf16.gmra.mrb[208].mxu1 %v2184_v59 }
 0x34f   : > { %v2059_v14 = vpack.c.bf16 %v1929_v47, %v1925_v41 }
 0x350   : > { %v2122_v4 = vadd.bf16 %v2058_v34, %v9704_v21 }
 0x351   : > { %v2123_v30 = vadd.bf16 %v2059_v14, %v9707_v24  ;;  %v10243_v26 = vpop.f32.mrb[112].mxu1 }
 0x352   : > { %12638 = vst [vmem:[#allocation32_spill] sm:$0xff] %v10243_v26  ;;  %v1534_v15 = vpop.f32.mrb[113].mxu1  ;;  %v2186_v60 = vmax.bf16 %v12540_v0, %v2122_v4 }
 0x353   : > { %v10246_v43 = vpop.f32.mrb[114].mxu1  ;;  %v1933_v38 = vpop.f32.mrb[224].mxu0  ;;  %v2187_v1 = vmax.bf16 %v12540_v0, %v2123_v30 }
 0x354   : > { %12639 = vst [vmem:[#allocation33_spill] sm:$0xff] %v10246_v43  ;;  %v1537_v50 = vpop.f32.mrb[115].mxu1  ;;  %v1935_v6 = vpop.f32.mrb[225].mxu0 }
 0x355   : > { %v1937_v48 = vpop.f32.mrb[226].mxu0  ;;  %2420 = vmatprep.mubr.bf16.mxu1 %v2187_v1 }
 0x356   : > { %v2060_v59 = vpack.c.bf16 %v1937_v48, %v1933_v38  ;;  %v1939_v41 = vpop.f32.mrb[227].mxu0  ;;  %2421 = vmatmul.mubr.bf16.gmra.mrb[212].mxu1 %v2186_v60 }
 0x357   : > { %v2061_v62 = vpack.c.bf16 %v1939_v41, %v1935_v6 }
 0x358   : > { %v2124_v34 = vadd.bf16 %v2060_v59, %v9704_v21 }
 0x359   : > { %v2125_v47 = vadd.bf16 %v2061_v62, %v9707_v24  ;;  %v10251_v14 = vpop.f32.mrb[116].mxu1 }
 0x35a   : > { %12640 = vst [vmem:[#allocation34_spill] sm:$0xff] %v10251_v14  ;;  %v1542_v4 = vpop.f32.mrb[117].mxu1  ;;  %v2188_v15 = vmax.bf16 %v12540_v0, %v2124_v34 }
 0x35b   : > { %v10254_v43 = vpop.f32.mrb[118].mxu1  ;;  %v1943_v30 = vpop.f32.mrb[228].mxu0  ;;  %v2189_v50 = vmax.bf16 %v12540_v0, %v2125_v47 }
 0x35c   : > { %12641 = vst [vmem:[#allocation35_spill] sm:$0xff] %v10254_v43  ;;  %v1545_v26 = vpop.f32.mrb[119].mxu1  ;;  %v1945_v1 = vpop.f32.mrb[229].mxu0 }
 0x35d   : > { %v1947_v38 = vpop.f32.mrb[230].mxu0  ;;  %2428 = vmatprep.mubr.bf16.mxu1 %v2189_v50 }
 0x35e   : > { %v2062_v60 = vpack.c.bf16 %v1947_v38, %v1943_v30  ;;  %v1949_v6 = vpop.f32.mrb[231].mxu0  ;;  %2429 = vmatmul.mubr.bf16.gmra.mrb[216].mxu1 %v2188_v15 }
 0x35f   : > { %v2063_v48 = vpack.c.bf16 %v1949_v6, %v1945_v1 }
 0x360   : > { %v2126_v59 = vadd.bf16 %v2062_v60, %v9704_v21 }
 0x361   : > { %v2127_v41 = vadd.bf16 %v2063_v48, %v9707_v24  ;;  %v10259_v62 = vpop.f32.mrb[120].mxu1 }
 0x362   : > { %12642 = vst [vmem:[#allocation36_spill] sm:$0xff] %v10259_v62  ;;  %v1550_v34 = vpop.f32.mrb[121].mxu1  ;;  %v2190_v4 = vmax.bf16 %v12540_v0, %v2126_v59 }
 0x363   : > { %v10262_v43 = vpop.f32.mrb[122].mxu1  ;;  %v1953_v47 = vpop.f32.mrb[232].mxu0  ;;  %v2191_v26 = vmax.bf16 %v12540_v0, %v2127_v41 }
 0x364   : > { %12643 = vst [vmem:[#allocation37_spill] sm:$0xff] %v10262_v43  ;;  %v1553_v14 = vpop.f32.mrb[123].mxu1  ;;  %v1955_v50 = vpop.f32.mrb[233].mxu0 }
 0x365   : > { %v1957_v30 = vpop.f32.mrb[234].mxu0  ;;  %2436 = vmatprep.mubr.bf16.mxu1 %v2191_v26 }
 0x366   : > { %v2064_v15 = vpack.c.bf16 %v1957_v30, %v1953_v47  ;;  %v1959_v1 = vpop.f32.mrb[235].mxu0  ;;  %2437 = vmatmul.mubr.bf16.gmra.mrb[220].mxu1 %v2190_v4 }
 0x367   : > { %v2065_v38 = vpack.c.bf16 %v1959_v1, %v1955_v50 }
 0x368   : > { %v2128_v60 = vadd.bf16 %v2064_v15, %v9704_v21 }
 0x369   : > { %v2129_v6 = vadd.bf16 %v2065_v38, %v9707_v24  ;;  %v10267_v48 = vpop.f32.mrb[124].mxu1 }
 0x36a   : > { %12644 = vst [vmem:[#allocation38_spill] sm:$0xff] %v10267_v48  ;;  %v1558_v59 = vpop.f32.mrb[125].mxu1  ;;  %v2192_v34 = vmax.bf16 %v12540_v0, %v2128_v60 }
 0x36b   : > { %v10270_v43 = vpop.f32.mrb[126].mxu1  ;;  %v1963_v41 = vpop.f32.mrb[236].mxu0  ;;  %v2193_v14 = vmax.bf16 %v12540_v0, %v2129_v6 }
 0x36c   : > { %12645 = vst [vmem:[#allocation39_spill] sm:$0xff] %v10270_v43  ;;  %v1561_v62 = vpop.f32.mrb[127].mxu1  ;;  %v1965_v26 = vpop.f32.mrb[237].mxu0 }
 0x36d   : > { %v1967_v47 = vpop.f32.mrb[238].mxu0  ;;  %2444 = vmatprep.mubr.bf16.mxu1 %v2193_v14 }
 0x36e   : > { %v2066_v4 = vpack.c.bf16 %v1967_v47, %v1963_v41  ;;  %v1969_v50 = vpop.f32.mrb[239].mxu0  ;;  %2445 = vmatmul.mubr.bf16.gmra.mrb[224].mxu1 %v2192_v34 }
 0x36f   : > { %v2067_v30 = vpack.c.bf16 %v1969_v50, %v1965_v26 }
 0x370   : > { %v2130_v15 = vadd.bf16 %v2066_v4, %v9704_v21 }
 0x371   : > { %v2131_v1 = vadd.bf16 %v2067_v30, %v9707_v24 }
 0x372   : > { %v2194_v38 = vmax.bf16 %v12540_v0, %v2130_v15 }
 0x373   : > { %v1973_v60 = vpop.f32.mrb[240].mxu0  ;;  %v2195_v59 = vmax.bf16 %v12540_v0, %v2131_v1 }
 0x374   : > { %v1975_v43 = vpop.f32.mrb[241].mxu0 }
 0x375   : > { %v1977_v48 = vpop.f32.mrb[242].mxu0  ;;  %2452 = vmatprep.mubr.bf16.mxu1 %v2195_v59 }
 0x376   : > { %v2068_v62 = vpack.c.bf16 %v1977_v48, %v1973_v60  ;;  %v1979_v6 = vpop.f32.mrb[243].mxu0  ;;  %2453 = vmatmul.mubr.bf16.gmra.mrb[228].mxu1 %v2194_v38 }
 0x377   : > { %v2069_v14 = vpack.c.bf16 %v1979_v6, %v1975_v43 }
 0x378   : > { %v2132_v41 = vadd.bf16 %v2068_v62, %v9704_v21 }
 0x379   : > { %v2133_v34 = vadd.bf16 %v2069_v14, %v9707_v24 }
 0x37a   : > { %v2196_v26 = vmax.bf16 %v12540_v0, %v2132_v41 }
 0x37b   : > { %v1983_v47 = vpop.f32.mrb[244].mxu0  ;;  %v2197_v4 = vmax.bf16 %v12540_v0, %v2133_v34 }
 0x37c   : > { %v1985_v50 = vpop.f32.mrb[245].mxu0 }
 0x37d   : > { %v1987_v30 = vpop.f32.mrb[246].mxu0  ;;  %2460 = vmatprep.mubr.bf16.mxu1 %v2197_v4 }
 0x37e   : > { %v2070_v15 = vpack.c.bf16 %v1987_v30, %v1983_v47  ;;  %v1989_v1 = vpop.f32.mrb[247].mxu0  ;;  %2461 = vmatmul.mubr.bf16.gmra.mrb[232].mxu1 %v2196_v26  ;;  %v10289_v47 = vld [vmem:[%s12506_s5] ss:$0 sm:$0xff] }
 0x37f   : > { %v2071_v59 = vpack.c.bf16 %v1989_v1, %v1985_v50 }
 0x380   : > { %v2134_v48 = vadd.bf16 %v2070_v15, %v9704_v21 }
 0x381   : > { %v2135_v43 = vadd.bf16 %v2071_v59, %v9707_v24  ;;  %v2254_v38 = vpop.f32.mrb[128].mxu1 }
 0x382   : > { %v2497_v60 = vsub.f32 %v9984_v57, %v2254_v38  ;;  %v2256_v62 = vpop.f32.mrb[129].mxu1  ;;  %v2198_v6 = vmax.bf16 %v12540_v0, %v2134_v48 }
 0x383   : > { %v1993_v14 = vpop.f32.mrb[248].mxu0  ;;  %v2257_v41 = vpop.f32.mrb[130].mxu1  ;;  %v2199_v34 = vmax.bf16 %v12540_v0, %v2135_v43 }
 0x384   : > { %v2561_v26 = vand.u32 2147483647, %v2497_v60  ;;  %v2498_v4 = vsub.f32 %v9989_v63, %v2257_v41  ;;  %v1995_v50 = vpop.f32.mrb[249].mxu0  ;;  %v2259_v30 = vpop.f32.mrb[131].mxu1 }
 0x385   : > { %v1997_v15 = vpop.f32.mrb[250].mxu0  ;;  %2468 = vmatprep.mubr.bf16.mxu1 %v2199_v34  ;;  %v12646_v34 = vmov 0  }
 0x386   : > { %v2562_v57 = vand.u32 2147483647, %v2498_v4  ;;  %v2072_v1 = vpack.c.bf16 %v1997_v15, %v1993_v14  ;;  %v1999_v59 = vpop.f32.mrb[251].mxu0  ;;  %2469 = vmatmul.mubr.bf16.gmra.mrb[236].mxu1 %v2198_v6  ;;  %v2632_v48 = vmul.f32 %v10289_v47, %v2561_v26 }
 0x387   : > { %v2073_v38 = vpack.c.bf16 %v1999_v59, %v1995_v50 }
 0x388   : > { %v2136_v43 = vadd.bf16 %v2072_v1, %v9704_v21  ;;  %2700 = vadd.xlane.f32.xlu0 %v2632_v48  ;;  %v2633_v62 = vmul.f32 %v10289_v47, %v2562_v57 }
 0x389   : > { %v2137_v60 = vadd.bf16 %v2073_v38, %v9707_v24  ;;  %v2262_v0 = vpop.f32.mrb[132].mxu1 }
 0x38a   : > { %v2499_v63 = vsub.f32 %v9995_v7, %v2262_v0  ;;  %2702 = vadd.xlane.f32.xlu1 %v2633_v62  ;;  %v2264_v41 = vpop.f32.mrb[133].mxu1  ;;  %v2200_v4 = vmax.bf16 %v12646_v34, %v2136_v43 }
 0x38b   : > { %v2003_v14 = vpop.f32.mrb[252].mxu0  ;;  %v2265_v30 = vpop.f32.mrb[134].mxu1  ;;  %v2201_v6 = vmax.bf16 %v12646_v34, %v2137_v60 }
 0x38c   : > { %v2563_v26 = vand.u32 2147483647, %v2499_v63  ;;  %v2500_v50 = vsub.f32 %v10000_v31, %v2265_v30  ;;  %v2005_v15 = vpop.f32.mrb[253].mxu0  ;;  %v2267_v1 = vpop.f32.mrb[135].mxu1 }
 0x38d   : > { %v2007_v59 = vpop.f32.mrb[254].mxu0  ;;  %2476 = vmatprep.mubr.bf16.mxu1 %v2201_v6 }
 0x38e   : > { %v2564_v57 = vand.u32 2147483647, %v2500_v50  ;;  %v2074_v48 = vpack.c.bf16 %v2007_v59, %v2003_v14  ;;  %v2009_v38 = vpop.f32.mrb[255].mxu0  ;;  %2477 = vmatmul.mubr.bf16.gmra.mrb[240].mxu1 %v2200_v4  ;;  %v2634_v0 = vmul.f32 %v10289_v47, %v2563_v26 }
 0x38f   : > { %v2075_v7 = vpack.c.bf16 %v2009_v38, %v2005_v15 }
 0x390   : > { %v2138_v43 = vadd.bf16 %v2074_v48, %v9704_v21  ;;  %2704 = vadd.xlane.f32.xlu0 %v2634_v0  ;;  %v2635_v62 = vmul.f32 %v10289_v47, %v2564_v57 }
 0x391   : > { %v2139_v60 = vadd.bf16 %v2075_v7, %v9707_v24  ;;  %v2270_v63 = vpop.f32.mrb[136].mxu1 }
 0x392   : > { %v2501_v31 = vsub.f32 %v10006_v32, %v2270_v63  ;;  %2706 = vadd.xlane.f32.xlu1 %v2635_v62  ;;  %v2272_v41 = vpop.f32.mrb[137].mxu1  ;;  %v2202_v30 = vmax.bf16 %v12646_v34, %v2138_v43 }
 0x393   : > { %v2238_v14 = vpop.f32.mrb[0].mxu0  ;;  %v2273_v6 = vpop.f32.mrb[138].mxu1  ;;  %v2203_v4 = vmax.bf16 %v12646_v34, %v2139_v60 }
 0x394   : > { %v2565_v26 = vand.u32 2147483647, %v2501_v31  ;;  %v2493_v50 = vsub.f32 %v9962_v19, %v2238_v14  ;;  %v2502_v21 = vsub.f32 %v10011_v37, %v2273_v6  ;;  %v2240_v15 = vpop.f32.mrb[1].mxu0  ;;  %v2275_v1 = vpop.f32.mrb[139].mxu1 }
 0x395   : > { %v2241_v59 = vpop.f32.mrb[2].mxu0  ;;  %2484 = vmatprep.mubr.bf16.mxu1 %v2203_v4 }
 0x396   : > { %v2557_v24 = vand.u32 2147483647, %v2493_v50  ;;  %v2566_v57 = vand.u32 2147483647, %v2502_v21  ;;  %v2494_v32 = vsub.f32 %v9967_v25, %v2241_v59  ;;  %v2243_v48 = vpop.f32.mrb[3].mxu0  ;;  %2485 = vmatmul.mubr.bf16.gmra.mrb[244].mxu1 %v2202_v30  ;;  %v2636_v38 = vmul.f32 %v10289_v47, %v2565_v26 }
 0x398   : > { %2708 = vadd.xlane.f32.xlu0 %v2636_v38  ;;  %v2637_v34 = vmul.f32 %v10289_v47, %v2566_v57  ;;  %v2558_v7 = vand.u32 2147483647, %v2494_v32  ;;  %v2628_v43 = vmul.f32 %v10289_v47, %v2557_v24 }
 0x399   : > { %v2278_v0 = vpop.f32.mrb[140].mxu1 }
 0x39a   : > { %v2503_v19 = vsub.f32 %v10024_v61, %v2278_v0  ;;  %2710 = vadd.xlane.f32.xlu1 %v2637_v34  ;;  %v2280_v37 = vpop.f32.mrb[141].mxu1  ;;  %v2629_v61 = vmul.f32 %v10289_v47, %v2558_v7 }
 0x39b   : > { %v2246_v62 = vpop.f32.mrb[4].mxu0  ;;  %v2281_v60 = vpop.f32.mrb[142].mxu1 }
 0x39c   : > { %v2495_v63 = vsub.f32 %v9973_v56, %v2246_v62  ;;  %v2504_v25 = vsub.f32 %v10029_v2, %v2281_v60  ;;  %v2248_v31 = vpop.f32.mrb[5].mxu0  ;;  %2692 = vadd.xlane.f32.xlu0 %v2628_v43  ;;  %v2283_v41 = vpop.f32.mrb[143].mxu1  ;;  %v2567_v14 = vand.u32 2147483647, %v2503_v19 }
 0x39d   : > { %v2249_v30 = vpop.f32.mrb[6].mxu0 }
 0x39e   : > { %v2559_v6 = vand.u32 2147483647, %v2495_v63  ;;  %v2496_v4 = vsub.f32 %v9978_v58, %v2249_v30  ;;  %v2251_v26 = vpop.f32.mrb[7].mxu0  ;;  %v2568_v50 = vand.u32 2147483647, %v2504_v25  ;;  %v2638_v1 = vmul.f32 %v10289_v47, %v2567_v14 }
 0x3a0   : > { %2694 = vadd.xlane.f32.xlu0 %v2629_v61  ;;  %v2630_v21 = vmul.f32 %v10289_v47, %v2559_v6  ;;  %v2560_v24 = vand.u32 2147483647, %v2496_v4  ;;  %v2639_v48 = vmul.f32 %v10289_v47, %v2568_v50 }
 0x3a1   : > { %v2286_v15 = vpop.f32.mrb[144].mxu1 }
 0x3a2   : > { %v2505_v56 = vsub.f32 %v10043_v10, %v2286_v15  ;;  %2696 = vadd.xlane.f32.xlu1 %v2630_v21  ;;  %v2288_v2 = vpop.f32.mrb[145].mxu1  ;;  %v2631_v10 = vmul.f32 %v10289_v47, %v2560_v24 }
 0x3a3   : > { %v2289_v59 = vpop.f32.mrb[146].mxu1 }
 0x3a4   : > { %v2569_v57 = vand.u32 2147483647, %v2505_v56  ;;  %v2506_v32 = vsub.f32 %v10048_v13, %v2289_v59  ;;  %2712 = vadd.xlane.f32.xlu0 %v2638_v1  ;;  %v2291_v58 = vpop.f32.mrb[147].mxu1 }
 0x3a6   : > { %2714 = vadd.xlane.f32.xlu1 %v2639_v48  ;;  %v2640_v38 = vmul.f32 %v10289_v47, %v2569_v57  ;;  %v2570_v34 = vand.u32 2147483647, %v2506_v32 }
 0x3a8   : > { %2716 = vadd.xlane.f32.xlu0 %v2640_v38  ;;  %v2641_v60 = vmul.f32 %v10289_v47, %v2570_v34 }
 0x3a9   : > { %v2294_v0 = vpop.f32.mrb[148].mxu1 }
 0x3aa   : > { %v2507_v7 = vsub.f32 %v10052_v33, %v2294_v0  ;;  %2698 = vadd.xlane.f32.xlu1 %v2631_v10  ;;  %v2296_v19 = vpop.f32.mrb[149].mxu1 }
 0x3ab   : > { %v2297_v37 = vpop.f32.mrb[150].mxu1 }
 0x3ac   : > { %v2571_v43 = vand.u32 2147483647, %v2507_v7  ;;  %v2508_v13 = vsub.f32 %v10057_v29, %v2297_v37  ;;  %v2299_v62 = vpop.f32.mrb[151].mxu1 }
 0x3ae   : > { %v2572_v63 = vand.u32 2147483647, %v2508_v13  ;;  %2718 = vadd.xlane.f32.xlu1 %v2641_v60  ;;  %v2642_v25 = vmul.f32 %v10289_v47, %v2571_v43 }
 0x3b0   : > { %2720 = vadd.xlane.f32.xlu0 %v2642_v25  ;;  %v2643_v31 = vmul.f32 %v10289_v47, %v2572_v63 }
 0x3b1   : > { %v2302_v41 = vpop.f32.mrb[152].mxu1 }
 0x3b2   : > { %v2509_v30 = vsub.f32 %v10063_v55, %v2302_v41  ;;  %2722 = vadd.xlane.f32.xlu1 %v2643_v31  ;;  %v2304_v33 = vpop.f32.mrb[153].mxu1 }
 0x3b3   : > { %v2305_v14 = vpop.f32.mrb[154].mxu1 }
 0x3b4   : > { %v2573_v6 = vand.u32 2147483647, %v2509_v30  ;;  %v2510_v4 = vsub.f32 %v10069_v12, %v2305_v14  ;;  %v2307_v29 = vpop.f32.mrb[155].mxu1 }
 0x3b6   : > { %v2574_v26 = vand.u32 2147483647, %v2510_v4  ;;  %v2644_v61 = vmul.f32 %v10289_v47, %v2573_v6 }
 0x3b8   : > { %2724 = vadd.xlane.f32.xlu0 %v2644_v61  ;;  %v2645_v50 = vmul.f32 %v10289_v47, %v2574_v26 }
 0x3b9   : > { %v2310_v21 = vpop.f32.mrb[156].mxu1 }
 0x3ba   : > { %v2511_v15 = vsub.f32 %v10076_v28, %v2310_v21  ;;  %2726 = vadd.xlane.f32.xlu1 %v2645_v50  ;;  %v2312_v56 = vpop.f32.mrb[157].mxu1 }
 0x3bb   : > { %v2313_v2 = vpop.f32.mrb[158].mxu1 }
 0x3bc   : > { %v2575_v55 = vand.u32 2147483647, %v2511_v15  ;;  %v2512_v1 = vsub.f32 %v10086_v35, %v2313_v2  ;;  %v2315_v59 = vpop.f32.mrb[159].mxu1 }
 0x3be   : > { %v2576_v24 = vand.u32 2147483647, %v2512_v1  ;;  %v2646_v12 = vmul.f32 %v10289_v47, %v2575_v55 }
 0x3c0   : > { %2728 = vadd.xlane.f32.xlu0 %v2646_v12  ;;  %v2647_v57 = vmul.f32 %v10289_v47, %v2576_v24 }
 0x3c1   : > { %v2318_v32 = vpop.f32.mrb[160].mxu1 }
 0x3c2   : > { %v2513_v58 = vsub.f32 %v10094_v54, %v2318_v32  ;;  %2730 = vadd.xlane.f32.xlu1 %v2647_v57  ;;  %v2320_v48 = vpop.f32.mrb[161].mxu1 }
 0x3c3   : > { %v2321_v38 = vpop.f32.mrb[162].mxu1 }
 0x3c4   : > { %v2577_v28 = vand.u32 2147483647, %v2513_v58  ;;  %v2514_v34 = vsub.f32 %v10100_v11, %v2321_v38  ;;  %v2323_v10 = vpop.f32.mrb[163].mxu1 }
 0x3c6   : > { %v2578_v0 = vand.u32 2147483647, %v2514_v34  ;;  %v2648_v35 = vmul.f32 %v10289_v47, %v2577_v28 }
 0x3c8   : > { %2732 = vadd.xlane.f32.xlu0 %v2648_v35  ;;  %v2649_v7 = vmul.f32 %v10289_v47, %v2578_v0 }
 0x3c9   : > { %v2326_v19 = vpop.f32.mrb[164].mxu1 }
 0x3ca   : > { %v2515_v37 = vsub.f32 %v10107_v8, %v2326_v19  ;;  %2734 = vadd.xlane.f32.xlu1 %v2649_v7  ;;  %v2328_v43 = vpop.f32.mrb[165].mxu1 }
 0x3cb   : > { %v2329_v13 = vpop.f32.mrb[166].mxu1 }
 0x3cc   : > { %v2579_v54 = vand.u32 2147483647, %v2515_v37  ;;  %v2516_v62 = vsub.f32 %v10109_v27, %v2329_v13  ;;  %v2331_v60 = vpop.f32.mrb[167].mxu1 }
 0x3ce   : > { %v2580_v63 = vand.u32 2147483647, %v2516_v62  ;;  %v2650_v11 = vmul.f32 %v10289_v47, %v2579_v54 }
 0x3d0   : > { %2736 = vadd.xlane.f32.xlu0 %v2650_v11  ;;  %v2651_v25 = vmul.f32 %v10289_v47, %v2580_v63 }
 0x3d1   : > { %v2334_v31 = vpop.f32.mrb[168].mxu1 }
 0x3d2   : > { %v2517_v41 = vsub.f32 %v10115_v39, %v2334_v31  ;;  %2738 = vadd.xlane.f32.xlu1 %v2651_v25  ;;  %v2336_v30 = vpop.f32.mrb[169].mxu1 }
 0x3d3   : > { %v2337_v33 = vpop.f32.mrb[170].mxu1 }
 0x3d4   : > { %v2581_v8 = vand.u32 2147483647, %v2517_v41  ;;  %v2518_v14 = vsub.f32 %v10117_v49, %v2337_v33  ;;  %v2339_v6 = vpop.f32.mrb[171].mxu1 }
 0x3d6   : > { %v2582_v4 = vand.u32 2147483647, %v2518_v14  ;;  %v2652_v27 = vmul.f32 %v10289_v47, %v2581_v8 }
 0x3d8   : > { %2740 = vadd.xlane.f32.xlu0 %v2652_v27  ;;  %v2653_v29 = vmul.f32 %v10289_v47, %v2582_v4 }
 0x3d9   : > { %v2342_v26 = vpop.f32.mrb[172].mxu1 }
 0x3da   : > { %v2519_v61 = vsub.f32 %v10123_v18, %v2342_v26  ;;  %2742 = vadd.xlane.f32.xlu1 %v2653_v29  ;;  %v2344_v50 = vpop.f32.mrb[173].mxu1 }
 0x3db   : > { %v2345_v21 = vpop.f32.mrb[174].mxu1 }
 0x3dc   : > { %v2583_v39 = vand.u32 2147483647, %v2519_v61  ;;  %v2520_v15 = vsub.f32 %v10125_v22, %v2345_v21  ;;  %v2347_v56 = vpop.f32.mrb[175].mxu1 }
 0x3de   : > { %v2584_v2 = vand.u32 2147483647, %v2520_v15  ;;  %v2654_v49 = vmul.f32 %v10289_v47, %v2583_v39 }
 0x3e0   : > { %2744 = vadd.xlane.f32.xlu0 %v2654_v49  ;;  %v2655_v55 = vmul.f32 %v10289_v47, %v2584_v2 }
 0x3e1   : > { %v2350_v1 = vpop.f32.mrb[176].mxu1 }
 0x3e2   : > { %v2521_v59 = vsub.f32 %v10131_v42, %v2350_v1  ;;  %2746 = vadd.xlane.f32.xlu1 %v2655_v55  ;;  %v2352_v24 = vpop.f32.mrb[177].mxu1 }
 0x3e3   : > { %v2353_v12 = vpop.f32.mrb[178].mxu1 }
 0x3e4   : > { %v2585_v18 = vand.u32 2147483647, %v2521_v59  ;;  %v2522_v57 = vsub.f32 %v10133_v44, %v2353_v12  ;;  %v2355_v32 = vpop.f32.mrb[179].mxu1 }
 0x3e5   : > { %v10379_v32 = vstv %s2820_s17 }
 0x3e6   : > { %v2586_v58 = vand.u32 2147483647, %v2522_v57  ;;  %v2656_v22 = vmul.f32 %v10289_v47, %v2585_v18 }
 0x3e8   : > { %2748 = vadd.xlane.f32.xlu0 %v2656_v22  ;;  %v2657_v48 = vmul.f32 %v10289_v47, %v2586_v58 }
 0x3e9   : > { %v2358_v38 = vpop.f32.mrb[180].mxu1 }
 0x3ea   : > { %v2523_v28 = vsub.f32 %v10139_v16, %v2358_v38  ;;  %2750 = vadd.xlane.f32.xlu1 %v2657_v48  ;;  %v2360_v34 = vpop.f32.mrb[181].mxu1 }
 0x3eb   : > { %v2361_v10 = vpop.f32.mrb[182].mxu1 }
 0x3ec   : > { %v2587_v42 = vand.u32 2147483647, %v2523_v28  ;;  %v2524_v0 = vsub.f32 %v10141_v17, %v2361_v10  ;;  %v2363_v35 = vpop.f32.mrb[183].mxu1  ;;  %v10385_v10 = vsub.s32 1, %v9684_v3 }
 0x3ed   : > { %v10394_v35 = vsub.s32 4, %v9684_v3 }
 0x3ee   : > { %v2588_v7 = vand.u32 2147483647, %v2524_v0  ;;  %v2658_v44 = vmul.f32 %v10289_v47, %v2587_v42  ;;  %v10391_v0 = vsub.s32 3, %v9684_v3 }
 0x3ef   : > { %12649 = vst [vmem:[#allocation42_spill] sm:$0xff] %v10394_v35 }
 0x3f0   : > { %2752 = vadd.xlane.f32.xlu0 %v2658_v44  ;;  %v2659_v19 = vmul.f32 %v10289_v47, %v2588_v7  ;;  %12648 = vst [vmem:[#allocation41_spill] sm:$0xff] %v10391_v0  ;;  %v10401_v44 = vsub.s32 6, %v9684_v3 }
 0x3f1   : > { %v2366_v37 = vpop.f32.mrb[184].mxu1 }
 0x3f2   : > { %v2525_v43 = vsub.f32 %v10147_v40, %v2366_v37  ;;  %2754 = vadd.xlane.f32.xlu1 %v2659_v19  ;;  %v2368_v13 = vpop.f32.mrb[185].mxu1  ;;  %12651 = vst [vmem:[#allocation44_spill] sm:$0xff] %v10401_v44  ;;  %v10404_v19 = vsub.s32 7, %v9684_v3 }
 0x3f3   : > { %v2369_v54 = vpop.f32.mrb[186].mxu1 }
 0x3f4   : > { %v2589_v16 = vand.u32 2147483647, %v2525_v43  ;;  %v2526_v62 = vsub.f32 %v10149_v45, %v2369_v54  ;;  %v2371_v60 = vpop.f32.mrb[187].mxu1 }
 0x3f6   : > { %v2590_v63 = vand.u32 2147483647, %v2526_v62  ;;  %v2660_v17 = vmul.f32 %v10289_v47, %v2589_v16  ;;  %v12652_v16 = vld [vmem:[#allocation18_spill] sm:$0xff] }
 0x3f8   : > { %2756 = vadd.xlane.f32.xlu0 %v2660_v17  ;;  %v2661_v11 = vmul.f32 %v10289_v47, %v2590_v63 }
 0x3f9   : > { %v2374_v25 = vpop.f32.mrb[188].mxu1 }
 0x3fa   : > { %v2527_v31 = vsub.f32 %v10155_v20, %v2374_v25  ;;  %2758 = vadd.xlane.f32.xlu1 %v2661_v11  ;;  %v2376_v41 = vpop.f32.mrb[189].mxu1 }
 0x3fb   : > { %v2377_v30 = vpop.f32.mrb[190].mxu1 }
 0x3fc   : > { %v2591_v40 = vand.u32 2147483647, %v2527_v31  ;;  %v2528_v33 = vsub.f32 %v10157_v51, %v2377_v30  ;;  %v2379_v8 = vpop.f32.mrb[191].mxu1  ;;  %v12653_v30 = vld [vmem:[#allocation19_spill] sm:$0xff] }
 0x3fe   : > { %v2592_v14 = vand.u32 2147483647, %v2528_v33  ;;  %v2662_v45 = vmul.f32 %v10289_v47, %v2591_v40 }
 0x400   : > { %2760 = vadd.xlane.f32.xlu0 %v2662_v45  ;;  %v2663_v6 = vmul.f32 %v10289_v47, %v2592_v14 }
 0x401   : > { %v2382_v4 = vpop.f32.mrb[192].mxu1 }
 0x402   : > { %v2529_v27 = vsub.f32 %v10163_v52, %v2382_v4  ;;  %2762 = vadd.xlane.f32.xlu1 %v2663_v6  ;;  %v2384_v29 = vpop.f32.mrb[193].mxu1 }
 0x403   : > { %v2385_v26 = vpop.f32.mrb[194].mxu1 }
 0x404   : > { %v2593_v20 = vand.u32 2147483647, %v2529_v27  ;;  %v2530_v61 = vsub.f32 %v10165_v9, %v2385_v26  ;;  %v2387_v50 = vpop.f32.mrb[195].mxu1 }
 0x406   : > { %v2594_v21 = vand.u32 2147483647, %v2530_v61  ;;  %v2664_v51 = vmul.f32 %v10289_v47, %v2593_v20 }
 0x408   : > { %2764 = vadd.xlane.f32.xlu0 %v2664_v51  ;;  %v2665_v39 = vmul.f32 %v10289_v47, %v2594_v21 }
 0x409   : > { %v2390_v15 = vpop.f32.mrb[196].mxu1 }
 0x40a   : > { %v2531_v56 = vsub.f32 %v10171_v53, %v2390_v15  ;;  %2766 = vadd.xlane.f32.xlu1 %v2665_v39  ;;  %v2392_v2 = vpop.f32.mrb[197].mxu1 }
 0x40b   : > { %v2393_v49 = vpop.f32.mrb[198].mxu1 }
 0x40c   : > { %v2595_v52 = vand.u32 2147483647, %v2531_v56  ;;  %v2532_v55 = vsub.f32 %v10173_v36, %v2393_v49  ;;  %v2395_v1 = vpop.f32.mrb[199].mxu1 }
 0x40e   : > { %v2596_v59 = vand.u32 2147483647, %v2532_v55  ;;  %v2666_v9 = vmul.f32 %v10289_v47, %v2595_v52  ;;  %v12654_v52 = vld [vmem:[#allocation20_spill] sm:$0xff] }
 0x410   : > { %2768 = vadd.xlane.f32.xlu0 %v2666_v9  ;;  %v2667_v24 = vmul.f32 %v10289_v47, %v2596_v59  ;;  %v12655_v9 = vld [vmem:[#allocation17_spill] sm:$0xff] }
 0x411   : > { %v2398_v12 = vpop.f32.mrb[200].mxu1 }
 0x412   : > { %v2533_v18 = vsub.f32 %v10179_v23, %v2398_v12  ;;  %2770 = vadd.xlane.f32.xlu1 %v2667_v24  ;;  %v2400_v57 = vpop.f32.mrb[201].mxu1  ;;  %v10388_v23 = vsub.s32 2, %v9684_v3 }
 0x413   : > { %v2401_v53 = vpop.f32.mrb[202].mxu1  ;;  %v12656_v57 = vld [vmem:[#allocation21_spill] sm:$0xff] }
 0x414   : > { %v2597_v58 = vand.u32 2147483647, %v2533_v18  ;;  %v2534_v22 = vsub.f32 %v10181_v5, %v2401_v53  ;;  %v2403_v48 = vpop.f32.mrb[203].mxu1  ;;  %12647 = vst [vmem:[#allocation40_spill] sm:$0xff] %v10388_v23  ;;  %v10397_v5 = vsub.s32 5, %v9684_v3 }
 0x415   : > { %v2701_v36 = vpop.xlane.xlu0 %2700 }
 0x416   : > { %v2598_v38 = vand.u32 2147483647, %v2534_v22  ;;  %v2826_v28 = vadd.f32 %v10379_v32, %v2701_v36  ;;  %v2668_v34 = vmul.f32 %v10289_v47, %v2597_v58  ;;  %12650 = vst [vmem:[#allocation43_spill] sm:$0xff] %v10397_v5 }
 0x417   : > { %v2703_v42 = vpop.xlane.xlu1 %2702 }
 0x418   : > { %2772 = vadd.xlane.f32.xlu0 %v2668_v34  ;;  %v2669_v7 = vmul.f32 %v10289_v47, %v2598_v38  ;;  %v2827_v43 = vadd.f32 %v10379_v32, %v2703_v42  ;;  %v3081_v62 = vrot.slane %v2826_v28, %v12652_v16  ;;  %v3085_v60 = vrot.slane %v2826_v28, %v10385_v10 }
 0x419   : > { %v2406_v37 = vpop.f32.mrb[204].mxu1  ;;  %v3089_v17 = vrot.slane %v2826_v28, %v10388_v23  ;;  %v3093_v11 = vrot.slane %v2826_v28, %v10391_v0  ;;  %v3097_v25 = vrot.slane %v2826_v28, %v10394_v35  ;;  %v3101_v31 = vrot.slane %v2826_v28, %v10397_v5 }
 0x41a   : > { %v2535_v13 = vsub.f32 %v10187_v46, %v2406_v37  ;;  %2774 = vadd.xlane.f32.xlu1 %v2669_v7  ;;  %v2408_v54 = vpop.f32.mrb[205].mxu1  ;;  %v3105_v46 = vrot.slane %v2826_v28, %v10401_v44  ;;  %v3109_v8 = vrot.slane %v2826_v28, %v10404_v19  ;;  %v5194_v6 = vcombine.low %v3081_v62, %v3085_v60 }
 0x41b   : > { %v2409_v63 = vpop.f32.mrb[206].mxu1  ;;  %v5195_v4 = vcombine.low %v3089_v17, %v3093_v11  ;;  %v5196_v27 = vcombine.low %v3097_v25, %v3101_v31  ;;  %v3113_v29 = vrot.slane %v2827_v43, %v12652_v16  ;;  %v3117_v26 = vrot.slane %v2827_v43, %v10385_v10 }
 0x41c   : > { %v2599_v41 = vand.u32 2147483647, %v2535_v13  ;;  %v2536_v40 = vsub.f32 %v12653_v30, %v2409_v63  ;;  %v2411_v33 = vpop.f32.mrb[207].mxu1  ;;  %v5197_v61 = vcombine.low %v3105_v46, %v3109_v8  ;;  %v3121_v50 = vrot.slane %v2827_v43, %v10388_v23  ;;  %v12658_v8 = vld [vmem:[#allocation23_spill] sm:$0xff] }
 0x41d   : > { %v3125_v21 = vrot.slane %v2827_v43, %v10391_v0  ;;  %v10423_v51 = vpop.xlane.xlu0 %2704  ;;  %v3129_v15 = vrot.slane %v2827_v43, %v10394_v35  ;;  %v3133_v56 = vrot.slane %v2827_v43, %v10397_v5  ;;  %v3137_v2 = vrot.slane %v2827_v43, %v10401_v44 }
 0x41e   : > { %v2600_v14 = vand.u32 2147483647, %v2536_v40  ;;  %v2670_v45 = vmul.f32 %v10289_v47, %v2599_v41  ;;  %v3141_v49 = vrot.slane %v2827_v43, %v10404_v19  ;;  %v5204_v24 = vrot.slane %v5194_v6, %v12655_v9  ;;  %v12657_v41 = vld [vmem:[#allocation22_spill] sm:$0xff] }
 0x41f   : > { %v5211_v12 = vrot.slane %v5195_v4, %v12655_v9  ;;  %v5218_v22 = vrot.slane %v5196_v27, %v12655_v9  ;;  %v5225_v48 = vrot.slane %v5197_v61, %v12655_v9  ;;  %v5243_v38 = vcombine.low %v3113_v29, %v3117_v26  ;;  %v10440_v7 = vpop.xlane.xlu1 %2706 }
 0x420   : > { %2776 = vadd.xlane.f32.xlu0 %v2670_v45  ;;  %v2671_v20 = vmul.f32 %v10289_v47, %v2600_v14  ;;  %v5244_v28 = vcombine.low %v3121_v50, %v3125_v21  ;;  %v5245_v34 = vcombine.low %v3129_v15, %v3133_v56  ;;  %v5246_v42 = vcombine.low %v3137_v2, %v3141_v49 }
 0x421   : > { %v2414_v39 = vpop.f32.mrb[208].mxu1  ;;  %v5226_v43 = vcombine.low %v5204_v24, %v5211_v12  ;;  %v5227_v13 = vcombine.low %v5218_v22, %v5225_v48  ;;  %v5253_v60 = vrot.slane %v5243_v38, %v12655_v9 }
 0x422   : > { %v2537_v55 = vsub.f32 %v12654_v52, %v2414_v39  ;;  %2778 = vadd.xlane.f32.xlu1 %v2671_v20  ;;  %v2416_v1 = vpop.f32.mrb[209].mxu1  ;;  %v5260_v63 = vrot.slane %v5244_v28, %v12655_v9  ;;  %v5267_v17 = vrot.slane %v5245_v34, %v12655_v9  ;;  %v5274_v11 = vrot.slane %v5246_v42, %v12655_v9 }
 0x423   : > { %v10430_v59 = vpop.f32.mrb[210].mxu1  ;;  %v5234_v6 = vrot.slane %v5226_v43, %v12655_v9  ;;  %v5241_v4 = vrot.slane %v5227_v13, %v12655_v9 }
 0x424   : > { %v2601_v18 = vand.u32 2147483647, %v2537_v55  ;;  %v2538_v53 = vsub.f32 %v12656_v57, %v10430_v59  ;;  %v2419_v58 = vpop.f32.mrb[211].mxu1  ;;  %v5275_v29 = vcombine.low %v5253_v60, %v5260_v63  ;;  %v5276_v26 = vcombine.low %v5267_v17, %v5274_v11 }
 0x425   : > { %v10438_v36 = vpop.xlane.xlu0 %2708  ;;  %v5242_v52 = vcombine.low %v5234_v6, %v5241_v4  ;;  %v12659_v58 = vld [vmem:[#allocation24_spill] sm:$0xff] }
 0x426   : > { %v2672_v37 = vmul.f32 %v10289_v47, %v2601_v18  ;;  %v5283_v1 = vrot.slane %v5275_v29, %v12655_v9  ;;  %v5290_v24 = vrot.slane %v5276_v26, %v12655_v9 }
 0x427   : > { %v2711_v25 = vpop.xlane.xlu1 %2710 }
 0x428   : > { %2780 = vadd.xlane.f32.xlu0 %v2672_v37  ;;  %v2831_v27 = vadd.f32 %v10379_v32, %v2711_v25 }
 0x429   : > { %v2693_v54 = vpop.xlane.xlu0 %2692  ;;  %v2422_v62 = vpop.f32.mrb[212].mxu1 }
 0x42a   : > { %v2822_v31 = vadd.f32 %v10379_v32, %v2693_v54  ;;  %v2539_v30 = vsub.f32 %v12657_v41, %v2422_v62  ;;  %v2424_v40 = vpop.f32.mrb[213].mxu1  ;;  %v3241_v12 = vrot.slane %v2831_v27, %v12652_v16  ;;  %v3245_v18 = vrot.slane %v2831_v27, %v10385_v10  ;;  %v12660_v62 = vld [vmem:[#allocation25_spill] sm:$0xff] }
 0x42b   : > { %v10449_v33 = vpop.f32.mrb[214].mxu1  ;;  %v3249_v28 = vrot.slane %v2831_v27, %v10388_v23  ;;  %v3253_v34 = vrot.slane %v2831_v27, %v10391_v0  ;;  %v3257_v54 = vrot.slane %v2831_v27, %v10394_v35  ;;  %v3261_v17 = vrot.slane %v2831_v27, %v10397_v5 }
 0x42c   : > { %v2603_v46 = vand.u32 2147483647, %v2539_v30  ;;  %v2427_v45 = vpop.f32.mrb[215].mxu1  ;;  %v2953_v20 = vrot.slane %v2822_v31, %v12652_v16  ;;  %v2957_v50 = vrot.slane %v2822_v31, %v10385_v10  ;;  %v2961_v21 = vrot.slane %v2822_v31, %v10388_v23 }
 0x42d   : > { %v2965_v39 = vrot.slane %v2822_v31, %v10391_v0  ;;  %v2969_v15 = vrot.slane %v2822_v31, %v10394_v35  ;;  %v2973_v56 = vrot.slane %v2822_v31, %v10397_v5  ;;  %v2977_v2 = vrot.slane %v2822_v31, %v10401_v44 }
 0x42e   : > { %v2674_v61 = vmul.f32 %v10289_v47, %v2603_v46  ;;  %v2981_v49 = vrot.slane %v2822_v31, %v10404_v19  ;;  %v4998_v38 = vcombine.low %v2953_v20, %v2957_v50  ;;  %v3265_v11 = vrot.slane %v2831_v27, %v10401_v44  ;;  %v12661_v20 = vld [vmem:[#allocation26_spill] sm:$0xff] }
 0x42f   : > { %v4999_v37 = vcombine.low %v2961_v21, %v2965_v39  ;;  %v5000_v43 = vcombine.low %v2969_v15, %v2973_v56  ;;  %v3269_v25 = vrot.slane %v2831_v27, %v10404_v19  ;;  %v5291_v31 = vcombine.low %v5283_v1, %v5290_v24  ;;  %v12662_v56 = vld [vmem:[#allocation27_spill] sm:$0xff] }
 0x430   : > { %2784 = vadd.xlane.f32.xlu0 %v2674_v61  ;;  %v5001_v13 = vcombine.low %v2977_v2, %v2981_v49  ;;  %v5008_v41 = vrot.slane %v4998_v38, %v12655_v9  ;;  %v5439_v45 = vcombine.low %v3241_v12, %v3245_v18  ;;  %v5440_v6 = vcombine.low %v3249_v28, %v3253_v34  ;;  %v12663_v34 = vld [vmem:[#allocation28_spill] sm:$0xff] }
 0x431   : > { %v10465_v55 = vpop.f32.mrb[216].mxu1  ;;  %v5015_v30 = vrot.slane %v4999_v37, %v12655_v9  ;;  %v5022_v40 = vrot.slane %v5000_v43, %v12655_v9  ;;  %v5441_v4 = vcombine.low %v3257_v54, %v3261_v17  ;;  %v5442_v29 = vcombine.low %v3265_v11, %v3269_v25  ;;  %v12664_v54 = vld [vmem:[#allocation29_spill] sm:$0xff] }
 0x432   : > { %v2432_v48 = vpop.f32.mrb[217].mxu1  ;;  %v5029_v46 = vrot.slane %v5001_v13, %v12655_v9  ;;  %v5449_v15 = vrot.slane %v5439_v45, %v12655_v9 }
 0x433   : > { %8147 = vperm.xlu1 %9000, %v5242_v52   ;;  %v10475_v42 = vpop.f32.mrb[218].mxu1  ;;  %v5030_v21 = vcombine.low %v5008_v41, %v5015_v30  ;;  %v5456_v52 = vrot.slane %v5440_v6, %v12655_v9  ;;  %v5463_v1 = vrot.slane %v5441_v4, %v12655_v9  ;;  %v5470_v24 = vrot.slane %v5442_v29, %v12655_v9  ;;  %v12666_v4 = vld [vmem:[#allocation31_spill] sm:$0xff] }
 0x434   : > { %v2435_v63 = vpop.f32.mrb[219].mxu1  ;;  %v5031_v39 = vcombine.low %v5022_v40, %v5029_v46  ;;  %v12665_v40 = vld [vmem:[#allocation30_spill] sm:$0xff] }
 0x435   : > { %v5038_v12 = vrot.slane %v5030_v21, %v12655_v9  ;;  %v5471_v48 = vcombine.low %v5449_v15, %v5456_v52  ;;  %v5472_v38 = vcombine.low %v5463_v1, %v5470_v24  ;;  %v2828_v21 = vadd.f32 %v10379_v32, %v10423_v51 }
 0x436   : > { %v5045_v18 = vrot.slane %v5031_v39, %v12655_v9  ;;  %v2829_v15 = vadd.f32 %v10379_v32, %v10440_v7 }
 0x437   : > { %8150 = vperm.xlu1 %9000, %v5291_v31   ;;  %v5479_v25 = vrot.slane %v5471_v48, %v12655_v9  ;;  %v5486_v31 = vrot.slane %v5472_v38, %v12655_v9  ;;  %v3145_v24 = vrot.slane %v2828_v21, %v12652_v16  ;;  %v3153_v51 = vrot.slane %v2828_v21, %v10388_v23 }
 0x438   : > { %v5046_v17 = vcombine.low %v5038_v12, %v5045_v18  ;;  %v3149_v12 = vrot.slane %v2828_v21, %v10385_v10  ;;  %v2602_v18 = vand.u32 2147483647, %v2538_v53  ;;  %v3157_v38 = vrot.slane %v2828_v21, %v10391_v0 }
 0x439   : > { %v10487_v26 = vpop.f32.mrb[220].mxu1  ;;  %v5487_v41 = vcombine.low %v5479_v25, %v5486_v31  ;;  %v3161_v7 = vrot.slane %v2828_v21, %v10394_v35  ;;  %v3165_v25 = vrot.slane %v2828_v21, %v10397_v5  ;;  %v3169_v31 = vrot.slane %v2828_v21, %v10401_v44 }
 0x43a   : > { %v2440_v27 = vpop.f32.mrb[221].mxu1  ;;  %v2673_v59 = vmul.f32 %v10289_v47, %v2602_v18  ;;  %v5292_v57 = vcombine.low %v3145_v24, %v3149_v12  ;;  %v5293_v53 = vcombine.low %v3153_v51, %v3157_v38  ;;  %v3181_v52 = vrot.slane %v2829_v15, %v10385_v10  ;;  %v10555_v38 = vpop.xlane.xlu1 %2696 }
 0x43b   : > { %v10491_v50 = vpop.f32.mrb[222].mxu1  ;;  %v3193_v63 = vrot.slane %v2829_v15, %v10394_v35  ;;  %v3197_v24 = vrot.slane %v2829_v15, %v10397_v5  ;;  %v3201_v12 = vrot.slane %v2829_v15, %v10401_v44  ;;  %v3205_v51 = vrot.slane %v2829_v15, %v10404_v19 }
 0x43c   : > { %v2443_v49 = vpop.f32.mrb[223].mxu1  ;;  %v5302_v2 = vrot.slane %v5292_v57, %v12655_v9  ;;  %v5309_v46 = vrot.slane %v5293_v53, %v12655_v9 }
 0x43d   : > { %v12667_v49 = vld [vmem:[#allocation32_spill] sm:$0xff]  ;;  %v5344_v14 = vcombine.low %v3201_v12, %v3205_v51 }
 0x43e   : > { %v2715_v22 = vpop.xlane.xlu1 %2714 }
 0x441   : > { %v10501_v28 = vpop.f32.mrb[224].mxu1 }
 0x442   : > { %v2448_v43 = vpop.f32.mrb[225].mxu1 }
 0x443   : > { %v10505_v13 = vpop.f32.mrb[226].mxu1 }
 0x444   : > { %v2451_v11 = vpop.f32.mrb[227].mxu1 }
 0x446   : > { %8135 = vperm.xlu0 %9001, %v5046_v17   ;;  %v3189_v17 = vrot.slane %v2829_v15, %v10391_v0 }
 0x449   : > { %v10511_v30 = vpop.f32.mrb[228].mxu1 }
 0x44a   : > { %8162 = vperm.xlu0 %9001, %v5487_v41   ;;  %v2456_v45 = vpop.f32.mrb[229].mxu1  ;;  %v3173_v41 = vrot.slane %v2828_v21, %v10404_v19  ;;  %v12670_v21 = vld [vmem:[#allocation34_spill] sm:$0xff] }
 0x44b   : > { %v10515_v6 = vpop.f32.mrb[230].mxu1  ;;  %v5294_v45 = vcombine.low %v3161_v7, %v3165_v25 }
 0x44c   : > { %v2459_v27 = vpop.f32.mrb[231].mxu1 }
 0x44d   : > { %v5295_v27 = vcombine.low %v3169_v31, %v3173_v41 }
 0x44f   : > { %v5323_v37 = vrot.slane %v5295_v27, %v12655_v9 }
 0x451   : > { %v10521_v39 = vpop.f32.mrb[232].mxu1 }
 0x452   : > { %v2464_v1 = vpop.f32.mrb[233].mxu1 }
 0x453   : > { %v10532_v48 = vpop.f32.mrb[234].mxu1  ;;  %v3177_v1 = vrot.slane %v2829_v15, %v12652_v16 }
 0x454   : > { %12668 = vst [vmem:[#allocation18_spill] sm:$0xff] %v10532_v48  ;;  %v2467_v11 = vpop.f32.mrb[235].mxu1  ;;  %v5324_v48 = vcombine.low %v5302_v2, %v5309_v46  ;;  %v2833_v2 = vadd.f32 %v10379_v32, %v2715_v22 }
 0x455   : > { %v3185_v11 = vrot.slane %v2829_v15, %v10388_v23  ;;  %v5341_v60 = vcombine.low %v3177_v1, %v3181_v52  ;;  %v5343_v15 = vcombine.low %v3193_v63, %v3197_v24  ;;  %v5372_v52 = vrot.slane %v5344_v14, %v12655_v9 }
 0x456   : > { %v12675_v63 = vsub.f32 %v12659_v58, %v10465_v55  ;;  %v5332_v1 = vrot.slane %v5324_v48, %v12655_v9  ;;  %v3305_v12 = vrot.slane %v2833_v2, %v12652_v16  ;;  %v3309_v55 = vrot.slane %v2833_v2, %v10385_v10 }
 0x457   : > { %v5342_v61 = vcombine.low %v3185_v11, %v3189_v17  ;;  %v5351_v31 = vrot.slane %v5341_v60, %v12655_v9  ;;  %v3313_v58 = vrot.slane %v2833_v2, %v10388_v23  ;;  %v3317_v22 = vrot.slane %v2833_v2, %v10391_v0 }
 0x458   : > { %v2605_v17 = vand.u32 2147483647, %v12675_v63  ;;  %v3325_v48 = vrot.slane %v2833_v2, %v10397_v5 }
 0x459   : > { %v10544_v29 = vpop.f32.mrb[236].mxu1  ;;  %v5358_v53 = vrot.slane %v5342_v61, %v12655_v9  ;;  %v5538_v57 = vcombine.low %v3313_v58, %v3317_v22 }
 0x45a   : > { %v2472_v18 = vpop.f32.mrb[237].mxu1  ;;  %v2676_v14 = vmul.f32 %v10289_v47, %v2605_v17 }
 0x45b   : > { %2782 = vadd.xlane.f32.xlu1 %v2673_v59  ;;  %v10557_v7 = vpop.f32.mrb[238].mxu1  ;;  %v5316_v18 = vrot.slane %v5294_v45, %v12655_v9  ;;  %v5365_v45 = vrot.slane %v5343_v15, %v12655_v9  ;;  %v5373_v11 = vcombine.low %v5351_v31, %v5358_v53  ;;  %v3333_v31 = vrot.slane %v2833_v2, %v10404_v19 }
 0x45c   : > { %12671 = vst [vmem:[#allocation19_spill] sm:$0xff] %v10557_v7  ;;  %v2475_v41 = vpop.f32.mrb[239].mxu1 }
 0x45d   : > { %v5325_v43 = vcombine.low %v5316_v18, %v5323_v37  ;;  %v12674_v41 = vld [vmem:[#allocation36_spill] sm:$0xff]  ;;  %v5374_v24 = vcombine.low %v5365_v45, %v5372_v52  ;;  %v5381_v45 = vrot.slane %v5373_v11, %v12655_v9  ;;  %v5537_v37 = vcombine.low %v3305_v12, %v3309_v55 }
 0x45e   : > { %v2830_v55 = vadd.f32 %v10379_v32, %v10438_v36 }
 0x45f   : > { %v5339_v61 = vrot.slane %v5325_v43, %v12655_v9  ;;  %v3329_v43 = vrot.slane %v2833_v2, %v10401_v44  ;;  %v5388_v52 = vrot.slane %v5374_v24, %v12655_v9 }
 0x460   : > { %v3209_v58 = vrot.slane %v2830_v55, %v12652_v16  ;;  %v3213_v22 = vrot.slane %v2830_v55, %v10385_v10  ;;  %v3233_v36 = vrot.slane %v2830_v55, %v10401_v44 }
 0x461   : > { %v10565_v59 = vpop.f32.mrb[240].mxu1  ;;  %v5340_v53 = vcombine.low %v5332_v1, %v5339_v61  ;;  %v5389_v60 = vcombine.low %v5381_v45, %v5388_v52  ;;  %v5554_v1 = vrot.slane %v5538_v57, %v12655_v9 }
 0x462   : > { %12673 = vst [vmem:[#allocation20_spill] sm:$0xff] %v10565_v59  ;;  %v2480_v7 = vpop.f32.mrb[241].mxu1  ;;  %v5390_v52 = vcombine.low %v3209_v58, %v3213_v22 }
 0x463   : > { %v10576_v27 = vpop.f32.mrb[242].mxu1  ;;  %v3321_v7 = vrot.slane %v2833_v2, %v10394_v35  ;;  %v5540_v2 = vcombine.low %v3329_v43, %v3333_v31  ;;  %v3225_v43 = vrot.slane %v2830_v55, %v10394_v35  ;;  %v3229_v31 = vrot.slane %v2830_v55, %v10397_v5 }
 0x464   : > { %12676 = vst [vmem:[#allocation17_spill] sm:$0xff] %v10576_v27  ;;  %v2483_v46 = vpop.f32.mrb[243].mxu1 }
 0x465   : > { %v5539_v27 = vcombine.low %v3321_v7, %v3325_v48  ;;  %v5568_v11 = vrot.slane %v5540_v2, %v12655_v9  ;;  %v3217_v7 = vrot.slane %v2830_v55, %v10388_v23  ;;  %v3221_v48 = vrot.slane %v2830_v55, %v10391_v0 }
 0x467   : > { %v5561_v61 = vrot.slane %v5539_v27, %v12655_v9 }
 0x469   : > { %2788 = vadd.xlane.f32.xlu0 %v2676_v14  ;;  %v10588_v51 = vpop.f32.mrb[244].mxu1  ;;  %v5570_v18 = vcombine.low %v5561_v61, %v5568_v11 }
 0x46a   : > { %12678 = vst [vmem:[#allocation21_spill] sm:$0xff] %v10588_v51  ;;  %v2488_v15 = vpop.f32.mrb[245].mxu1 }
 0x46b   : > { %v10598_v63 = vpop.f32.mrb[246].mxu1  ;;  %v5547_v15 = vrot.slane %v5537_v37, %v12655_v9  ;;  %v12682_v37 = vsub.f32 %v12658_v8, %v10449_v33  ;;  %v10622_v33 = vpop.xlane.xlu1 %2698  ;;  %v10627_v8 = vld [vmem:[%s12506_s5] ss:$0 sm:$0xff] }
 0x46c   : > { %12680 = vst [vmem:[#allocation22_spill] sm:$0xff] %v10598_v63  ;;  %8153 = vperm.xlu1 %9000, %v5340_v53   ;;  %v2491_v14 = vpop.f32.mrb[247].mxu1  ;;  %v5584_v53 = vrot.slane %v5570_v18, %v12655_v9  ;;  %v3237_v18 = vrot.slane %v2830_v55, %v10404_v19 }
 0x46d   : > { %v5569_v24 = vcombine.low %v5547_v15, %v5554_v1  ;;  %v2604_v57 = vand.u32 2147483647, %v12682_v37  ;;  %v5392_v14 = vcombine.low %v3225_v43, %v3229_v31  ;;  %v5400_v37 = vrot.slane %v5390_v52, %v12655_v9 }
 0x46e   : > { %v5393_v15 = vcombine.low %v3233_v36, %v3237_v18  ;;  %v12683_v36 = vsub.f32 %v12661_v20, %v10487_v26 }
 0x46f   : > { %v5577_v46 = vrot.slane %v5569_v24, %v12655_v9  ;;  %v2675_v45 = vmul.f32 %v10627_v8, %v2604_v57  ;;  %v5414_v58 = vrot.slane %v5392_v14, %v12655_v9 }
 0x470   : > { %8156 = vperm.xlu1 %9000, %v5389_v60   ;;  %v2695_v60 = vpop.xlane.xlu0 %2694  ;;  %v5421_v22 = vrot.slane %v5393_v15, %v12655_v9  ;;  %v2607_v18 = vand.u32 2147483647, %v12683_v36 }
 0x471   : > { %v5585_v12 = vcombine.low %v5577_v46, %v5584_v53  ;;  %v2823_v27 = vadd.f32 %v10379_v32, %v2695_v60  ;;  %v5391_v46 = vcombine.low %v3217_v7, %v3221_v48  ;;  %v2719_v60 = vpop.xlane.xlu1 %2718 }
 0x472   : > { %v5423_v63 = vcombine.low %v5414_v58, %v5421_v22 }
 0x473   : > { %v2985_v2 = vrot.slane %v2823_v27, %v12652_v16  ;;  %v2989_v1 = vrot.slane %v2823_v27, %v10385_v10  ;;  %v2993_v61 = vrot.slane %v2823_v27, %v10388_v23  ;;  %v2997_v11 = vrot.slane %v2823_v27, %v10391_v0 }
 0x474   : > { %v3001_v24 = vrot.slane %v2823_v27, %v10394_v35  ;;  %v3005_v53 = vrot.slane %v2823_v27, %v10397_v5  ;;  %v3013_v55 = vrot.slane %v2823_v27, %v10404_v19  ;;  %v5407_v57 = vrot.slane %v5391_v46, %v12655_v9 }
 0x475   : > { %v5047_v7 = vcombine.low %v2985_v2, %v2989_v1  ;;  %v5048_v48 = vcombine.low %v2993_v61, %v2997_v11  ;;  %v2678_v2 = vmul.f32 %v10627_v8, %v2607_v18 }
 0x476   : > { %v5049_v43 = vcombine.low %v3001_v24, %v3005_v53 }
 0x477   : > { %v5057_v52 = vrot.slane %v5047_v7, %v12655_v9  ;;  %v5064_v46 = vrot.slane %v5048_v48, %v12655_v9 }
 0x478   : > { %v5071_v14 = vrot.slane %v5049_v43, %v12655_v9 }
 0x47f   : > { %8168 = vperm.xlu0 %9001, %v5585_v12   ;;  %v3009_v12 = vrot.slane %v2823_v27, %v10401_v44  ;;  %v2835_v27 = vadd.f32 %v10379_v32, %v2719_v60  ;;  %v5437_v60 = vrot.slane %v5423_v63, %v12655_v9 }
 0x481   : > { %v5050_v31 = vcombine.low %v3009_v12, %v3013_v55  ;;  %v3369_v1 = vrot.slane %v2835_v27, %v12652_v16  ;;  %v3373_v61 = vrot.slane %v2835_v27, %v10385_v10  ;;  %v3377_v26 = vrot.slane %v2835_v27, %v10388_v23 }
 0x482   : > { %v3381_v20 = vrot.slane %v2835_v27, %v10391_v0  ;;  %v3385_v11 = vrot.slane %v2835_v27, %v10394_v35  ;;  %v3389_v24 = vrot.slane %v2835_v27, %v10397_v5  ;;  %v3393_v53 = vrot.slane %v2835_v27, %v10401_v44 }
 0x483   : > { %v5078_v15 = vrot.slane %v5050_v31, %v12655_v9  ;;  %v3397_v12 = vrot.slane %v2835_v27, %v10404_v19  ;;  %v5635_v58 = vcombine.low %v3369_v1, %v3373_v61  ;;  %v2713_v61 = vpop.xlane.xlu0 %2712 }
 0x484   : > { %v5636_v22 = vcombine.low %v3377_v26, %v3381_v20  ;;  %v5637_v7 = vcombine.low %v3385_v11, %v3389_v24  ;;  %v2832_v26 = vadd.f32 %v10379_v32, %v2713_v61 }
 0x485   : > { %v5638_v48 = vcombine.low %v3393_v53, %v3397_v12  ;;  %v5645_v18 = vrot.slane %v5635_v58, %v12655_v9 }
 0x486   : > { %v5652_v27 = vrot.slane %v5636_v22, %v12655_v9  ;;  %v3273_v20 = vrot.slane %v2832_v26, %v12652_v16  ;;  %v3277_v11 = vrot.slane %v2832_v26, %v10385_v10  ;;  %v3281_v24 = vrot.slane %v2832_v26, %v10388_v23 }
 0x487   : > { %v5666_v63 = vrot.slane %v5638_v48, %v12655_v9  ;;  %v3285_v53 = vrot.slane %v2832_v26, %v10391_v0  ;;  %v3289_v12 = vrot.slane %v2832_v26, %v10394_v35 }
 0x488   : > { %v5488_v58 = vcombine.low %v3273_v20, %v3277_v11 }
 0x489   : > { %v5489_v22 = vcombine.low %v3281_v24, %v3285_v53 }
 0x494   : > { %2786 = vadd.xlane.f32.xlu1 %v2675_v45  ;;  %v5422_v45 = vcombine.low %v5400_v37, %v5407_v57  ;;  %v5079_v37 = vcombine.low %v5057_v52, %v5064_v46  ;;  %v5080_v57 = vcombine.low %v5071_v14, %v5078_v15  ;;  %v5667_v46 = vcombine.low %v5645_v18, %v5652_v27 }
 0x496   : > { %v5430_v55 = vrot.slane %v5422_v45, %v12655_v9  ;;  %v5087_v31 = vrot.slane %v5079_v37, %v12655_v9  ;;  %v5094_v36 = vrot.slane %v5080_v57, %v12655_v9  ;;  %v5659_v45 = vrot.slane %v5637_v7, %v12655_v9 }
 0x497   : > { %v5675_v15 = vrot.slane %v5667_v46, %v12655_v9  ;;  %v3301_v37 = vrot.slane %v2832_v26, %v10404_v19  ;;  %v2824_v57 = vadd.f32 %v10379_v32, %v10555_v38 }
 0x498   : > { %v5438_v43 = vcombine.low %v5430_v55, %v5437_v60  ;;  %v5095_v52 = vcombine.low %v5087_v31, %v5094_v36  ;;  %v5668_v14 = vcombine.low %v5659_v45, %v5666_v63  ;;  %v3293_v55 = vrot.slane %v2832_v26, %v10397_v5 }
 0x499   : > { %v3297_v60 = vrot.slane %v2832_v26, %v10401_v44  ;;  %v12685_v36 = vsub.f32 %v12663_v34, %v10501_v28  ;;  %v3017_v27 = vrot.slane %v2824_v57, %v12652_v16  ;;  %v3021_v45 = vrot.slane %v2824_v57, %v10385_v10 }
 0x49a   : > { %v5490_v7 = vcombine.low %v3289_v12, %v3293_v55  ;;  %v3025_v63 = vrot.slane %v2824_v57, %v10388_v23  ;;  %v3029_v38 = vrot.slane %v2824_v57, %v10391_v0  ;;  %v3033_v46 = vrot.slane %v2824_v57, %v10394_v35 }
 0x49b   : > { %v5491_v48 = vcombine.low %v3297_v60, %v3301_v37  ;;  %v2609_v18 = vand.u32 2147483647, %v12685_v36  ;;  %v5498_v28 = vrot.slane %v5488_v58, %v12655_v9  ;;  %v5505_v34 = vrot.slane %v5489_v22, %v12655_v9 }
 0x49c   : > { %v5096_v20 = vcombine.low %v3017_v27, %v3021_v45  ;;  %v5097_v11 = vcombine.low %v3025_v63, %v3029_v38 }
 0x49d   : > { %v2680_v55 = vmul.f32 %v10627_v8, %v2609_v18  ;;  %v5520_v60 = vcombine.low %v5498_v28, %v5505_v34 }
 0x49e   : > { %2792 = vadd.xlane.f32.xlu0 %v2678_v2  ;;  %v5682_v2 = vrot.slane %v5668_v14, %v12655_v9  ;;  %v3037_v14 = vrot.slane %v2824_v57, %v10397_v5  ;;  %v5106_v18 = vrot.slane %v5096_v20, %v12655_v9  ;;  %v5113_v27 = vrot.slane %v5097_v11, %v12655_v9 }
 0x49f   : > { %v5528_v11 = vrot.slane %v5520_v60, %v12655_v9 }
 0x4a0   : > { %v5683_v1 = vcombine.low %v5675_v15, %v5682_v2  ;;  %v5512_v15 = vrot.slane %v5490_v7, %v12655_v9  ;;  %v5519_v2 = vrot.slane %v5491_v48, %v12655_v9  ;;  %v5098_v24 = vcombine.low %v3033_v46, %v3037_v14 }
 0x4a2   : > { %v5521_v37 = vcombine.low %v5512_v15, %v5519_v2  ;;  %v5120_v45 = vrot.slane %v5098_v24, %v12655_v9 }
 0x4a4   : > { %v5535_v24 = vrot.slane %v5521_v37, %v12655_v9 }
 0x4a5   : > { %8159 = vperm.xlu1 %9000, %v5438_v43   ;;  %v12684_v43 = vsub.f32 %v12660_v62, %v10475_v42  ;;  %v3041_v42 = vrot.slane %v2824_v57, %v10401_v44  ;;  %v3045_v62 = vrot.slane %v2824_v57, %v10404_v19 }
 0x4a7   : > { %v2606_v31 = vand.u32 2147483647, %v12684_v43  ;;  %v5099_v53 = vcombine.low %v3041_v42, %v3045_v62 }
 0x4a9   : > { %8138 = vperm.xlu1 %9000, %v5095_v52   ;;  %v2723_v52 = vpop.xlane.xlu1 %2722  ;;  %v2677_v61 = vmul.f32 %v10627_v8, %v2606_v31  ;;  %v5127_v63 = vrot.slane %v5099_v53, %v12655_v9  ;;  %v5128_v53 = vcombine.low %v5106_v18, %v5113_v27 }
 0x4aa   : > { %v2837_v12 = vadd.f32 %v10379_v32, %v2723_v52 }
 0x4ac   : > { %v3433_v38 = vrot.slane %v2837_v12, %v12652_v16  ;;  %v3437_v52 = vrot.slane %v2837_v12, %v10385_v10  ;;  %v3441_v46 = vrot.slane %v2837_v12, %v10388_v23  ;;  %v3445_v14 = vrot.slane %v2837_v12, %v10391_v0 }
 0x4ad   : > { %v10701_v26 = vpop.xlane.xlu1 %2726  ;;  %v3449_v42 = vrot.slane %v2837_v12, %v10394_v35  ;;  %v3453_v62 = vrot.slane %v2837_v12, %v10397_v5  ;;  %v3457_v28 = vrot.slane %v2837_v12, %v10401_v44  ;;  %v3461_v34 = vrot.slane %v2837_v12, %v10404_v19 }
 0x4ae   : > { %v5733_v17 = vcombine.low %v3433_v38, %v3437_v52  ;;  %v5734_v51 = vcombine.low %v3441_v46, %v3445_v14 }
 0x4af   : > { %v5735_v47 = vcombine.low %v3449_v42, %v3453_v62  ;;  %v5736_v25 = vcombine.low %v3457_v28, %v3461_v34 }
 0x4b0   : > { %v5743_v60 = vrot.slane %v5733_v17, %v12655_v9  ;;  %v5750_v37 = vrot.slane %v5734_v51, %v12655_v9 }
 0x4b1   : > { %v10713_v36 = vpop.xlane.xlu1 %2730 }
 0x4b2   : > { %v5765_v38 = vcombine.low %v5743_v60, %v5750_v37 }
 0x4b4   : > { %8174 = vperm.xlu0 %9001, %v5683_v1   ;;  %v2825_v1 = vadd.f32 %v10379_v32, %v10622_v33  ;;  %v5773_v14 = vrot.slane %v5765_v38, %v12655_v9 }
 0x4b5   : > { %v10727_v20 = vpop.xlane.xlu1 %2734 }
 0x4b6   : > { %v3049_v57 = vrot.slane %v2825_v1, %v12652_v16  ;;  %v3053_v58 = vrot.slane %v2825_v1, %v10385_v10  ;;  %v3057_v33 = vrot.slane %v2825_v1, %v10388_v23  ;;  %v3061_v22 = vrot.slane %v2825_v1, %v10391_v0 }
 0x4b7   : > { %v3065_v7 = vrot.slane %v2825_v1, %v10394_v35  ;;  %v3069_v48 = vrot.slane %v2825_v1, %v10397_v5  ;;  %v3073_v43 = vrot.slane %v2825_v1, %v10401_v44  ;;  %v3077_v31 = vrot.slane %v2825_v1, %v10404_v19 }
 0x4b8   : > { %v5145_v15 = vcombine.low %v3049_v57, %v3053_v58  ;;  %v5146_v2 = vcombine.low %v3057_v33, %v3061_v22  ;;  %v5536_v22 = vcombine.low %v5528_v11, %v5535_v24 }
 0x4b9   : > { %v5147_v1 = vcombine.low %v3065_v7, %v3069_v48  ;;  %v10735_v33 = vpop.xlane.xlu1 %2738  ;;  %v5757_v7 = vrot.slane %v5735_v47, %v12655_v9  ;;  %v5764_v48 = vrot.slane %v5736_v25, %v12655_v9 }
 0x4ba   : > { %v5155_v59 = vrot.slane %v5145_v15, %v12655_v9  ;;  %v5162_v12 = vrot.slane %v5146_v2, %v12655_v9 }
 0x4bb   : > { %v5169_v57 = vrot.slane %v5147_v1, %v12655_v9  ;;  %v5766_v52 = vcombine.low %v5757_v7, %v5764_v48  ;;  %v12696_v7 = vsub.f32 %v12662_v56, %v10491_v50 }
 0x4bc   : > { %v5177_v18 = vcombine.low %v5155_v59, %v5162_v12 }
 0x4bd   : > { %v5780_v59 = vrot.slane %v5766_v52, %v12655_v9  ;;  %v2608_v48 = vand.u32 2147483647, %v12696_v7 }
 0x4be   : > { %v5185_v17 = vrot.slane %v5177_v18, %v12655_v9  ;;  %v2839_v18 = vadd.f32 %v10379_v32, %v10701_v26 }
 0x4bf   : > { %v5781_v34 = vcombine.low %v5773_v14, %v5780_v59 }
 0x4c0   : > { %v3497_v59 = vrot.slane %v2839_v18, %v12652_v16  ;;  %v3509_v7 = vrot.slane %v2839_v18, %v10391_v0 }
 0x4cd   : > { %2790 = vadd.xlane.f32.xlu1 %v2677_v61  ;;  %v5148_v61 = vcombine.low %v3073_v43, %v3077_v31  ;;  %v5136_v43 = vrot.slane %v5128_v53, %v12655_v9 }
 0x4cf   : > { %v5176_v58 = vrot.slane %v5148_v61, %v12655_v9 }
 0x4d1   : > { %v5178_v27 = vcombine.low %v5169_v57, %v5176_v58 }
 0x4d3   : > { %2796 = vadd.xlane.f32.xlu0 %v2680_v55  ;;  %v5129_v55 = vcombine.low %v5120_v45, %v5127_v63  ;;  %v10743_v45 = vpop.xlane.xlu1 %2742  ;;  %v2717_v63 = vpop.xlane.xlu0 %2716  ;;  %v5192_v51 = vrot.slane %v5178_v27, %v12655_v9 }
 0x4d4   : > { %v2834_v60 = vadd.f32 %v10379_v32, %v2717_v63 }
 0x4d5   : > { %v5143_v31 = vrot.slane %v5129_v55, %v12655_v9  ;;  %v5193_v42 = vcombine.low %v5185_v17, %v5192_v51  ;;  %v2679_v17 = vmul.f32 %v10627_v8, %v2608_v48  ;;  %v3525_v48 = vrot.slane %v2839_v18, %v10404_v19 }
 0x4d6   : > { %v3337_v38 = vrot.slane %v2834_v60, %v12652_v16  ;;  %v3341_v52 = vrot.slane %v2834_v60, %v10385_v10  ;;  %v3345_v63 = vrot.slane %v2834_v60, %v10388_v23  ;;  %v3353_v50 = vrot.slane %v2834_v60, %v10394_v35 }
 0x4d7   : > { %v5144_v46 = vcombine.low %v5136_v43, %v5143_v31  ;;  %v10747_v47 = vpop.xlane.xlu1 %2746  ;;  %v10749_v25 = vpop.xlane.xlu0 %2720  ;;  %v12697_v43 = vsub.f32 %v12665_v40, %v10511_v30  ;;  %v3357_v56 = vrot.slane %v2834_v60, %v10397_v5  ;;  %v3361_v30 = vrot.slane %v2834_v60, %v10401_v44 }
 0x4d8   : > { %12686 = vst [vmem:[#allocation23_spill] sm:$0xff] %v10747_v47  ;;  %v3365_v40 = vrot.slane %v2834_v60, %v10404_v19 }
 0x4d9   : > { %v2611_v31 = vand.u32 2147483647, %v12697_v43  ;;  %v3513_v43 = vrot.slane %v2839_v18, %v10394_v35 }
 0x4db   : > { %v10753_v62 = vpop.xlane.xlu1 %2750  ;;  %v10755_v28 = vpop.xlane.xlu0 %2724  ;;  %v2682_v26 = vmul.f32 %v10627_v8, %v2611_v31  ;;  %v3521_v31 = vrot.slane %v2839_v18, %v10401_v44 }
 0x4dc   : > { %12687 = vst [vmem:[#allocation24_spill] sm:$0xff] %v10753_v62 }
 0x4de   : > { %8165 = vperm.xlu1 %9000, %v5536_v22  }
 0x4df   : > { %v10757_v15 = vpop.xlane.xlu1 %2754  ;;  %v10759_v2 = vpop.xlane.xlu0 %2728 }
 0x4e0   : > { %12688 = vst [vmem:[#allocation25_spill] sm:$0xff] %v10757_v15 }
 0x4e2   : > { %8141 = vperm.xlu1 %9000, %v5144_v46   ;;  %v3349_v46 = vrot.slane %v2834_v60, %v10391_v0  ;;  %v3517_v60 = vrot.slane %v2839_v18, %v10397_v5 }
 0x4e3   : > { %v10761_v1 = vpop.xlane.xlu1 %2758  ;;  %v10763_v61 = vpop.xlane.xlu0 %2732 }
 0x4e4   : > { %12689 = vst [vmem:[#allocation26_spill] sm:$0xff] %v10761_v1  ;;  %v5833_v15 = vcombine.low %v3513_v43, %v3517_v60 }
 0x4e6   : > { %8144 = vperm.xlu1 %9000, %v5193_v42   ;;  %v3501_v42 = vrot.slane %v2839_v18, %v10385_v10 }
 0x4e7   : > { %v10765_v11 = vpop.xlane.xlu1 %2762  ;;  %v10767_v24 = vpop.xlane.xlu0 %2736 }
 0x4e8   : > { %12690 = vst [vmem:[#allocation27_spill] sm:$0xff] %v10765_v11  ;;  %v5831_v1 = vcombine.low %v3497_v59, %v3501_v42 }
 0x4e9   : > { %8180 = vperm.xlu0 %9001, %v5781_v34   ;;  %v3505_v34 = vrot.slane %v2839_v18, %v10388_v23 }
 0x4eb   : > { %v10769_v53 = vpop.xlane.xlu1 %2766  ;;  %v10771_v55 = vpop.xlane.xlu0 %2740 }
 0x4ec   : > { %12691 = vst [vmem:[#allocation28_spill] sm:$0xff] %v10769_v53  ;;  %v5589_v53 = vcombine.low %v3361_v30, %v3365_v40 }
 0x4ee   : > { %v5617_v18 = vrot.slane %v5589_v53, %v12655_v9 }
 0x4ef   : > { %v10773_v12 = vpop.xlane.xlu1 %2770  ;;  %v10775_v57 = vpop.xlane.xlu0 %2744 }
 0x4f0   : > { %12692 = vst [vmem:[#allocation29_spill] sm:$0xff] %v10773_v12  ;;  %v5588_v12 = vcombine.low %v3353_v50, %v3357_v56 }
 0x4f2   : > { %v5610_v47 = vrot.slane %v5588_v12, %v12655_v9 }
 0x4f3   : > { %v10777_v58 = vpop.xlane.xlu1 %2774  ;;  %v10779_v22 = vpop.xlane.xlu0 %2748 }
 0x4f4   : > { %12693 = vst [vmem:[#allocation30_spill] sm:$0xff] %v10777_v58  ;;  %12694 = vst [vmem:[#allocation31_spill] sm:$0xff] %v10779_v22  ;;  %v5587_v58 = vcombine.low %v3345_v63, %v3349_v46  ;;  %v5855_v46 = vrot.slane %v5833_v15, %v12655_v9 }
 0x4f6   : > { %v5603_v22 = vrot.slane %v5587_v58, %v12655_v9 }
 0x4f7   : > { %v10782_v37 = vpop.xlane.xlu1 %2778  ;;  %v10792_v27 = vpop.xlane.xlu0 %2752 }
 0x4f8   : > { %12695 = vst [vmem:[#allocation32_spill] sm:$0xff] %v10782_v37  ;;  %12698 = vst [vmem:[#allocation34_spill] sm:$0xff] %v10792_v27  ;;  %v5586_v37 = vcombine.low %v3337_v38, %v3341_v52  ;;  %v5834_v27 = vcombine.low %v3521_v31, %v3525_v48  ;;  %v5841_v52 = vrot.slane %v5831_v1, %v12655_v9 }
 0x4fa   : > { %v5596_v62 = vrot.slane %v5586_v37, %v12655_v9  ;;  %v5862_v50 = vrot.slane %v5834_v27, %v12655_v9  ;;  %v5619_v37 = vcombine.low %v5610_v47, %v5617_v18 }
 0x4fb   : > { %v10804_v51 = vpop.xlane.xlu0 %2756  ;;  %v10806_v14 = vpop.permute.xlu1 %8147 }
 0x4fc   : > { %12699 = vst [vmem:[#allocation36_spill] sm:$0xff] %v10804_v51  ;;  %v5832_v51 = vcombine.low %v3505_v34, %v3509_v7  ;;  %v5618_v30 = vcombine.low %v5596_v62, %v5603_v22  ;;  %v5864_v12 = vcombine.low %v5855_v46, %v5862_v50  ;;  %v12707_v34 = vlaneseq }
 0x4fe   : > { %v5848_v63 = vrot.slane %v5832_v51, %v12655_v9  ;;  %v5626_v53 = vrot.slane %v5618_v30, %v12655_v9  ;;  %v5878_v27 = vrot.slane %v5864_v12, %v12655_v9  ;;  %v10849_v7 = vand.u32 127, %v12707_v34 }
 0x4ff   : > { %v10816_v11 = vpop.xlane.xlu0 %2760  ;;  %v12712_v12 = vsub.f32 %v12664_v54, %v10505_v13 }
 0x500   : > { %12700 = vst [vmem:[#allocation45_spill] sm:$0xff] %v10816_v11  ;;  %v5863_v58 = vcombine.low %v5841_v52, %v5848_v63  ;;  %v8332_v60 = vadd.s32 4294967288, %v10849_v7  ;;  %v10860_v18 = vsub.s32 %v10849_v7, %v9684_v3 }
 0x502   : > { %v5871_v15 = vrot.slane %v5863_v58, %v12655_v9  ;;  %12710 = vst [vmem:[#allocation54_spill] sm:$0xff] %v10860_v18  ;;  %v10863_v52 = vsub.s32 %v8332_v60, %v9684_v3  ;;  %v2836_v58 = vadd.f32 %v10379_v32, %v10749_v25 }
 0x503   : > { %v10824_v38 = vpop.xlane.xlu0 %2764 }
 0x504   : > { %12701 = vst [vmem:[#allocation46_spill] sm:$0xff] %v10824_v38  ;;  %v5879_v47 = vcombine.low %v5871_v15, %v5878_v27  ;;  %12711 = vst [vmem:[#allocation55_spill] sm:$0xff] %v10863_v52  ;;  %v2841_v27 = vadd.f32 %v10379_v32, %v10713_v36  ;;  %v3409_v60 = vrot.slane %v2836_v58, %v10388_v23 }
 0x505   : > { %v3417_v25 = vrot.slane %v2836_v58, %v10394_v35  ;;  %v3421_v13 = vrot.slane %v2836_v58, %v10397_v5  ;;  %v3425_v54 = vrot.slane %v2836_v58, %v10401_v44 }
 0x506   : > { %v3581_v34 = vrot.slane %v2841_v27, %v10397_v5 }
 0x507   : > { %v10832_v40 = vpop.xlane.xlu0 %2768 }
 0x508   : > { %2800 = vadd.xlane.f32.xlu0 %v2682_v26  ;;  %v10818_v26 = vpop.permute.xlu1 %8150  ;;  %12703 = vst [vmem:[#allocation48_spill] sm:$0xff] %v10832_v40 }
 0x50a   : > { %2794 = vadd.xlane.f32.xlu1 %v2679_v17  ;;  %v5633_v17 = vrot.slane %v5619_v37, %v12655_v9 }
 0x50b   : > { %v10836_v59 = vpop.xlane.xlu0 %2772 }
 0x50c   : > { %v10830_v56 = vpop.xlane.xlu1 %2782  ;;  %12704 = vst [vmem:[#allocation49_spill] sm:$0xff] %v10836_v59  ;;  %v5634_v51 = vcombine.low %v5626_v53, %v5633_v17  ;;  %v2610_v53 = vand.u32 2147483647, %v12712_v12  ;;  %v12713_v17 = vsub.f32 %v12667_v49, %v10521_v39  ;;  %v3429_v39 = vrot.slane %v2836_v58, %v10404_v19 }
 0x50d   : > { %12702 = vst [vmem:[#allocation47_spill] sm:$0xff] %v10830_v56  ;;  %v3573_v12 = vrot.slane %v2841_v27, %v10391_v0 }
 0x50e   : > { %v2613_v15 = vand.u32 2147483647, %v12713_v17  ;;  %v2681_v36 = vmul.f32 %v10627_v8, %v2610_v53  ;;  %v3577_v17 = vrot.slane %v2841_v27, %v10394_v35  ;;  %v5686_v53 = vcombine.low %v3417_v25, %v3421_v13 }
 0x50f   : > { %v10842_v42 = vpop.xlane.xlu0 %2776 }
 0x510   : > { %v10838_v1 = vpop.permute.xlu1 %8153  ;;  %12705 = vst [vmem:[#allocation50_spill] sm:$0xff] %v10842_v42  ;;  %v2684_v49 = vmul.f32 %v10627_v8, %v2613_v15  ;;  %v5708_v40 = vrot.slane %v5686_v53, %v12655_v9 }
 0x513   : > { %v10846_v22 = vpop.xlane.xlu0 %2780 }
 0x514   : > { %v10844_v62 = vpop.permute.xlu1 %8156  ;;  %12706 = vst [vmem:[#allocation51_spill] sm:$0xff] %v10846_v22 }
 0x517   : > { %v10854_v31 = vpop.xlane.xlu0 %2784 }
 0x518   : > { %12709 = vst [vmem:[#allocation53_spill] sm:$0xff] %v10854_v31  ;;  %v5687_v31 = vcombine.low %v3425_v54, %v3429_v39  ;;  %v8388_v39 = vadd.s32 4294967224, %v10849_v7 }
 0x51a   : > { %v5715_v38 = vrot.slane %v5687_v31, %v12655_v9 }
 0x51b   : > { %8171 = vperm.xlu1 %9000, %v5634_v51   ;;  %v8136_v63 = vpop.permute.xlu0 %8135  ;;  %v3401_v51 = vrot.slane %v2836_v58, %v12652_v16 }
 0x51c   : > { %v8331_v50 = vrot.slane %v8136_v63, %v10860_v18  ;;  %v3413_v63 = vrot.slane %v2836_v58, %v10391_v0 }
 0x51e   : > { %8186 = vperm.xlu0 %9001, %v5879_v47   ;;  %v3405_v47 = vrot.slane %v2836_v58, %v10385_v10  ;;  %v3589_v58 = vrot.slane %v2841_v27, %v10404_v19  ;;  %v5685_v56 = vcombine.low %v3409_v60, %v3413_v63  ;;  %v5717_v63 = vcombine.low %v5708_v40, %v5715_v38 }
 0x51f   : > { %v8346_v38 = vadd.s32 4294967272, %v10849_v7  ;;  %v8353_v40 = vadd.s32 4294967264, %v10849_v7 }
 0x520   : > { %v5684_v15 = vcombine.low %v3401_v51, %v3405_v47 }
 0x521   : > { %v10851_v43 = vpop.xlane.xlu1 %2786 }
 0x522   : > { %12708 = vst [vmem:[#allocation52_spill] sm:$0xff] %v10851_v43  ;;  %v3585_v43 = vrot.slane %v2841_v27, %v10401_v44  ;;  %v5694_v59 = vrot.slane %v5684_v15, %v12655_v9  ;;  %v12716_v15 = vsub.f32 %v12666_v4, %v10515_v6  ;;  %v10953_v4 = vsub.s32 %v8388_v39, %v9684_v3 }
 0x524   : > { %v5932_v42 = vcombine.low %v3585_v43, %v3589_v58  ;;  %v10931_v58 = vadd.f32 %v10379_v32, %v10755_v28  ;;  %v2612_v53 = vand.u32 2147483647, %v12716_v15  ;;  %12720 = vst [vmem:[#allocation60_spill] sm:$0xff] %v10953_v4 }
 0x525   : > { %v10856_v48 = vpop.permute.xlu1 %8159 }
 0x526   : > { %v5960_v47 = vrot.slane %v5932_v42, %v12655_v9  ;;  %v8339_v42 = vadd.s32 4294967280, %v10849_v7  ;;  %v3473_v39 = vrot.slane %v10931_v58, %v10388_v23 }
 0x529   : > { %v8139_v46 = vpop.permute.xlu1 %8138 }
 0x52a   : > { %v8336_v30 = vrot.slane %v8139_v46, %v10863_v52  ;;  %v3561_v46 = vrot.slane %v2841_v27, %v12652_v16  ;;  %v5931_v52 = vcombine.low %v3577_v17, %v3581_v34  ;;  %v10927_v17 = vsub.s32 %v8346_v38, %v9684_v3 }
 0x52c   : > { %v10868_v37 = vsel %vm8337_vm0, %v8336_v30, %v8331_v50  ;;  %v3565_v50 = vrot.slane %v2841_v27, %v10385_v10  ;;  %v3569_v30 = vrot.slane %v2841_v27, %v10388_v23  ;;  %v5953_v51 = vrot.slane %v5931_v52, %v12655_v9  ;;  %12715 = vst [vmem:[#allocation57_spill] sm:$0xff] %v10927_v17 }
 0x52d   : > { %v8360_v52 = vadd.s32 4294967256, %v10849_v7 }
 0x52e   : > { %v5929_v22 = vcombine.low %v3561_v46, %v3565_v50  ;;  %v5930_v18 = vcombine.low %v3569_v30, %v3573_v12  ;;  %v5962_v43 = vcombine.low %v5953_v51, %v5960_v47  ;;  %v8374_v50 = vadd.s32 4294967240, %v10849_v7 }
 0x52f   : > { %v8402_v30 = vadd.s32 4294967208, %v10849_v7  ;;  %v8381_v51 = vadd.s32 4294967232, %v10849_v7  ;;  %v10942_v47 = vadd.f32 %v10379_v32, %v10727_v20  ;;  %v10948_v28 = vsub.s32 %v8360_v52, %v9684_v3 }
 0x530   : > { %v5939_v11 = vrot.slane %v5929_v22, %v12655_v9  ;;  %v5946_v27 = vrot.slane %v5930_v18, %v12655_v9  ;;  %v5976_v31 = vrot.slane %v5962_v43, %v12655_v9  ;;  %v8395_v43 = vadd.s32 4294967216, %v10849_v7 }
 0x531   : > { %12719 = vst [vmem:[#allocation59_spill] sm:$0xff] %v10948_v28 }
 0x532   : > { %v5961_v34 = vcombine.low %v5939_v11, %v5946_v27  ;;  %v10916_v11 = vsub.s32 %v8339_v42, %v9684_v3  ;;  %v8163_v27 = vpop.permute.xlu0 %8162  ;;  %v3469_v42 = vrot.slane %v10931_v58, %v10385_v10  ;;  %v10983_v38 = vsub.s32 %v8395_v43, %v9684_v3 }
 0x534   : > { %v5969_v13 = vrot.slane %v5961_v34, %v12655_v9  ;;  %12714 = vst [vmem:[#allocation56_spill] sm:$0xff] %v10916_v11  ;;  %12726 = vst [vmem:[#allocation66_spill] sm:$0xff] %v10983_v38 }
 0x536   : > { %v5977_v22 = vcombine.low %v5969_v13, %v5976_v31  ;;  %v10971_v13 = vsub.s32 %v8381_v51, %v9684_v3  ;;  %v3465_v31 = vrot.slane %v10931_v58, %v12652_v16 }
 0x538   : > { %12725 = vst [vmem:[#allocation65_spill] sm:$0xff] %v10971_v13 }
 0x53d   : > { %2804 = vadd.xlane.f32.xlu0 %v2684_v49  ;;  %v5701_v49 = vrot.slane %v5685_v56, %v12655_v9  ;;  %v5731_v56 = vrot.slane %v5717_v63, %v12655_v9 }
 0x53f   : > { %2798 = vadd.xlane.f32.xlu1 %v2681_v36  ;;  %v5716_v60 = vcombine.low %v5694_v59, %v5701_v49  ;;  %v8367_v36 = vadd.s32 4294967248, %v10849_v7  ;;  %v10937_v49 = vsub.s32 %v8353_v40, %v9684_v3 }
 0x541   : > { %v5724_v25 = vrot.slane %v5716_v60, %v12655_v9  ;;  %12717 = vst [vmem:[#allocation58_spill] sm:$0xff] %v10937_v49  ;;  %v12718_v60 = vsub.f32 %v12670_v21, %v10544_v29  ;;  %v10956_v34 = vsub.s32 %v8367_v36, %v9684_v3  ;;  %v10963_v29 = vsub.s32 %v8402_v30, %v9684_v3 }
 0x542   : > { %v8392_v30 = vrot.slane %v8163_v27, %v10953_v4  ;;  %v3489_v27 = vrot.slane %v10931_v58, %v10401_v44  ;;  %v12770_v4 = vld [vmem:[#allocation29_spill] sm:$0xff] }
 0x543   : > { %v5732_v54 = vcombine.low %v5724_v25, %v5731_v56  ;;  %v2615_v63 = vand.u32 2147483647, %v12718_v60  ;;  %12721 = vst [vmem:[#allocation61_spill] sm:$0xff] %v10956_v34  ;;  %v10960_v25 = vsub.s32 %v8374_v50, %v9684_v3  ;;  %12723 = vst [vmem:[#allocation63_spill] sm:$0xff] %v10963_v29  ;;  %v10968_v56 = vpop.xlane.xlu0 %2788 }
 0x544   : > { %12724 = vst [vmem:[#allocation64_spill] sm:$0xff] %v10968_v56 }
 0x545   : > { %12722 = vst [vmem:[#allocation62_spill] sm:$0xff] %v10960_v25  ;;  %v8378_v52 = vrot.slane %v10844_v62, %v10960_v25  ;;  %v3481_v62 = vrot.slane %v10931_v58, %v10394_v35 }
 0x547   : > { %v8169_v36 = vpop.permute.xlu0 %8168 }
 0x548   : > { %v8406_v60 = vrot.slane %v8169_v36, %v10963_v29 }
 0x550   : > { %8177 = vperm.xlu1 %9000, %v5732_v54   ;;  %v8364_v54 = vrot.slane %v10818_v26, %v10948_v28 }
 0x553   : > { %8192 = vperm.xlu0 %9001, %v5977_v22  }
 0x55a   : > { %v10910_v18 = vpop.xlane.xlu1 %2790 }
 0x55e   : > { %v10913_v59 = vpop.permute.xlu1 %8165 }
 0x55f   : > { %v8399_v15 = vrot.slane %v10913_v59, %v10983_v38  ;;  %v2683_v59 = vmul.f32 %v10627_v8, %v2612_v53  ;;  %v3641_v53 = vrot.slane %v10942_v47, %v10394_v35  ;;  %v12768_v38 = vld [vmem:[#allocation48_spill] sm:$0xff] }
 0x562   : > { %v8142_v46 = vpop.permute.xlu1 %8141 }
 0x563   : > { %v8343_v12 = vrot.slane %v8142_v46, %v10916_v11  ;;  %v8385_v46 = vrot.slane %v10856_v48, %v10971_v13  ;;  %v3485_v48 = vrot.slane %v10931_v58, %v10397_v5  ;;  %v12773_v13 = vld [vmem:[#allocation30_spill] sm:$0xff] }
 0x565   : > { %v8345_v6 = vsel %vm8344_vm1, %v8343_v12, %v10868_v37  ;;  %v8357_v37 = vrot.slane %v10806_v14, %v10937_v49  ;;  %v8371_v14 = vrot.slane %v10838_v1, %v10956_v34  ;;  %v3477_v1 = vrot.slane %v10931_v58, %v10391_v0 }
 0x566   : > { %v8145_v20 = vpop.permute.xlu1 %8144 }
 0x567   : > { %v8350_v21 = vrot.slane %v8145_v20, %v10927_v17  ;;  %v2686_v20 = vmul.f32 %v10627_v8, %v2615_v63  ;;  %v3645_v63 = vrot.slane %v10942_v47, %v10397_v5  ;;  %v5783_v36 = vcombine.low %v3473_v39, %v3477_v1 }
 0x569   : > { %v8352_v22 = vsel %vm8351_vm2, %v8350_v21, %v8345_v6  ;;  %v3493_v6 = vrot.slane %v10931_v58, %v10404_v19  ;;  %v3625_v21 = vrot.slane %v10942_v47, %v12652_v16  ;;  %v3637_v58 = vrot.slane %v10942_v47, %v10391_v0 }
 0x56a   : > { %v8359_v40 = vsel %vm8358_vm3, %v8357_v37, %v8352_v22  ;;  %v3633_v22 = vrot.slane %v10942_v47, %v10388_v23 }
 0x56b   : > { %v8366_v26 = vsel %vm8365_vm4, %v8364_v54, %v8359_v40  ;;  %v3629_v54 = vrot.slane %v10942_v47, %v10385_v10  ;;  %v3649_v40 = vrot.slane %v10942_v47, %v10401_v44 }
 0x56c   : > { %v8373_v50 = vsel %vm8372_vm5, %v8371_v14, %v8366_v26  ;;  %v5782_v26 = vcombine.low %v3465_v31, %v3469_v42 }
 0x56d   : > { %v8380_v12 = vsel %vm8379_vm6, %v8378_v52, %v8373_v50  ;;  %v3653_v52 = vrot.slane %v10942_v47, %v10404_v19  ;;  %v5785_v50 = vcombine.low %v3489_v27, %v3493_v6 }
 0x56e   : > { %v8387_v51 = vsel %vm8386_vm7, %v8385_v46, %v8380_v12  ;;  %v5784_v46 = vcombine.low %v3481_v62, %v3485_v48  ;;  %v6028_v12 = vcombine.low %v3633_v22, %v3637_v58  ;;  %v8409_v58 = vadd.s32 4294967200, %v10849_v7 }
 0x56f   : > { %v8394_v43 = vsel %vm8393_vm8, %v8392_v30, %v8387_v51  ;;  %v6027_v30 = vcombine.low %v3625_v21, %v3629_v54  ;;  %v6030_v51 = vcombine.low %v3649_v40, %v3653_v52 }
 0x570   : > { %v8401_v37 = vsel %vm8400_vm9, %v8399_v15, %v8394_v43  ;;  %v6029_v15 = vcombine.low %v3641_v53, %v3645_v63  ;;  %v5799_v43 = vrot.slane %v5783_v36, %v12655_v9  ;;  %v6044_v47 = vrot.slane %v6028_v12, %v12655_v9  ;;  %v11045_v63 = vpop.xlane.xlu0 %2792 }
 0x571   : > { %v8408_v14 = vsel %vm8407_vm10, %v8406_v60, %v8401_v37  ;;  %v5792_v60 = vrot.slane %v5782_v26, %v12655_v9  ;;  %v5813_v37 = vrot.slane %v5785_v50, %v12655_v9  ;;  %v6037_v29 = vrot.slane %v6027_v30, %v12655_v9  ;;  %12727 = vst [vmem:[#allocation67_spill] sm:$0xff] %v11045_v63 }
 0x572   : > { %2808 = vadd.xlane.f32.xlu0 %v2686_v20  ;;  %v5806_v20 = vrot.slane %v5784_v46, %v12655_v9  ;;  %v6051_v31 = vrot.slane %v6029_v15, %v12655_v9  ;;  %v6058_v42 = vrot.slane %v6030_v51, %v12655_v9  ;;  %v8416_v53 = vadd.s32 4294967192, %v10849_v7  ;;  %v12731_v15 = vld [vmem:[#allocation33_spill] sm:$0xff]  ;;  %v12732_v51 = vld [vmem:[#allocation18_spill] sm:$0xff] }
 0x573   : > { %v5814_v39 = vcombine.low %v5792_v60, %v5799_v43  ;;  %v6059_v62 = vcombine.low %v6037_v29, %v6044_v47  ;;  %v11050_v40 = vsub.s32 %v8409_v58, %v9684_v3  ;;  %v2840_v46 = vadd.f32 %v10379_v32, %v10759_v2 }
 0x574   : > { %2802 = vadd.xlane.f32.xlu1 %v2683_v59  ;;  %v5815_v1 = vcombine.low %v5806_v20, %v5813_v37  ;;  %v6060_v48 = vcombine.low %v6051_v31, %v6058_v42  ;;  %v11053_v52 = vsub.s32 %v8416_v53, %v9684_v3  ;;  %v8175_v26 = vpop.permute.xlu0 %8174  ;;  %v12733_v60 = vsub.f32 %v12731_v15, %v12732_v51  ;;  %v12734_v20 = vld [vmem:[#allocation20_spill] sm:$0xff] }
 0x575   : > { %v5822_v27 = vrot.slane %v5814_v39, %v12655_v9  ;;  %v6067_v59 = vrot.slane %v6059_v62, %v12655_v9  ;;  %12729 = vst [vmem:[#allocation69_spill] sm:$0xff] %v11050_v40  ;;  %v12735_v37 = vsub.f32 %v12674_v41, %v12734_v20  ;;  %v3529_v2 = vrot.slane %v2840_v46, %v12652_v16 }
 0x576   : > { %v5829_v6 = vrot.slane %v5815_v1, %v12655_v9  ;;  %v6074_v21 = vrot.slane %v6060_v48, %v12655_v9  ;;  %12730 = vst [vmem:[#allocation70_spill] sm:$0xff] %v11053_v52  ;;  %v8420_v30 = vrot.slane %v8175_v26, %v11053_v52  ;;  %v2614_v43 = vand.u32 2147483647, %v12733_v60 }
 0x577   : > { %v2617_v47 = vand.u32 2147483647, %v12735_v37  ;;  %v3533_v42 = vrot.slane %v2840_v46, %v10385_v10  ;;  %v3537_v39 = vrot.slane %v2840_v46, %v10388_v23  ;;  %v3541_v1 = vrot.slane %v2840_v46, %v10391_v0 }
 0x578   : > { %v5830_v54 = vcombine.low %v5822_v27, %v5829_v6  ;;  %v6075_v22 = vcombine.low %v6067_v59, %v6074_v21  ;;  %v3549_v62 = vrot.slane %v2840_v46, %v10397_v5  ;;  %v3553_v48 = vrot.slane %v2840_v46, %v10401_v44 }
 0x579   : > { %v3557_v41 = vrot.slane %v2840_v46, %v10404_v19  ;;  %v2845_v27 = vadd.f32 %v10379_v32, %v10735_v33  ;;  %v2688_v6 = vmul.f32 %v10627_v8, %v2617_v47  ;;  %v2685_v59 = vmul.f32 %v10627_v8, %v2614_v43 }
 0x57a   : > { %v5880_v21 = vcombine.low %v3529_v2, %v3533_v42 }
 0x57b   : > { %v5883_v58 = vcombine.low %v3553_v48, %v3557_v41  ;;  %v3689_v53 = vrot.slane %v2845_v27, %v12652_v16  ;;  %v3693_v26 = vrot.slane %v2845_v27, %v10385_v10  ;;  %v3709_v33 = vrot.slane %v2845_v27, %v10397_v5 }
 0x57c   : > { %v3717_v8 = vrot.slane %v2845_v27, %v10404_v19 }
 0x57d   : > { %v5911_v60 = vrot.slane %v5883_v58, %v12655_v9  ;;  %v6125_v43 = vcombine.low %v3689_v53, %v3693_v26 }
 0x585   : > { %8183 = vperm.xlu1 %9000, %v5830_v54   ;;  %v5881_v54 = vcombine.low %v3537_v39, %v3541_v1  ;;  %v6135_v39 = vrot.slane %v6125_v43, %v12655_v9 }
 0x587   : > { %v5897_v15 = vrot.slane %v5881_v54, %v12655_v9 }
 0x588   : > { %8198 = vperm.xlu0 %9001, %v6075_v22  }
 0x597   : > { %v11047_v29 = vpop.xlane.xlu1 %2794 }
 0x598   : > { %12728 = vst [vmem:[#allocation68_spill] sm:$0xff] %v11047_v29 }
 0x59b   : > { %v8172_v36 = vpop.permute.xlu1 %8171 }
 0x59c   : > { %v8413_v50 = vrot.slane %v8172_v36, %v11050_v40  ;;  %v3697_v36 = vrot.slane %v2845_v27, %v10388_v23 }
 0x59e   : > { %v8415_v12 = vsel %vm8414_vm11, %v8413_v50, %v8408_v14  ;;  %v3545_v14 = vrot.slane %v2840_v46, %v10394_v35  ;;  %v3701_v50 = vrot.slane %v2845_v27, %v10391_v0  ;;  %v3705_v46 = vrot.slane %v2845_v27, %v10394_v35 }
 0x59f   : > { %v11067_v31 = vsel %vm8421_vm12, %v8420_v30, %v8415_v12  ;;  %v3713_v30 = vrot.slane %v2845_v27, %v10401_v44  ;;  %v5890_v12 = vrot.slane %v5880_v21, %v12655_v9 }
 0x5a0   : > { %v5882_v22 = vcombine.low %v3545_v14, %v3549_v62  ;;  %v6126_v20 = vcombine.low %v3697_v36, %v3701_v50  ;;  %v6127_v37 = vcombine.low %v3705_v46, %v3709_v33 }
 0x5a1   : > { %v6128_v47 = vcombine.low %v3713_v30, %v3717_v8  ;;  %v5912_v2 = vcombine.low %v5890_v12, %v5897_v15  ;;  %v2847_v8 = vadd.f32 %v10379_v32, %v10743_v45  ;;  %v11127_v45 = vadd.f32 %v10379_v32, %v10771_v55 }
 0x5a2   : > { %v5904_v51 = vrot.slane %v5882_v22, %v12655_v9  ;;  %v6142_v1 = vrot.slane %v6126_v20, %v12655_v9  ;;  %v6149_v14 = vrot.slane %v6127_v37, %v12655_v9  ;;  %v11118_v37 = vadd.f32 %v10379_v32, %v10767_v24 }
 0x5a3   : > { %v6156_v62 = vrot.slane %v6128_v47, %v12655_v9  ;;  %v5920_v48 = vrot.slane %v5912_v2, %v12655_v9  ;;  %12743 = vst [vmem:[#allocation18_spill] sm:$0xff] %v11127_v45 }
 0x5a4   : > { %v5913_v42 = vcombine.low %v5904_v51, %v5911_v60  ;;  %v6157_v27 = vcombine.low %v6135_v39, %v6142_v1  ;;  %v12736_v51 = vld [vmem:[#allocation35_spill] sm:$0xff]  ;;  %v12740_v39 = vld [vmem:[#allocation17_spill] sm:$0xff] }
 0x5a5   : > { %v12737_v60 = vld [vmem:[#allocation19_spill] sm:$0xff] }
 0x5a6   : > { %v5927_v41 = vrot.slane %v5913_v42, %v12655_v9  ;;  %v6165_v54 = vrot.slane %v6157_v27, %v12655_v9  ;;  %v12738_v43 = vsub.f32 %v12736_v51, %v12737_v60  ;;  %v12739_v42 = vld [vmem:[#allocation37_spill] sm:$0xff]  ;;  %v3761_v51 = vrot.slane %v2847_v8, %v10388_v23 }
 0x5a7   : > { %2812 = vadd.xlane.f32.xlu0 %v2688_v6  ;;  %v6158_v6 = vcombine.low %v6149_v14, %v6156_v62  ;;  %v12741_v1 = vsub.f32 %v12739_v42, %v12740_v39  ;;  %v12744_v62 = vld [vmem:[#allocation38_spill] sm:$0xff]  ;;  %v3765_v60 = vrot.slane %v2847_v8, %v10391_v0  ;;  %v12758_v39 = vld [vmem:[#allocation25_spill] sm:$0xff] }
 0x5a8   : > { %v5928_v21 = vcombine.low %v5920_v48, %v5927_v41  ;;  %v2616_v20 = vand.u32 2147483647, %v12738_v43  ;;  %v12745_v48 = vld [vmem:[#allocation21_spill] sm:$0xff]  ;;  %v12756_v43 = vld [vmem:[#allocation34_spill] sm:$0xff] }
 0x5a9   : > { %2806 = vadd.xlane.f32.xlu1 %v2685_v59  ;;  %v2842_v59 = vadd.f32 %v10379_v32, %v10763_v61  ;;  %v6172_v22 = vrot.slane %v6158_v6, %v12655_v9  ;;  %v11123_v14 = vand.u32 2147483647, %v12741_v1  ;;  %v12746_v41 = vsub.f32 %v12744_v62, %v12745_v48  ;;  %v12747_v6 = vld [vmem:[#allocation39_spill] sm:$0xff]  ;;  %v12759_v62 = vld [vmem:[#allocation36_spill] sm:$0xff] }
 0x5aa   : > { %v11163_v42 = vadd.f32 %v10379_v32, %v12756_v43  ;;  %v3773_v1 = vrot.slane %v2847_v8, %v10397_v5  ;;  %v3777_v43 = vrot.slane %v2847_v8, %v10401_v44  ;;  %v6224_v40 = vcombine.low %v3761_v51, %v3765_v60 }
 0x5ab   : > { %v3593_v58 = vrot.slane %v2842_v59, %v12652_v16  ;;  %v3597_v53 = vrot.slane %v2842_v59, %v10385_v10  ;;  %v3601_v26 = vrot.slane %v2842_v59, %v10388_v23  ;;  %v3605_v36 = vrot.slane %v2842_v59, %v10391_v0  ;;  %12742 = vst [vmem:[#allocation33_spill] sm:$0xff] %v11123_v14 }
 0x5ac   : > { %v3609_v50 = vrot.slane %v2842_v59, %v10394_v35  ;;  %v3613_v46 = vrot.slane %v2842_v59, %v10397_v5  ;;  %v3617_v33 = vrot.slane %v2842_v59, %v10401_v44  ;;  %v3621_v61 = vrot.slane %v2842_v59, %v10404_v19  ;;  %v12748_v59 = vld [vmem:[#allocation22_spill] sm:$0xff]  ;;  %12757 = vst [vmem:[#allocation37_spill] sm:$0xff] %v11163_v42 }
 0x5ad   : > { %v6173_v30 = vcombine.low %v6165_v54, %v6172_v22  ;;  %v5978_v12 = vcombine.low %v3593_v58, %v3597_v53  ;;  %v5979_v15 = vcombine.low %v3601_v26, %v3605_v36  ;;  %v2619_v27 = vand.u32 2147483647, %v12746_v41  ;;  %v12752_v22 = vld [vmem:[#allocation23_spill] sm:$0xff]  ;;  %v12755_v26 = vld [vmem:[#allocation24_spill] sm:$0xff]  ;;  %v12762_v41 = vld [vmem:[#allocation45_spill] sm:$0xff] }
 0x5ae   : > { %v5980_v47 = vcombine.low %v3609_v50, %v3613_v46  ;;  %v5981_v2 = vcombine.low %v3617_v33, %v3621_v61  ;;  %v12749_v24 = vsub.f32 %v12747_v6, %v12748_v59  ;;  %v11139_v54 = vadd.f32 %v10379_v32, %v10775_v57  ;;  %v12753_v53 = vld [vmem:[#allocation31_spill] sm:$0xff] }
 0x5af   : > { %v11143_v58 = vadd.f32 %v10379_v32, %v12752_v22  ;;  %v11147_v55 = vadd.f32 %v10379_v32, %v12753_v53  ;;  %v11151_v36 = vadd.f32 %v10379_v32, %v12755_v26  ;;  %v5988_v50 = vrot.slane %v5978_v12, %v12655_v9  ;;  %v12764_v59 = vld [vmem:[#allocation27_spill] sm:$0xff]  ;;  %v12765_v22 = vld [vmem:[#allocation46_spill] sm:$0xff] }
 0x5b0   : > { %12751 = vst [vmem:[#allocation35_spill] sm:$0xff] %v11139_v54  ;;  %v5995_v46 = vrot.slane %v5979_v15, %v12655_v9  ;;  %v3753_v33 = vrot.slane %v2847_v8, %v12652_v16  ;;  %v3757_v57 = vrot.slane %v2847_v8, %v10385_v10  ;;  %v6002_v61 = vrot.slane %v5980_v47, %v12655_v9 }
 0x5b1   : > { %12754 = vst [vmem:[#allocation19_spill] sm:$0xff] %v11147_v55  ;;  %v11167_v12 = vadd.f32 %v10379_v32, %v12758_v39  ;;  %v3769_v15 = vrot.slane %v2847_v8, %v10394_v35  ;;  %v11173_v47 = vadd.f32 %v10379_v32, %v12759_v62  ;;  %v11181_v6 = vadd.f32 %v10379_v32, %v12762_v41  ;;  %v12767_v62 = vld [vmem:[#allocation28_spill] sm:$0xff] }
 0x5b2   : > { %v11189_v53 = vadd.f32 %v10379_v32, %v12765_v22  ;;  %v6010_v26 = vcombine.low %v5988_v50, %v5995_v46  ;;  %v3781_v39 = vrot.slane %v2847_v8, %v10404_v19  ;;  %v6223_v41 = vcombine.low %v3753_v33, %v3757_v57  ;;  %v12771_v50 = vld [vmem:[#allocation49_spill] sm:$0xff] }
 0x5b3   : > { %12760 = vst [vmem:[#allocation17_spill] sm:$0xff] %v11173_v47  ;;  %12763 = vst [vmem:[#allocation38_spill] sm:$0xff] %v11181_v6  ;;  %v11203_v22 = vadd.f32 %v10379_v32, %v12770_v4  ;;  %v11207_v46 = vadd.f32 %v10379_v32, %v12771_v50  ;;  %v6225_v8 = vcombine.low %v3769_v15, %v3773_v1  ;;  %v8423_v15 = vadd.s32 4294967184, %v10849_v7 }
 0x5b4   : > { %12766 = vst [vmem:[#allocation21_spill] sm:$0xff] %v11189_v53  ;;  %v6226_v51 = vcombine.low %v3777_v43, %v3781_v39  ;;  %v3821_v60 = vrot.slane %v11143_v58, %v10385_v10  ;;  %v6233_v50 = vrot.slane %v6223_v41, %v12655_v9  ;;  %v3829_v43 = vrot.slane %v11143_v58, %v10391_v0  ;;  %v11243_v39 = vpop.xlane.xlu0 %2796 }
 0x5b5   : > { %12772 = vst [vmem:[#allocation22_spill] sm:$0xff] %v11207_v46  ;;  %12777 = vst [vmem:[#allocation24_spill] sm:$0xff] %v11243_v39  ;;  %v3833_v34 = vrot.slane %v11143_v58, %v10394_v35  ;;  %v3885_v25 = vrot.slane %v11151_v36, %v10385_v10  ;;  %v3889_v39 = vrot.slane %v11151_v36, %v10388_v23 }
 0x5b6   : > { %v3893_v49 = vrot.slane %v11151_v36, %v10391_v0  ;;  %v11264_v28 = vsub.s32 %v8423_v15, %v9684_v3  ;;  %v6254_v63 = vrot.slane %v6226_v51, %v12655_v9  ;;  %v3905_v11 = vrot.slane %v11151_v36, %v10401_v44 }
 0x5b7   : > { %v3909_v15 = vrot.slane %v11151_v36, %v10404_v19 }
 0x5b8   : > { %12779 = vst [vmem:[#allocation25_spill] sm:$0xff] %v11264_v28  ;;  %v8181_v17 = vpop.permute.xlu0 %8180 }
 0x5b9   : > { %v6422_v55 = vcombine.low %v3905_v11, %v3909_v15 }
 0x5ba   : > { %8189 = vperm.xlu1 %9000, %v5928_v21   ;;  %v11135_v21 = vand.u32 2147483647, %v12749_v24  ;;  %v11185_v24 = vadd.f32 %v10379_v32, %v12764_v59  ;;  %v11199_v59 = vadd.f32 %v10379_v32, %v12768_v38  ;;  %v11220_v38 = vld [vmem:[%s12506_s5] ss:$0 sm:$0xff] }
 0x5bb   : > { %12776 = vst [vmem:[#allocation31_spill] sm:$0xff] %v11220_v38  ;;  %v11223_v4 = vmul.f32 %v11220_v38, %v2619_v27  ;;  %v11226_v57 = vmul.f32 %v11220_v38, %v2616_v20  ;;  %v6240_v27 = vrot.slane %v6224_v40, %v12655_v9  ;;  %v8430_v20 = vadd.s32 4294967176, %v10849_v7 }
 0x5bc   : > { %12750 = vst [vmem:[#allocation20_spill] sm:$0xff] %v11135_v21  ;;  %12769 = vst [vmem:[#allocation39_spill] sm:$0xff] %v11199_v59  ;;  %v3841_v40 = vrot.slane %v11143_v58, %v10401_v44  ;;  %v3845_v7 = vrot.slane %v11143_v58, %v10404_v19 }
 0x5bd   : > { %8204 = vperm.xlu0 %9001, %v6173_v30   ;;  %v6009_v30 = vrot.slane %v5981_v2, %v12655_v9  ;;  %v12761_v2 = vld [vmem:[#allocation26_spill] sm:$0xff]  ;;  %v11272_v46 = vsub.s32 %v8430_v20, %v9684_v3  ;;  %v11280_v53 = vcombine.low %v6233_v50, %v6240_v27  ;;  %v6420_v3 = vcombine.low %v3889_v39, %v3893_v49 }
 0x5be   : > { %v11177_v48 = vadd.f32 %v10379_v32, %v12761_v2  ;;  %v11195_v2 = vadd.f32 %v10379_v32, %v12767_v62  ;;  %v11211_v62 = vadd.f32 %v10379_v32, %v12773_v13  ;;  %v3817_v13 = vrot.slane %v11143_v58, %v12652_v16 }
 0x5bf   : > { %v6011_v52 = vcombine.low %v6002_v61, %v6009_v30  ;;  %v12774_v61 = vld [vmem:[#allocation50_spill] sm:$0xff]  ;;  %v6018_v30 = vrot.slane %v6010_v26, %v12655_v9  ;;  %v3825_v26 = vrot.slane %v11143_v58, %v10388_v23  ;;  %12780 = vst [vmem:[#allocation36_spill] sm:$0xff] %v11272_v46  ;;  %v6324_v47 = vcombine.low %v3841_v40, %v3845_v7 }
 0x5c0   : > { %v11215_v33 = vadd.f32 %v10379_v32, %v12774_v61  ;;  %v6247_v61 = vrot.slane %v6225_v8, %v12655_v9  ;;  %v3881_v8 = vrot.slane %v11151_v36, %v12652_v16  ;;  %v6321_v51 = vcombine.low %v3817_v13, %v3821_v60 }
 0x5c1   : > { %v6025_v1 = vrot.slane %v6011_v52, %v12655_v9  ;;  %v3837_v52 = vrot.slane %v11143_v58, %v10397_v5  ;;  %v3897_v58 = vrot.slane %v11151_v36, %v10394_v35  ;;  %v6322_v56 = vcombine.low %v3825_v26, %v3829_v43 }
 0x5c2   : > { %12775 = vst [vmem:[#allocation23_spill] sm:$0xff] %v11215_v33  ;;  %v3901_v33 = vrot.slane %v11151_v36, %v10397_v5  ;;  %v6419_v42 = vcombine.low %v3881_v8, %v3885_v25  ;;  %v3945_v20 = vrot.slane %v11167_v12, %v12652_v16  ;;  %v8434_v36 = vrot.slane %v8181_v17, %v11272_v46 }
 0x5c3   : > { %v11274_v59 = vcombine.low %v6018_v30, %v6025_v1  ;;  %v6323_v6 = vcombine.low %v3833_v34, %v3837_v52  ;;  %v3949_v13 = vrot.slane %v11167_v12, %v10385_v10  ;;  %v3953_v34 = vrot.slane %v11167_v12, %v10388_v23 }
 0x5c4   : > { %v6421_v1 = vcombine.low %v3897_v58, %v3901_v33  ;;  %v3957_v49 = vrot.slane %v11167_v12, %v10391_v0  ;;  %v3965_v33 = vrot.slane %v11167_v12, %v10397_v5  ;;  %v11301_v17 = vcombine.low %v6247_v61, %v6254_v63 }
 0x5c5   : > { %v3969_v60 = vrot.slane %v11167_v12, %v10401_v44  ;;  %v6331_v50 = vrot.slane %v6321_v51, %v12655_v9  ;;  %v6338_v27 = vrot.slane %v6322_v56, %v12655_v9  ;;  %v6345_v26 = vrot.slane %v6323_v6, %v12655_v9 }
 0x5c6   : > { %v6352_v43 = vrot.slane %v6324_v47, %v12655_v9  ;;  %v6429_v39 = vrot.slane %v6419_v42, %v12655_v9  ;;  %v6436_v52 = vrot.slane %v6420_v3, %v12655_v9  ;;  %v6443_v63 = vrot.slane %v6421_v1, %v12655_v9 }
 0x5c7   : > { %v6450_v61 = vrot.slane %v6422_v55, %v12655_v9  ;;  %v6517_v40 = vcombine.low %v3945_v20, %v3949_v13  ;;  %v6518_v7 = vcombine.low %v3953_v34, %v3957_v49  ;;  %v4013_v56 = vrot.slane %v11177_v48, %v10385_v10 }
 0x5c8   : > { %v4017_v47 = vrot.slane %v11177_v48, %v10388_v23  ;;  %v4021_v42 = vrot.slane %v11177_v48, %v10391_v0  ;;  %v4025_v6 = vrot.slane %v11177_v48, %v10394_v35  ;;  %v4029_v55 = vrot.slane %v11177_v48, %v10397_v5 }
 0x5c9   : > { %v4033_v15 = vrot.slane %v11177_v48, %v10401_v44  ;;  %v4037_v51 = vrot.slane %v11177_v48, %v10404_v19  ;;  %v11335_v1 = vcombine.low %v6331_v50, %v6338_v27  ;;  %v11337_v20 = vcombine.low %v6345_v26, %v6352_v43 }
 0x5ca   : > { %v11341_v13 = vcombine.low %v6443_v63, %v6450_v61  ;;  %v6527_v34 = vrot.slane %v6517_v40, %v12655_v9  ;;  %v4073_v50 = vrot.slane %v11185_v24, %v12652_v16  ;;  %v4077_v27 = vrot.slane %v11185_v24, %v10385_v10 }
 0x5cb   : > { %v4085_v26 = vrot.slane %v11185_v24, %v10391_v0  ;;  %v4089_v43 = vrot.slane %v11185_v24, %v10394_v35  ;;  %v4101_v61 = vrot.slane %v11185_v24, %v10404_v19  ;;  %v4273_v40 = vrot.slane %v11211_v62, %v10388_v23 }
 0x5cc   : > { %v11253_v41 = vpop.xlane.xlu1 %2798  ;;  %v4285_v63 = vrot.slane %v11211_v62, %v10397_v5  ;;  %v4293_v3 = vrot.slane %v11211_v62, %v10404_v19 }
 0x5cd   : > { %12778 = vst [vmem:[#allocation34_spill] sm:$0xff] %v11253_v41 }
 0x5d0   : > { %v8178_v21 = vpop.permute.xlu1 %8177 }
 0x5d1   : > { %v8427_v30 = vrot.slane %v8178_v21, %v11264_v28  ;;  %v3961_v21 = vrot.slane %v11167_v12, %v10394_v35 }
 0x5d3   : > { %v8429_v25 = vsel %vm8428_vm13, %v8427_v30, %v11067_v31  ;;  %v3973_v31 = vrot.slane %v11167_v12, %v10404_v19  ;;  %v6519_v8 = vcombine.low %v3961_v21, %v3965_v33  ;;  %v4009_v12 = vrot.slane %v11177_v48, %v12652_v16 }
 0x5d4   : > { %v11299_v11 = vsel %vm8435_vm14, %v8434_v36, %v8429_v25  ;;  %v11339_v36 = vcombine.low %v6429_v39, %v6436_v52  ;;  %v6534_v25 = vrot.slane %v6518_v7, %v12655_v9  ;;  %v11350_v33 = vcombine.low %v4017_v47, %v4021_v42 }
 0x5d5   : > { %12781 = vst [vmem:[#allocation26_spill] sm:$0xff] %v11299_v11  ;;  %v6520_v58 = vcombine.low %v3969_v60, %v3973_v31  ;;  %v6541_v48 = vrot.slane %v6519_v8, %v12655_v9  ;;  %v11348_v21 = vcombine.low %v4009_v12, %v4013_v56  ;;  %v11352_v60 = vcombine.low %v4025_v6, %v4029_v55 }
 0x5d6   : > { %v11354_v31 = vcombine.low %v4033_v15, %v4037_v51  ;;  %v4093_v39 = vrot.slane %v11185_v24, %v10397_v5  ;;  %v11381_v8 = vcombine.low %v6527_v34, %v6534_v25  ;;  %v6632_v56 = vrot.slane %v11350_v33, %v12655_v9 }
 0x5d7   : > { %v6548_v49 = vrot.slane %v6520_v58, %v12655_v9  ;;  %v6625_v58 = vrot.slane %v11348_v21, %v12655_v9  ;;  %v6639_v47 = vrot.slane %v11352_v60, %v12655_v9  ;;  %v6713_v42 = vcombine.low %v4073_v50, %v4077_v27 }
 0x5d8   : > { %v6715_v55 = vcombine.low %v4089_v43, %v4093_v39  ;;  %v4137_v15 = vrot.slane %v11195_v2, %v12652_v16  ;;  %v4141_v34 = vrot.slane %v11195_v2, %v10385_v10  ;;  %v4145_v25 = vrot.slane %v11195_v2, %v10388_v23 }
 0x5d9   : > { %v11383_v12 = vcombine.low %v6541_v48, %v6548_v49  ;;  %v4149_v48 = vrot.slane %v11195_v2, %v10391_v0  ;;  %v4153_v49 = vrot.slane %v11195_v2, %v10394_v35  ;;  %v4157_v21 = vrot.slane %v11195_v2, %v10397_v5 }
 0x5da   : > { %v4161_v33 = vrot.slane %v11195_v2, %v10401_v44  ;;  %v4165_v60 = vrot.slane %v11195_v2, %v10404_v19  ;;  %v4205_v50 = vrot.slane %v11203_v22, %v10385_v10  ;;  %v4209_v27 = vrot.slane %v11203_v22, %v10388_v23 }
 0x5db   : > { %v4221_v43 = vrot.slane %v11203_v22, %v10397_v5  ;;  %v4225_v2 = vrot.slane %v11203_v22, %v10401_v44  ;;  %v4229_v39 = vrot.slane %v11203_v22, %v10404_v19  ;;  %v4277_v7 = vrot.slane %v11211_v62, %v10391_v0 }
 0x5dc   : > { %2816 = vadd.xlane.f32.xlu0 %v11223_v4  ;;  %v4081_v4 = vrot.slane %v11185_v24, %v10388_v23  ;;  %v4281_v52 = vrot.slane %v11211_v62, %v10394_v35  ;;  %v6811_v30 = vcombine.low %v4137_v15, %v4141_v34  ;;  %v6812_v11 = vcombine.low %v4145_v25, %v4149_v48 }
 0x5dd   : > { %v6813_v46 = vcombine.low %v4153_v49, %v4157_v21  ;;  %v6814_v28 = vcombine.low %v4161_v33, %v4165_v60  ;;  %v6912_v41 = vcombine.low %v4225_v2, %v4229_v39  ;;  %v6723_v45 = vrot.slane %v6713_v42, %v12655_v9  ;;  %v12788_v33 = vld [vmem:[#allocation40_spill] sm:$0xff] }
 0x5de   : > { %2810 = vadd.xlane.f32.xlu1 %v11226_v57  ;;  %v4097_v57 = vrot.slane %v11185_v24, %v10401_v44  ;;  %v6646_v24 = vrot.slane %v11354_v31, %v12655_v9  ;;  %v6714_v6 = vcombine.low %v4081_v4, %v4085_v26  ;;  %v4201_v31 = vrot.slane %v11203_v22, %v12652_v16  ;;  %v12792_v39 = vld [vmem:[#allocation44_spill] sm:$0xff] }
 0x5df   : > { %v4213_v4 = vrot.slane %v11203_v22, %v10391_v0  ;;  %v4217_v26 = vrot.slane %v11203_v22, %v10394_v35  ;;  %v4289_v22 = vrot.slane %v11211_v62, %v10401_v44  ;;  %v7008_v5 = vcombine.low %v4273_v40, %v4277_v7 }
 0x5e0   : > { %v6716_v51 = vcombine.low %v4097_v57, %v4101_v61  ;;  %v4265_v57 = vrot.slane %v11211_v62, %v12652_v16  ;;  %v4269_v61 = vrot.slane %v11211_v62, %v10385_v10  ;;  %v6909_v54 = vcombine.low %v4201_v31, %v4205_v50  ;;  %v12789_v31 = vld [vmem:[#allocation41_spill] sm:$0xff] }
 0x5e1   : > { %v6910_v38 = vcombine.low %v4209_v27, %v4213_v4  ;;  %v6911_v14 = vcombine.low %v4217_v26, %v4221_v43  ;;  %v6730_v29 = vrot.slane %v6714_v6, %v12655_v9  ;;  %v6737_v0 = vrot.slane %v6715_v55, %v12655_v9  ;;  %v12790_v4 = vld [vmem:[#allocation42_spill] sm:$0xff]  ;;  %v12791_v43 = vld [vmem:[#allocation43_spill] sm:$0xff] }
 0x5e2   : > { %v7007_v35 = vcombine.low %v4265_v57, %v4269_v61  ;;  %v6744_v44 = vrot.slane %v6716_v51, %v12655_v9  ;;  %v7009_v23 = vcombine.low %v4281_v52, %v4285_v63  ;;  %v7010_v62 = vcombine.low %v4289_v22, %v4293_v3 }
 0x5e3   : > { %v6821_v15 = vrot.slane %v6811_v30, %v12655_v9  ;;  %v6828_v34 = vrot.slane %v6812_v11, %v12655_v9  ;;  %v6835_v25 = vrot.slane %v6813_v46, %v12655_v9  ;;  %v6842_v48 = vrot.slane %v6814_v28, %v12655_v9 }
 0x5e4   : > { %v6919_v42 = vrot.slane %v6909_v54, %v12655_v9  ;;  %v6926_v6 = vrot.slane %v6910_v38, %v12655_v9  ;;  %v6933_v40 = vrot.slane %v6911_v14, %v12655_v9  ;;  %v6940_v7 = vrot.slane %v6912_v41, %v12655_v9 }
 0x5e5   : > { %v6647_v52 = vcombine.low %v6625_v58, %v6632_v56  ;;  %v6648_v3 = vcombine.low %v6639_v47, %v6646_v24  ;;  %v7017_v30 = vrot.slane %v7007_v35, %v12655_v9  ;;  %v7024_v11 = vrot.slane %v7008_v5, %v12655_v9 }
 0x5e6   : > { %v12782_v46 = vrot.slane %v11301_v17, %v12655_v9  ;;  %v12783_v28 = vrot.slane %v11280_v53, %v12655_v9  ;;  %v12784_v14 = vrot.slane %v11337_v20, %v12655_v9  ;;  %v12785_v38 = vrot.slane %v11335_v1, %v12655_v9 }
 0x5e7   : > { %v7031_v41 = vrot.slane %v7009_v23, %v12655_v9  ;;  %v7038_v35 = vrot.slane %v7010_v62, %v12655_v9  ;;  %v6745_v63 = vcombine.low %v6723_v45, %v6730_v29  ;;  %v6746_v5 = vcombine.low %v6737_v0, %v6744_v44 }
 0x5e8   : > { %v6271_v54 = vcombine.low %v12783_v28, %v12782_v46  ;;  %v6843_v58 = vcombine.low %v6821_v15, %v6828_v34  ;;  %v6844_v56 = vcombine.low %v6835_v25, %v6842_v48  ;;  %v12786_v53 = vrot.slane %v11341_v13, %v12655_v9 }
 0x5e9   : > { %v12787_v17 = vrot.slane %v11339_v36, %v12655_v9  ;;  %v6557_v1 = vrot.slane %v11381_v8, %v12655_v9  ;;  %v6941_v47 = vcombine.low %v6919_v42, %v6926_v6  ;;  %v6942_v24 = vcombine.low %v6933_v40, %v6940_v7  ;;  %v12793_v6 = vld [vmem:[#allocation68_spill] sm:$0xff] }
 0x5ea   : > { %v6564_v23 = vrot.slane %v11383_v12, %v12655_v9  ;;  %v6655_v0 = vrot.slane %v6647_v52, %v12655_v9  ;;  %v6662_v44 = vrot.slane %v6648_v3, %v12655_v9  ;;  %v7039_v29 = vcombine.low %v7017_v30, %v7024_v11 }
 0x5eb   : > { %v6467_v20 = vcombine.low %v12787_v17, %v12786_v53  ;;  %v2871_v45 = vadd.f32 %v10379_v32, %v10910_v18  ;;  %v7040_v13 = vcombine.low %v7031_v41, %v7038_v35  ;;  %v3657_v36 = vrot.slane %v11118_v37, %v12652_v16 }
 0x5ec   : > { %v3661_v8 = vrot.slane %v11118_v37, %v10385_v10  ;;  %v6753_v55 = vrot.slane %v6745_v63, %v12655_v9  ;;  %v6760_v51 = vrot.slane %v6746_v5, %v12655_v9  ;;  %v6851_v12 = vrot.slane %v6843_v58, %v12655_v9  ;;  %v12794_v5 = vld [vmem:[#allocation18_spill] sm:$0xff] }
 0x5ed   : > { %v6858_v49 = vrot.slane %v6844_v56, %v12655_v9  ;;  %v6949_v21 = vrot.slane %v6941_v47, %v12655_v9  ;;  %v6956_v18 = vrot.slane %v6942_v24, %v12655_v9  ;;  %v3665_v60 = vrot.slane %v11118_v37, %v12788_v33 }
 0x5ee   : > { %v3669_v50 = vrot.slane %v11118_v37, %v12789_v31  ;;  %v7047_v27 = vrot.slane %v7039_v29, %v12655_v9  ;;  %v3673_v26 = vrot.slane %v11118_v37, %v12790_v4  ;;  %v3677_v2 = vrot.slane %v11118_v37, %v12791_v43 }
 0x5ef   : > { %8195 = vperm.xlu1 %9000, %v11274_v59   ;;  %v6369_v59 = vcombine.low %v12785_v38, %v12784_v14  ;;  %v3681_v57 = vrot.slane %v11118_v37, %v12792_v39  ;;  %v7054_v61 = vrot.slane %v7040_v13, %v12655_v9  ;;  %v4521_v22 = vrot.slane %v2871_v45, %v12652_v16 }
 0x5f0   : > { %v3685_v62 = vrot.slane %v11118_v37, %v10404_v19  ;;  %v11509_v15 = vcombine.low %v3657_v36, %v3661_v8  ;;  %v4525_v34 = vrot.slane %v2871_v45, %v10385_v10  ;;  %v4529_v25 = vrot.slane %v2871_v45, %v12788_v33 }
 0x5f1   : > { %v4533_v48 = vrot.slane %v2871_v45, %v12789_v31  ;;  %v4537_v42 = vrot.slane %v2871_v45, %v12790_v4  ;;  %v2873_v40 = vadd.f32 %v10379_v32, %v12793_v6  ;;  %v4541_v7 = vrot.slane %v2871_v45, %v12791_v43 }
 0x5f2   : > { %8210 = vperm.xlu0 %9001, %v6271_v54   ;;  %v4545_v52 = vrot.slane %v2871_v45, %v12792_v39  ;;  %v4549_v37 = vrot.slane %v2871_v45, %v10404_v19  ;;  %v6565_v3 = vcombine.low %v6557_v1, %v6564_v23  ;;  %v6663_v30 = vcombine.low %v6655_v0, %v6662_v44  ;;  %v12795_v0 = vld [vmem:[#allocation34_spill] sm:$0xff] }
 0x5f3   : > { %v6761_v11 = vcombine.low %v6753_v55, %v6760_v51  ;;  %v11520_v46 = vcombine.low %v6851_v12, %v6858_v49  ;;  %v11522_v28 = vcombine.low %v6949_v21, %v6956_v18  ;;  %v6077_v54 = vcombine.low %v3665_v60, %v3669_v50 }
 0x5f4   : > { %v6078_v14 = vcombine.low %v3673_v26, %v3677_v2  ;;  %v6079_v38 = vcombine.low %v3681_v57, %v3685_v62  ;;  %v11526_v41 = vcombine.low %v7047_v27, %v7054_v61  ;;  %v7399_v35 = vcombine.low %v4521_v22, %v4525_v34  ;;  %v12796_v61 = vld [vmem:[#allocation55_spill] sm:$0xff] }
 0x5f5   : > { %v6086_v63 = vrot.slane %v11509_v15, %v12655_v9  ;;  %v3721_v58 = vrot.slane %v12794_v5, %v12652_v16  ;;  %v7400_v56 = vcombine.low %v4529_v25, %v4533_v48  ;;  %v7401_v53 = vcombine.low %v4537_v42, %v4541_v7  ;;  %v12797_v7 = vld [vmem:[#allocation54_spill] sm:$0xff] }
 0x5f6   : > { %8216 = vperm.xlu0 %9001, %v6369_v59   ;;  %v11524_v59 = vpop.xlane.xlu0 %2800  ;;  %v7402_v17 = vcombine.low %v4545_v52, %v4549_v37  ;;  %v4589_v1 = vrot.slane %v2873_v40, %v10385_v10  ;;  %v4593_v47 = vrot.slane %v2873_v40, %v12788_v33  ;;  %v4597_v24 = vrot.slane %v2873_v40, %v12789_v31 }
 0x5f7   : > { %v4601_v23 = vrot.slane %v2873_v40, %v12790_v4  ;;  %v2875_v44 = vadd.f32 %v10379_v32, %v12795_v0  ;;  %v4605_v29 = vrot.slane %v2873_v40, %v12791_v43  ;;  %v4609_v45 = vrot.slane %v2873_v40, %v12792_v39 }
 0x5f8   : > { %v4613_v13 = vrot.slane %v2873_v40, %v10404_v19  ;;  %v6093_v55 = vrot.slane %v6077_v54, %v12655_v9  ;;  %v6100_v51 = vrot.slane %v6078_v14, %v12655_v9  ;;  %v6107_v12 = vrot.slane %v6079_v38, %v12655_v9 }
 0x5f9   : > { %v3725_v49 = vrot.slane %v12794_v5, %v10385_v10  ;;  %v7409_v21 = vrot.slane %v7399_v35, %v12655_v9  ;;  %v7416_v18 = vrot.slane %v7400_v56, %v12655_v9  ;;  %v3729_v60 = vrot.slane %v12794_v5, %v12788_v33 }
 0x5fa   : > { %8222 = vperm.xlu0 %9001, %v6467_v20   ;;  %v4585_v20 = vrot.slane %v2873_v40, %v12652_v16  ;;  %v8187_v36 = vpop.permute.xlu0 %8186  ;;  %v3733_v50 = vrot.slane %v12794_v5, %v12789_v31  ;;  %v7423_v27 = vrot.slane %v7401_v53, %v12655_v9  ;;  %v7430_v26 = vrot.slane %v7402_v17, %v12655_v9 }
 0x5fb   : > { %v7498_v57 = vcombine.low %v4593_v47, %v4597_v24  ;;  %v8444_v22 = vrot.slane %v8187_v36, %v12796_v61  ;;  %v7499_v62 = vcombine.low %v4601_v23, %v4605_v29  ;;  %v7500_v15 = vcombine.low %v4609_v45, %v4613_v13 }
 0x5fc   : > { %v7497_v2 = vcombine.low %v4585_v20, %v4589_v1  ;;  %v4649_v34 = vrot.slane %v2875_v44, %v12652_v16  ;;  %v4653_v48 = vrot.slane %v2875_v44, %v10385_v10  ;;  %v4657_v42 = vrot.slane %v2875_v44, %v12788_v33 }
 0x5fd   : > { %v4661_v6 = vrot.slane %v2875_v44, %v12789_v31  ;;  %v4665_v40 = vrot.slane %v2875_v44, %v12790_v4  ;;  %v4669_v37 = vrot.slane %v2875_v44, %v12791_v43  ;;  %v11566_v14 = vcombine.low %v6086_v63, %v6093_v55 }
 0x5fe   : > { %8228 = vperm.xlu0 %9001, %v6565_v3   ;;  %v4673_v3 = vrot.slane %v2875_v44, %v12792_v39  ;;  %v11568_v38 = vcombine.low %v6100_v51, %v6107_v12  ;;  %v3737_v35 = vrot.slane %v12794_v5, %v12790_v4  ;;  %v7431_v53 = vcombine.low %v7409_v21, %v7416_v18 }
 0x5ff   : > { %v3741_v17 = vrot.slane %v12794_v5, %v12791_v43  ;;  %v7507_v20 = vrot.slane %v7497_v2, %v12655_v9  ;;  %v7514_v1 = vrot.slane %v7498_v57, %v12655_v9  ;;  %v7521_v63 = vrot.slane %v7499_v62, %v12655_v9 }
 0x600   : > { %v7528_v47 = vrot.slane %v7500_v15, %v12655_v9  ;;  %v7595_v24 = vcombine.low %v4649_v34, %v4653_v48  ;;  %v7596_v23 = vcombine.low %v4657_v42, %v4661_v6  ;;  %v7597_v0 = vcombine.low %v4665_v40, %v4669_v37 }
 0x601   : > { %v2803_v8 = vpop.xlane.xlu1 %2802  ;;  %v3745_v12 = vrot.slane %v12794_v5, %v12792_v39  ;;  %v3749_v21 = vrot.slane %v12794_v5, %v10404_v19  ;;  %v6174_v18 = vcombine.low %v3721_v58, %v3725_v49  ;;  %v7529_v57 = vcombine.low %v7507_v20, %v7514_v1 }
 0x602   : > { %8234 = vperm.xlu0 %9001, %v6663_v30   ;;  %v4677_v30 = vrot.slane %v2875_v44, %v10404_v19  ;;  %v2877_v54 = vadd.f32 %v10379_v32, %v2803_v8  ;;  %v7605_v62 = vrot.slane %v7595_v24, %v12655_v9  ;;  %v7612_v15 = vrot.slane %v7596_v23, %v12655_v9 }
 0x603   : > { %v7619_v34 = vrot.slane %v7597_v0, %v12655_v9  ;;  %v6116_v42 = vrot.slane %v11566_v14, %v12655_v9  ;;  %v6176_v6 = vcombine.low %v3737_v35, %v3741_v17  ;;  %v6177_v40 = vcombine.low %v3745_v12, %v3749_v21 }
 0x604   : > { %v7598_v44 = vcombine.low %v4673_v3, %v4677_v30  ;;  %v4713_v29 = vrot.slane %v2877_v54, %v12652_v16  ;;  %v4717_v45 = vrot.slane %v2877_v54, %v10385_v10  ;;  %v4721_v13 = vrot.slane %v2877_v54, %v12788_v33 }
 0x605   : > { %v8184_v25 = vpop.permute.xlu1 %8183  ;;  %v4725_v36 = vrot.slane %v2877_v54, %v12789_v31  ;;  %v4729_v8 = vrot.slane %v2877_v54, %v12790_v4  ;;  %v4733_v55 = vrot.slane %v2877_v54, %v12791_v43  ;;  %v4737_v51 = vrot.slane %v2877_v54, %v12792_v39 }
 0x606   : > { %v8440_v52 = vrot.slane %v8184_v25, %v12797_v7  ;;  %8240 = vperm.xlu0 %9001, %v6761_v11   ;;  %v7432_v11 = vcombine.low %v7423_v27, %v7430_v26  ;;  %v6175_v27 = vcombine.low %v3729_v60, %v3733_v50  ;;  %v7439_v26 = vrot.slane %v7431_v53, %v12655_v9  ;;  %v12798_v60 = vld [vmem:[#allocation33_spill] sm:$0xff] }
 0x607   : > { %v7626_v25 = vrot.slane %v7598_v44, %v12655_v9  ;;  %v7693_v48 = vcombine.low %v4713_v29, %v4717_v45  ;;  %v7694_v5 = vcombine.low %v4721_v13, %v4725_v36  ;;  %v7695_v58 = vcombine.low %v4729_v8, %v4733_v55  ;;  %v12801_v45 = vld [vmem:[#allocation32_spill] sm:$0xff] }
 0x608   : > { %v11573_v56 = vsel %vm8337_vm0, %v8444_v22, %v8440_v52  ;;  %v7446_v2 = vrot.slane %v7432_v11, %v12655_v9  ;;  %v7530_v22 = vcombine.low %v7521_v63, %v7528_v47  ;;  %v6123_v37 = vrot.slane %v11568_v38, %v12655_v9  ;;  %v12800_v63 = vld [vmem:[#allocation35_spill] sm:$0xff] }
 0x609   : > { %v6184_v3 = vrot.slane %v6174_v18, %v12655_v9  ;;  %v6191_v30 = vrot.slane %v6175_v27, %v12655_v9  ;;  %v7627_v11 = vcombine.low %v7605_v62, %v7612_v15  ;;  %v7628_v20 = vcombine.low %v7619_v34, %v7626_v25  ;;  %v12802_v18 = vld [vmem:[#allocation51_spill] sm:$0xff] }
 0x60a   : > { %8246 = vperm.xlu0 %9001, %v11520_v46   ;;  %v4741_v46 = vrot.slane %v2877_v54, %v10404_v19  ;;  %v7447_v52 = vcombine.low %v7439_v26, %v7446_v2  ;;  %v7537_v54 = vrot.slane %v7529_v57, %v12655_v9  ;;  %v7544_v53 = vrot.slane %v7530_v22, %v12655_v9  ;;  %v12803_v26 = vld [vmem:[#allocation53_spill] sm:$0xff] }
 0x60b   : > { %v7703_v14 = vrot.slane %v7693_v48, %v12655_v9  ;;  %v7710_v35 = vrot.slane %v7694_v5, %v12655_v9  ;;  %v6198_v38 = vrot.slane %v6176_v6, %v12655_v9  ;;  %v6205_v1 = vrot.slane %v6177_v40, %v12655_v9  ;;  %v12804_v5 = vld [vmem:[#allocation19_spill] sm:$0xff] }
 0x60c   : > { %v7696_v49 = vcombine.low %v4737_v51, %v4741_v46  ;;  %v3785_v47 = vrot.slane %v12800_v63, %v12652_v16  ;;  %v3789_v24 = vrot.slane %v12800_v63, %v10385_v10  ;;  %v3793_v23 = vrot.slane %v12800_v63, %v12788_v33 }
 0x60d   : > { %v3797_v0 = vrot.slane %v12800_v63, %v12789_v31  ;;  %v3801_v44 = vrot.slane %v12800_v63, %v12790_v4  ;;  %v3805_v29 = vrot.slane %v12800_v63, %v12791_v43  ;;  %v11635_v13 = vadd.f32 %v10379_v32, %v12801_v45 }
 0x60e   : > { %8252 = vperm.xlu0 %9001, %v11522_v28   ;;  %v12799_v28 = vld [vmem:[#allocation31_spill] sm:$0xff]  ;;  %v7724_v17 = vrot.slane %v7696_v49, %v12655_v9  ;;  %v7545_v36 = vcombine.low %v7537_v54, %v7544_v53  ;;  %v3809_v8 = vrot.slane %v12800_v63, %v12792_v39  ;;  %v3813_v55 = vrot.slane %v12800_v63, %v10404_v19  ;;  %v12805_v54 = vld [vmem:[#allocation37_spill] sm:$0xff] }
 0x60f   : > { %v2689_v50 = vmul.f32 %v12799_v28, %v12798_v60  ;;  %v7635_v51 = vrot.slane %v7627_v11, %v12655_v9  ;;  %v7642_v46 = vrot.slane %v7628_v20, %v12655_v9  ;;  %v7725_v12 = vcombine.low %v7703_v14, %v7710_v35 }
 0x610   : > { %v11645_v27 = vadd.f32 %v10379_v32, %v12802_v18  ;;  %v11649_v2 = vadd.f32 %v10379_v32, %v12803_v26  ;;  %v6124_v57 = vcombine.low %v6116_v42, %v6123_v37  ;;  %v11651_v22 = vcombine.low %v6184_v3, %v6191_v30 }
 0x611   : > { %v11653_v62 = vcombine.low %v6198_v38, %v6205_v1  ;;  %v6272_v15 = vcombine.low %v3785_v47, %v3789_v24  ;;  %v6273_v34 = vcombine.low %v3793_v23, %v3797_v0  ;;  %v6274_v25 = vcombine.low %v3801_v44, %v3805_v29  ;;  %v11687_v23 = vpop.xlane.xlu0 %2804 }
 0x612   : > { %8258 = vperm.xlu0 %9001, %v11526_v41   ;;  %v7717_v41 = vrot.slane %v7695_v58, %v12655_v9  ;;  %v6275_v48 = vcombine.low %v3809_v8, %v3813_v55  ;;  %v3849_v58 = vrot.slane %v12804_v5, %v12652_v16  ;;  %v3853_v49 = vrot.slane %v12804_v5, %v10385_v10 }
 0x613   : > { %2814 = vadd.xlane.f32.xlu1 %v2689_v50  ;;  %v3857_v60 = vrot.slane %v12804_v5, %v12788_v33  ;;  %v7643_v50 = vcombine.low %v7635_v51, %v7642_v46  ;;  %v7733_v42 = vrot.slane %v7725_v12, %v12655_v9  ;;  %v3861_v40 = vrot.slane %v12804_v5, %v12789_v31 }
 0x614   : > { %v7726_v21 = vcombine.low %v7717_v41, %v7724_v17  ;;  %v3869_v37 = vrot.slane %v12804_v5, %v12791_v43  ;;  %v3873_v3 = vrot.slane %v12804_v5, %v12792_v39  ;;  %v3877_v30 = vrot.slane %v12804_v5, %v10404_v19  ;;  %12806 = vst [vmem:[#allocation45_spill] sm:$0xff] %v11687_v23 }
 0x615   : > { %v3913_v53 = vrot.slane %v12805_v54, %v12652_v16  ;;  %v3917_v11 = vrot.slane %v12805_v54, %v10385_v10  ;;  %v3921_v20 = vrot.slane %v12805_v54, %v12788_v33  ;;  %v3925_v14 = vrot.slane %v12805_v54, %v12789_v31 }
 0x616   : > { %8282 = vperm.xlu0 %9001, %v7447_v52   ;;  %v7740_v6 = vrot.slane %v7726_v21, %v12655_v9  ;;  %v3865_v52 = vrot.slane %v12804_v5, %v12790_v4  ;;  %v6214_v35 = vrot.slane %v11651_v22, %v12655_v9  ;;  %v6282_v41 = vrot.slane %v6272_v15, %v12655_v9  ;;  %v12807_v21 = vld [vmem:[#allocation17_spill] sm:$0xff] }
 0x617   : > { %v6289_v17 = vrot.slane %v6273_v34, %v12655_v9  ;;  %v6296_v38 = vrot.slane %v6274_v25, %v12655_v9  ;;  %v6303_v63 = vrot.slane %v6275_v48, %v12655_v9  ;;  %v6370_v47 = vcombine.low %v3849_v58, %v3853_v49  ;;  %v11708_v48 = vpop.permute.xlu0 %8192 }
 0x618   : > { %v7741_v1 = vcombine.low %v7733_v42, %v7740_v6  ;;  %v6371_v24 = vcombine.low %v3857_v60, %v3861_v40  ;;  %v6372_v0 = vcombine.low %v3865_v52, %v3869_v37  ;;  %v6373_v44 = vcombine.low %v3873_v3, %v3877_v30  ;;  %v12808_v3 = vld [vmem:[#allocation47_spill] sm:$0xff] }
 0x619   : > { %v3929_v29 = vrot.slane %v12805_v54, %v12790_v4  ;;  %v3933_v45 = vrot.slane %v12805_v54, %v12791_v43  ;;  %v3941_v8 = vrot.slane %v12805_v54, %v10404_v19  ;;  %v6468_v55 = vcombine.low %v3913_v53, %v3917_v11 }
 0x61a   : > { %8288 = vperm.xlu0 %9001, %v7545_v36   ;;  %v3937_v36 = vrot.slane %v12805_v54, %v12792_v39  ;;  %v6469_v51 = vcombine.low %v3921_v20, %v3925_v14  ;;  %v6221_v46 = vrot.slane %v11653_v62, %v12655_v9  ;;  %v6304_v12 = vcombine.low %v6282_v41, %v6289_v17  ;;  %v12809_v54 = vld [vmem:[#allocation20_spill] sm:$0xff] }
 0x61b   : > { %v3977_v18 = vrot.slane %v12807_v21, %v12652_v16  ;;  %v3981_v26 = vrot.slane %v12807_v21, %v10385_v10  ;;  %v6305_v22 = vcombine.low %v6296_v38, %v6303_v63  ;;  %v6380_v15 = vrot.slane %v6370_v47, %v12655_v9  ;;  %v2809_v14 = vpop.xlane.xlu0 %2808 }
 0x61c   : > { %v3985_v34 = vrot.slane %v12807_v21, %v12788_v33  ;;  %v3989_v25 = vrot.slane %v12807_v21, %v12789_v31  ;;  %v6387_v62 = vrot.slane %v6371_v24, %v12655_v9  ;;  %v6394_v5 = vrot.slane %v6372_v0, %v12655_v9 }
 0x61d   : > { %v6401_v58 = vrot.slane %v6373_v44, %v12655_v9  ;;  %v6470_v49 = vcombine.low %v3929_v29, %v3933_v45  ;;  %v6471_v60 = vcombine.low %v3937_v36, %v3941_v8  ;;  %v3993_v42 = vrot.slane %v12807_v21, %v12790_v4 }
 0x61e   : > { %8294 = vperm.xlu0 %9001, %v7643_v50   ;;  %v6485_v50 = vrot.slane %v6469_v51, %v12655_v9  ;;  %v3997_v6 = vrot.slane %v12807_v21, %v12791_v43  ;;  %v4001_v40 = vrot.slane %v12807_v21, %v12792_v39  ;;  %v4005_v52 = vrot.slane %v12807_v21, %v10404_v19 }
 0x61f   : > { %v6566_v37 = vcombine.low %v3977_v18, %v3981_v26  ;;  %v11725_v30 = vadd.f32 %v10379_v32, %v12808_v3  ;;  %v11729_v53 = vmul.f32 %v12799_v28, %v12809_v54  ;;  %v11731_v11 = vcombine.low %v6214_v35, %v6221_v46  ;;  %v12810_v28 = vld [vmem:[#allocation38_spill] sm:$0xff]  ;;  %v12811_v26 = vld [vmem:[#allocation64_spill] sm:$0xff] }
 0x620   : > { %v6567_v20 = vcombine.low %v3985_v34, %v3989_v25  ;;  %v6312_v41 = vrot.slane %v6304_v12, %v12655_v9  ;;  %v6319_v17 = vrot.slane %v6305_v22, %v12655_v9  ;;  %v11735_v38 = vcombine.low %v6380_v15, %v6387_v62 }
 0x621   : > { %v6492_v63 = vrot.slane %v6470_v49, %v12655_v9  ;;  %v6499_v47 = vrot.slane %v6471_v60, %v12655_v9  ;;  %v4041_v35 = vrot.slane %v12810_v28, %v12652_v16  ;;  %v6568_v0 = vcombine.low %v3993_v42, %v3997_v6 }
 0x622   : > { %8300 = vperm.xlu0 %9001, %v7741_v1   ;;  %v11737_v1 = vcombine.low %v6394_v5, %v6401_v58  ;;  %v6569_v44 = vcombine.low %v4001_v40, %v4005_v52  ;;  %v6576_v29 = vrot.slane %v6566_v37, %v12655_v9  ;;  %v4045_v45 = vrot.slane %v12810_v28, %v10385_v10  ;;  %v12812_v37 = vld [vmem:[#allocation21_spill] sm:$0xff] }
 0x623   : > { %v2880_v36 = vadd.f32 %v10379_v32, %v2809_v14  ;;  %v6583_v8 = vrot.slane %v6567_v20, %v12655_v9  ;;  %v4053_v51 = vrot.slane %v12810_v28, %v12789_v31  ;;  %v4057_v46 = vrot.slane %v12810_v28, %v12790_v4 }
 0x624   : > { %8201 = vperm.xlu1 %9000, %v6124_v57   ;;  %v6478_v57 = vrot.slane %v6468_v55, %v12655_v9  ;;  %v4049_v55 = vrot.slane %v12810_v28, %v12788_v33  ;;  %v4061_v12 = vrot.slane %v12810_v28, %v12791_v43  ;;  %v4065_v21 = vrot.slane %v12810_v28, %v12792_v39 }
 0x625   : > { %v4069_v18 = vrot.slane %v12810_v28, %v10404_v19  ;;  %v11764_v22 = vadd.f32 %v10379_v32, %v12811_v26  ;;  %v11766_v15 = vcombine.low %v6312_v41, %v6319_v17  ;;  %v11772_v62 = vcombine.low %v6492_v63, %v6499_v47 }
 0x626   : > { %v11741_v24 = vcombine.low %v6478_v57, %v6485_v50  ;;  %v6590_v58 = vrot.slane %v6568_v0, %v12655_v9  ;;  %v6597_v49 = vrot.slane %v6569_v44, %v12655_v9  ;;  %v4809_v60 = vrot.slane %v2880_v36, %v12652_v16 }
 0x627   : > { %v4813_v57 = vrot.slane %v2880_v36, %v10385_v10  ;;  %v11780_v50 = vcombine.low %v6576_v29, %v6583_v8  ;;  %v11782_v42 = vcombine.low %v4041_v35, %v4045_v45  ;;  %v11784_v6 = vcombine.low %v4049_v55, %v4053_v51 }
 0x628   : > { %v11786_v40 = vcombine.low %v4057_v46, %v4061_v12  ;;  %v11788_v52 = vcombine.low %v4065_v21, %v4069_v18  ;;  %v4105_v3 = vrot.slane %v12812_v37, %v12652_v16  ;;  %v4109_v54 = vrot.slane %v12812_v37, %v10385_v10 }
 0x629   : > { %v4113_v20 = vrot.slane %v12812_v37, %v12788_v33  ;;  %v4117_v14 = vrot.slane %v12812_v37, %v12789_v31  ;;  %v4121_v41 = vrot.slane %v12812_v37, %v12790_v4  ;;  %v4817_v17 = vrot.slane %v2880_v36, %v12788_v33 }
 0x62a   : > { %v4821_v63 = vrot.slane %v2880_v36, %v12789_v31  ;;  %v4825_v47 = vrot.slane %v2880_v36, %v12790_v4  ;;  %v4125_v28 = vrot.slane %v12812_v37, %v12791_v43  ;;  %v4829_v35 = vrot.slane %v2880_v36, %v12791_v43 }
 0x62b   : > { %v4833_v0 = vrot.slane %v2880_v36, %v12792_v39  ;;  %v4837_v44 = vrot.slane %v2880_v36, %v10404_v19  ;;  %v7840_v29 = vcombine.low %v4809_v60, %v4813_v57  ;;  %v11808_v45 = vcombine.low %v6590_v58, %v6597_v49  ;;  %v12813_v57 = vld [vmem:[#allocation57_spill] sm:$0xff] }
 0x62c   : > { %v6695_v12 = vrot.slane %v11788_v52, %v12655_v9  ;;  %v4129_v21 = vrot.slane %v12812_v37, %v12792_v39  ;;  %v4133_v36 = vrot.slane %v12812_v37, %v10404_v19  ;;  %v11822_v18 = vcombine.low %v4105_v3, %v4109_v54 }
 0x62d   : > { %v7841_v58 = vcombine.low %v4817_v17, %v4821_v63  ;;  %v11825_v49 = vcombine.low %v4113_v20, %v4117_v14  ;;  %v11827_v60 = vcombine.low %v4121_v41, %v4125_v28  ;;  %v8454_v5 = vrot.slane %v11708_v48, %v12813_v57  ;;  %v12814_v63 = vld [vmem:[#allocation56_spill] sm:$0xff] }
 0x62e   : > { %v7842_v34 = vcombine.low %v4825_v47, %v4829_v35  ;;  %v7843_v52 = vcombine.low %v4833_v0, %v4837_v44  ;;  %v7850_v25 = vrot.slane %v7840_v29, %v12655_v9 }
 0x62f   : > { %v7857_v0 = vrot.slane %v7841_v58, %v12655_v9 }
 0x630   : > { %v7871_v8 = vrot.slane %v7843_v52, %v12655_v9 }
 0x636   : > { %v2807_v46 = vpop.xlane.xlu1 %2806 }
 0x637   : > { %v2879_v26 = vadd.f32 %v10379_v32, %v2807_v46  ;;  %v7864_v46 = vrot.slane %v7842_v34, %v12655_v9 }
 0x639   : > { %v4777_v51 = vrot.slane %v2879_v26, %v12652_v16  ;;  %v4781_v37 = vrot.slane %v2879_v26, %v10385_v10  ;;  %v4785_v3 = vrot.slane %v2879_v26, %v12788_v33  ;;  %v4789_v54 = vrot.slane %v2879_v26, %v12789_v31 }
 0x63a   : > { %v8190_v17 = vpop.permute.xlu1 %8189  ;;  %v4793_v20 = vrot.slane %v2879_v26, %v12790_v4  ;;  %v4797_v14 = vrot.slane %v2879_v26, %v12791_v43  ;;  %v4801_v41 = vrot.slane %v2879_v26, %v12792_v39  ;;  %v4805_v48 = vrot.slane %v2879_v26, %v10404_v19  ;;  %v12815_v26 = vld [vmem:[#allocation39_spill] sm:$0xff] }
 0x63b   : > { %v8449_v47 = vrot.slane %v8190_v17, %v12814_v63  ;;  %v7791_v28 = vcombine.low %v4777_v51, %v4781_v37  ;;  %v7792_v35 = vcombine.low %v4785_v3, %v4789_v54  ;;  %v4169_v17 = vrot.slane %v12815_v26, %v12652_v16 }
 0x63c   : > { %v7793_v44 = vcombine.low %v4793_v20, %v4797_v14  ;;  %v7794_v29 = vcombine.low %v4801_v41, %v4805_v48  ;;  %v4173_v34 = vrot.slane %v12815_v26, %v10385_v10  ;;  %v6765_v3 = vcombine.low %v4129_v21, %v4133_v36 }
 0x63d   : > { %v8450_v55 = vsel %vm8344_vm1, %v8449_v47, %v11573_v56  ;;  %v7801_v57 = vrot.slane %v7791_v28, %v12655_v9  ;;  %v7808_v61 = vrot.slane %v7792_v35, %v12655_v9  ;;  %v4177_v56 = vrot.slane %v12815_v26, %v12788_v33 }
 0x63e   : > { %v7815_v51 = vrot.slane %v7793_v44, %v12655_v9  ;;  %v7822_v58 = vrot.slane %v7794_v29, %v12655_v9  ;;  %v11853_v37 = vsel %vm8351_vm2, %v8454_v5, %v8450_v55  ;;  %v4181_v54 = vrot.slane %v12815_v26, %v12789_v31 }
 0x63f   : > { %v7823_v52 = vcombine.low %v7801_v57, %v7808_v61  ;;  %v7872_v14 = vcombine.low %v7850_v25, %v7857_v0  ;;  %v7873_v41 = vcombine.low %v7864_v46, %v7871_v8  ;;  %v4185_v48 = vrot.slane %v12815_v26, %v12790_v4  ;;  %v12816_v57 = vld [vmem:[#allocation22_spill] sm:$0xff] }
 0x640   : > { %v7824_v20 = vcombine.low %v7815_v51, %v7822_v58  ;;  %v4189_v55 = vrot.slane %v12815_v26, %v12791_v43  ;;  %v4193_v61 = vrot.slane %v12815_v26, %v12792_v39  ;;  %v4197_v21 = vrot.slane %v12815_v26, %v10404_v19 }
 0x641   : > { %v7831_v5 = vrot.slane %v7823_v52, %v12655_v9  ;;  %v4233_v25 = vrot.slane %v12816_v57, %v12652_v16  ;;  %v4237_v8 = vrot.slane %v12816_v57, %v10385_v10  ;;  %v4241_v47 = vrot.slane %v12816_v57, %v12788_v33 }
 0x642   : > { %v7838_v36 = vrot.slane %v7824_v20, %v12655_v9  ;;  %v4245_v28 = vrot.slane %v12816_v57, %v12789_v31  ;;  %v4249_v35 = vrot.slane %v12816_v57, %v12790_v4  ;;  %v4253_v0 = vrot.slane %v12816_v57, %v12791_v43 }
 0x643   : > { %v4257_v44 = vrot.slane %v12816_v57, %v12792_v39  ;;  %v7880_v46 = vrot.slane %v7872_v14, %v12655_v9  ;;  %v7887_v26 = vrot.slane %v7873_v41, %v12655_v9  ;;  %v4261_v51 = vrot.slane %v12816_v57, %v10404_v19 }
 0x644   : > { %v7839_v29 = vcombine.low %v7831_v5, %v7838_v36  ;;  %v12817_v58 = vrot.slane %v11784_v6, %v12655_v9  ;;  %v12818_v52 = vrot.slane %v11782_v42, %v12655_v9  ;;  %v12819_v63 = vrot.slane %v11786_v40, %v12655_v9 }
 0x645   : > { %v6772_v5 = vrot.slane %v11822_v18, %v12655_v9  ;;  %v6779_v14 = vrot.slane %v11825_v49, %v12655_v9  ;;  %v6786_v41 = vrot.slane %v11827_v60, %v12655_v9  ;;  %v6793_v6 = vrot.slane %v6765_v3, %v12655_v9 }
 0x646   : > { %v6696_v20 = vcombine.low %v12818_v52, %v12817_v58  ;;  %v6697_v7 = vcombine.low %v12819_v63, %v6695_v12  ;;  %8306 = vperm.xlu0 %9001, %v7839_v29   ;;  %v6860_v36 = vcombine.low %v4169_v17, %v4173_v34  ;;  %v6861_v57 = vcombine.low %v4177_v56, %v4181_v54 }
 0x647   : > { %v6862_v42 = vcombine.low %v4185_v48, %v4189_v55  ;;  %v6863_v58 = vcombine.low %v4193_v61, %v4197_v21  ;;  %v6958_v52 = vcombine.low %v4233_v25, %v4237_v8  ;;  %v6959_v23 = vcombine.low %v4241_v47, %v4245_v28  ;;  %v12820_v61 = vld [vmem:[#allocation23_spill] sm:$0xff] }
 0x648   : > { %2818 = vadd.xlane.f32.xlu1 %v11729_v53  ;;  %v7888_v40 = vcombine.low %v7880_v46, %v7887_v26  ;;  %v6515_v12 = vrot.slane %v11772_v62, %v12655_v9  ;;  %v6960_v18 = vcombine.low %v4249_v35, %v4253_v0  ;;  %v6961_v49 = vcombine.low %v4257_v44, %v4261_v51 }
 0x649   : > { %v6606_v63 = vrot.slane %v11780_v50, %v12655_v9  ;;  %v6613_v60 = vrot.slane %v11808_v45, %v12655_v9  ;;  %v6704_v17 = vrot.slane %v6696_v20, %v12655_v9  ;;  %v6711_v34 = vrot.slane %v6697_v7, %v12655_v9 }
 0x64a   : > { %8309 = vperm.xlu0 %9001, %v7888_v40   ;;  %v11914_v3 = vcombine.low %v6772_v5, %v6779_v14  ;;  %v11916_v53 = vcombine.low %v6786_v41, %v6793_v6  ;;  %v6870_v56 = vrot.slane %v6860_v36, %v12655_v9  ;;  %v6877_v62 = vrot.slane %v6861_v57, %v12655_v9 }
 0x64b   : > { %v6884_v54 = vrot.slane %v6862_v42, %v12655_v9  ;;  %v6891_v50 = vrot.slane %v6863_v58, %v12655_v9  ;;  %v6968_v48 = vrot.slane %v6958_v52, %v12655_v9  ;;  %v6975_v45 = vrot.slane %v6959_v23, %v12655_v9 }
 0x64c   : > { %v6982_v55 = vrot.slane %v6960_v18, %v12655_v9  ;;  %v6989_v7 = vrot.slane %v6961_v49, %v12655_v9  ;;  %v4297_v21 = vrot.slane %v12820_v61, %v12652_v16  ;;  %v4301_v25 = vrot.slane %v12820_v61, %v10385_v10 }
 0x64d   : > { %v4305_v8 = vrot.slane %v12820_v61, %v12788_v33  ;;  %v4309_v47 = vrot.slane %v12820_v61, %v12789_v31  ;;  %v4313_v28 = vrot.slane %v12820_v61, %v12790_v4  ;;  %v4317_v23 = vrot.slane %v12820_v61, %v12791_v43 }
 0x64e   : > { %v12821_v35 = vrot.slane %v11737_v1, %v12655_v9  ;;  %v12822_v0 = vrot.slane %v11735_v38, %v12655_v9  ;;  %v12823_v29 = vrot.slane %v11741_v24, %v12655_v9  ;;  %v4321_v26 = vrot.slane %v12820_v61, %v12792_v39 }
 0x64f   : > { %v4325_v51 = vrot.slane %v12820_v61, %v10404_v19  ;;  %v11955_v20 = vcombine.low %v6606_v63, %v6613_v60  ;;  %v11957_v5 = vcombine.low %v6704_v17, %v6711_v34  ;;  %v6802_v38 = vrot.slane %v11914_v3, %v12655_v9 }
 0x650   : > { %v11944_v44 = vcombine.low %v12822_v0, %v12821_v35  ;;  %v11949_v46 = vcombine.low %v12823_v29, %v6515_v12  ;;  %v6809_v1 = vrot.slane %v11916_v53, %v12655_v9  ;;  %v6892_v14 = vcombine.low %v6870_v56, %v6877_v62 }
 0x651   : > { %v6893_v24 = vcombine.low %v6884_v54, %v6891_v50  ;;  %v11963_v41 = vcombine.low %v6968_v48, %v6975_v45  ;;  %v6991_v6 = vcombine.low %v6982_v55, %v6989_v7  ;;  %v7056_v36 = vcombine.low %v4297_v21, %v4301_v25 }
 0x652   : > { %v7057_v57 = vcombine.low %v4305_v8, %v4309_v47  ;;  %v7058_v42 = vcombine.low %v4313_v28, %v4317_v23  ;;  %v4329_v58 = vrot.slane %v11635_v13, %v12652_v16  ;;  %v7059_v52 = vcombine.low %v4321_v26, %v4325_v51 }
 0x653   : > { %v4333_v40 = vrot.slane %v11635_v13, %v10385_v10  ;;  %v4337_v12 = vrot.slane %v11635_v13, %v12788_v33  ;;  %v4341_v18 = vrot.slane %v11635_v13, %v12789_v31  ;;  %v4345_v49 = vrot.slane %v11635_v13, %v12790_v4 }
 0x654   : > { %v4349_v63 = vrot.slane %v11635_v13, %v12791_v43  ;;  %v4353_v60 = vrot.slane %v11635_v13, %v12792_v39  ;;  %v4357_v17 = vrot.slane %v11635_v13, %v10404_v19  ;;  %v6900_v34 = vrot.slane %v6892_v14, %v12655_v9  ;;  %v12011_v14 = vpop.permute.xlu0 %8198 }
 0x655   : > { %v6907_v3 = vrot.slane %v6893_v24, %v12655_v9  ;;  %v6998_v53 = vrot.slane %v11963_v41, %v12655_v9  ;;  %v7005_v56 = vrot.slane %v6991_v6, %v12655_v9  ;;  %v4361_v62 = vrot.slane %v11645_v27, %v12652_v16 }
 0x656   : > { %v4365_v54 = vrot.slane %v11645_v27, %v10385_v10  ;;  %v4369_v50 = vrot.slane %v11645_v27, %v12788_v33  ;;  %v4373_v13 = vrot.slane %v11645_v27, %v12789_v31  ;;  %v7066_v48 = vrot.slane %v7056_v36, %v12655_v9 }
 0x657   : > { %v7073_v45 = vrot.slane %v7057_v57, %v12655_v9  ;;  %v7080_v55 = vrot.slane %v7058_v42, %v12655_v9  ;;  %v7087_v7 = vrot.slane %v7059_v52, %v12655_v9  ;;  %v7105_v61 = vcombine.low %v4329_v58, %v4333_v40 }
 0x658   : > { %v7106_v21 = vcombine.low %v4337_v12, %v4341_v18  ;;  %v7107_v25 = vcombine.low %v4345_v49, %v4349_v63  ;;  %v7108_v8 = vcombine.low %v4353_v60, %v4357_v17  ;;  %v4377_v47 = vrot.slane %v11645_v27, %v12790_v4  ;;  %v12824_v17 = vld [vmem:[#allocation52_spill] sm:$0xff] }
 0x659   : > { %v4381_v28 = vrot.slane %v11645_v27, %v12791_v43  ;;  %v4385_v23 = vrot.slane %v11645_v27, %v12792_v39  ;;  %v4389_v35 = vrot.slane %v11645_v27, %v10404_v19  ;;  %8207 = vperm.xlu1 %9000, %v11731_v11   ;;  %v7154_v0 = vcombine.low %v4361_v62, %v4365_v54 }
 0x65a   : > { %v7155_v29 = vcombine.low %v4369_v50, %v4373_v13  ;;  %v4393_v26 = vrot.slane %v11725_v30, %v12652_v16  ;;  %v4397_v51 = vrot.slane %v11725_v30, %v10385_v10  ;;  %v4401_v24 = vrot.slane %v11725_v30, %v12788_v33 }
 0x65b   : > { %v4405_v41 = vrot.slane %v11725_v30, %v12789_v31  ;;  %v4409_v27 = vrot.slane %v11725_v30, %v12790_v4  ;;  %v4413_v11 = vrot.slane %v11725_v30, %v12791_v43  ;;  %v7115_v6 = vrot.slane %v7105_v61, %v12655_v9 }
 0x65c   : > { %v7122_v36 = vrot.slane %v7106_v21, %v12655_v9  ;;  %v4417_v57 = vrot.slane %v11725_v30, %v12792_v39  ;;  %v4421_v42 = vrot.slane %v11725_v30, %v10404_v19  ;;  %v7129_v58 = vrot.slane %v7107_v25, %v12655_v9  ;;  %v2813_v30 = vpop.xlane.xlu0 %2812 }
 0x65d   : > { %v7136_v52 = vrot.slane %v7108_v8, %v12655_v9  ;;  %v7156_v40 = vcombine.low %v4377_v47, %v4381_v28  ;;  %v7157_v12 = vcombine.low %v4385_v23, %v4389_v35  ;;  %8213 = vperm.xlu1 %9000, %v11766_v15   ;;  %v12030_v18 = vcombine.low %v6802_v38, %v6809_v1 }
 0x65e   : > { %v12032_v49 = vcombine.low %v6900_v34, %v6907_v3  ;;  %v7164_v63 = vrot.slane %v7154_v0, %v12655_v9  ;;  %v7171_v60 = vrot.slane %v7155_v29, %v12655_v9  ;;  %v12038_v62 = vadd.f32 %v10379_v32, %v12824_v17 }
 0x65f   : > { %v7203_v54 = vcombine.low %v4393_v26, %v4397_v51  ;;  %v7204_v50 = vcombine.low %v4401_v24, %v4405_v41  ;;  %v7205_v13 = vcombine.low %v4409_v27, %v4413_v11  ;;  %v12040_v61 = vcombine.low %v6998_v53, %v7005_v56 }
 0x660   : > { %v12042_v21 = vcombine.low %v7066_v48, %v7073_v45  ;;  %v12044_v15 = vcombine.low %v7080_v55, %v7087_v7  ;;  %v7206_v38 = vcombine.low %v4417_v57, %v4421_v42  ;;  %v12046_v1 = vcombine.low %v7115_v6, %v7122_v36  ;;  %v12825_v6 = vld [vmem:[#allocation67_spill] sm:$0xff] }
 0x661   : > { %v12048_v34 = vcombine.low %v7129_v58, %v7136_v52  ;;  %v7178_v3 = vrot.slane %v7156_v40, %v12655_v9  ;;  %v7185_v25 = vrot.slane %v7157_v12, %v12655_v9  ;;  %v2882_v8 = vadd.f32 %v10379_v32, %v2813_v30  ;;  %8219 = vperm.xlu1 %9000, %v11944_v44  }
 0x662   : > { %v12054_v47 = vcombine.low %v7164_v63, %v7171_v60  ;;  %v4489_v53 = vrot.slane %v11764_v22, %v12652_v16  ;;  %v4493_v56 = vrot.slane %v11764_v22, %v10385_v10  ;;  %v7213_v48 = vrot.slane %v7203_v54, %v12655_v9 }
 0x663   : > { %v7220_v45 = vrot.slane %v7204_v50, %v12655_v9  ;;  %v7227_v55 = vrot.slane %v7205_v13, %v12655_v9  ;;  %v4497_v7 = vrot.slane %v11764_v22, %v12788_v33  ;;  %v7234_v28 = vrot.slane %v7206_v38, %v12655_v9 }
 0x664   : > { %v4501_v44 = vrot.slane %v11764_v22, %v12789_v31  ;;  %v4505_v23 = vrot.slane %v11764_v22, %v12790_v4  ;;  %v4509_v35 = vrot.slane %v11764_v22, %v12791_v43  ;;  %v7096_v0 = vrot.slane %v12042_v21, %v12655_v9 }
 0x665   : > { %v7103_v29 = vrot.slane %v12044_v15, %v12655_v9  ;;  %v4513_v26 = vrot.slane %v11764_v22, %v12792_v39  ;;  %v4517_v51 = vrot.slane %v11764_v22, %v10404_v19  ;;  %8225 = vperm.xlu1 %9000, %v11949_v46   ;;  %v4873_v24 = vrot.slane %v2882_v8, %v12652_v16 }
 0x666   : > { %v4877_v41 = vrot.slane %v2882_v8, %v10385_v10  ;;  %v7145_v27 = vrot.slane %v12046_v1, %v12655_v9  ;;  %v7152_v11 = vrot.slane %v12048_v34, %v12655_v9  ;;  %v12089_v36 = vadd.f32 %v10379_v32, %v12825_v6 }
 0x667   : > { %v12091_v57 = vcombine.low %v7178_v3, %v7185_v25  ;;  %v12093_v42 = vcombine.low %v7213_v48, %v7220_v45  ;;  %v7350_v22 = vcombine.low %v4489_v53, %v4493_v56  ;;  %v12097_v58 = vcombine.low %v7227_v55, %v7234_v28 }
 0x668   : > { %v7351_v52 = vcombine.low %v4497_v7, %v4501_v44  ;;  %v12099_v40 = vcombine.low %v4505_v23, %v4509_v35  ;;  %v4881_v12 = vrot.slane %v2882_v8, %v12788_v33  ;;  %v4885_v63 = vrot.slane %v2882_v8, %v12789_v31  ;;  %v12826_v23 = vld [vmem:[#allocation59_spill] sm:$0xff] }
 0x669   : > { %v4889_v60 = vrot.slane %v2882_v8, %v12790_v4  ;;  %v12104_v17 = vcombine.low %v4513_v26, %v4517_v51  ;;  %8231 = vperm.xlu1 %9000, %v11955_v20   ;;  %v4893_v30 = vrot.slane %v2882_v8, %v12791_v43  ;;  %v4897_v54 = vrot.slane %v2882_v8, %v12792_v39 }
 0x66a   : > { %v4901_v50 = vrot.slane %v2882_v8, %v10404_v19  ;;  %v7938_v13 = vcombine.low %v4873_v24, %v4877_v41  ;;  %v7201_v38 = vrot.slane %v12091_v57, %v12655_v9  ;;  %v7243_v3 = vrot.slane %v12093_v42, %v12655_v9 }
 0x66b   : > { %v7360_v25 = vrot.slane %v7350_v22, %v12655_v9  ;;  %v4553_v53 = vrot.slane %v12089_v36, %v12652_v16  ;;  %v2811_v56 = vpop.xlane.xlu1 %2810  ;;  %v7250_v20 = vrot.slane %v12097_v58, %v12655_v9  ;;  %v7367_v48 = vrot.slane %v7351_v52, %v12655_v9 }
 0x66c   : > { %v7374_v8 = vrot.slane %v12099_v40, %v12655_v9  ;;  %v4557_v45 = vrot.slane %v12089_v36, %v10385_v10  ;;  %v2881_v55 = vadd.f32 %v10379_v32, %v2811_v56  ;;  %v7939_v7 = vcombine.low %v4881_v12, %v4885_v63  ;;  %v12827_v40 = vld [vmem:[#allocation58_spill] sm:$0xff] }
 0x66d   : > { %v7381_v28 = vrot.slane %v12104_v17, %v12655_v9  ;;  %v4561_v44 = vrot.slane %v12089_v36, %v12788_v33  ;;  %v8464_v35 = vrot.slane %v12011_v14, %v12826_v23  ;;  %8237 = vperm.xlu1 %9000, %v11957_v5   ;;  %v7940_v26 = vcombine.low %v4889_v60, %v4893_v30 }
 0x66e   : > { %v7941_v51 = vcombine.low %v4897_v54, %v4901_v50  ;;  %v7948_v24 = vrot.slane %v7938_v13, %v12655_v9  ;;  %v4841_v41 = vrot.slane %v2881_v55, %v12652_v16  ;;  %v4845_v6 = vrot.slane %v2881_v55, %v10385_v10 }
 0x66f   : > { %v4849_v57 = vrot.slane %v2881_v55, %v12788_v33  ;;  %v4853_v42 = vrot.slane %v2881_v55, %v12789_v31  ;;  %v8196_v22 = vpop.permute.xlu1 %8195  ;;  %v4857_v58 = vrot.slane %v2881_v55, %v12790_v4  ;;  %v4861_v52 = vrot.slane %v2881_v55, %v12791_v43 }
 0x670   : > { %v4865_v14 = vrot.slane %v2881_v55, %v12792_v39  ;;  %v4869_v5 = vrot.slane %v2881_v55, %v10404_v19  ;;  %v8459_v12 = vrot.slane %v8196_v22, %v12827_v40  ;;  %v7889_v63 = vcombine.low %v4841_v41, %v4845_v6 }
 0x671   : > { %v7890_v60 = vcombine.low %v4849_v57, %v4853_v42  ;;  %v7955_v17 = vrot.slane %v7939_v7, %v12655_v9  ;;  %8243 = vperm.xlu1 %9000, %v12030_v18   ;;  %v7891_v30 = vcombine.low %v4857_v58, %v4861_v52  ;;  %v7962_v50 = vrot.slane %v7940_v26, %v12655_v9 }
 0x672   : > { %v7892_v54 = vcombine.low %v4865_v14, %v4869_v5  ;;  %v7969_v13 = vrot.slane %v7941_v51, %v12655_v9  ;;  %v8460_v56 = vsel %vm8358_vm3, %v8459_v12, %v11853_v37  ;;  %v7899_v46 = vrot.slane %v7889_v63, %v12655_v9  ;;  %v12828_v5 = vld [vmem:[#allocation24_spill] sm:$0xff] }
 0x673   : > { %v7906_v55 = vrot.slane %v7890_v60, %v12655_v9  ;;  %v4565_v41 = vrot.slane %v12089_v36, %v12789_v31  ;;  %v7913_v7 = vrot.slane %v7891_v30, %v12655_v9  ;;  %v4569_v6 = vrot.slane %v12089_v36, %v12790_v4 }
 0x674   : > { %v7920_v18 = vrot.slane %v7892_v54, %v12655_v9  ;;  %v12157_v26 = vsel %vm8365_vm4, %v8464_v35, %v8460_v56  ;;  %v12159_v57 = vcombine.low %v7360_v25, %v7367_v48  ;;  %v4573_v37 = vrot.slane %v12089_v36, %v12791_v43 }
 0x675   : > { %v7921_v51 = vcombine.low %v7899_v46, %v7906_v55  ;;  %v4577_v42 = vrot.slane %v12089_v36, %v12792_v39  ;;  %8249 = vperm.xlu1 %9000, %v12032_v49   ;;  %v7970_v58 = vcombine.low %v7948_v24, %v7955_v17  ;;  %v7971_v52 = vcombine.low %v7962_v50, %v7969_v13 }
 0x676   : > { %v7922_v22 = vcombine.low %v7913_v7, %v7920_v18  ;;  %v4581_v14 = vrot.slane %v12089_v36, %v10404_v19  ;;  %v2874_v35 = vadd.f32 %v10379_v32, %v12828_v5  ;;  %v7104_v25 = vcombine.low %v7096_v0, %v7103_v29 }
 0x677   : > { %v7929_v46 = vrot.slane %v7921_v51, %v12655_v9  ;;  %v7153_v49 = vcombine.low %v7145_v27, %v7152_v11  ;;  %v12829_v48 = vrot.slane %v12054_v47, %v12655_v9  ;;  %v12187_v12 = vcombine.low %v7243_v3, %v7250_v20 }
 0x678   : > { %v7936_v36 = vrot.slane %v7922_v22, %v12655_v9  ;;  %v7383_v15 = vcombine.low %v7374_v8, %v7381_v28  ;;  %v7390_v21 = vrot.slane %v12159_v57, %v12655_v9  ;;  %v7448_v0 = vcombine.low %v4553_v53, %v4557_v45 }
 0x679   : > { %v7202_v24 = vcombine.low %v12829_v48, %v7201_v38  ;;  %v7449_v29 = vcombine.low %v4561_v44, %v4565_v41  ;;  %v7450_v63 = vcombine.low %v4569_v6, %v4573_v37  ;;  %8255 = vperm.xlu1 %9000, %v12040_v61   ;;  %v7978_v1 = vrot.slane %v7970_v58, %v12655_v9 }
 0x67a   : > { %v7937_v34 = vcombine.low %v7929_v46, %v7936_v36  ;;  %v7985_v27 = vrot.slane %v7971_v52, %v12655_v9  ;;  %v7451_v11 = vcombine.low %v4577_v42, %v4581_v14  ;;  %v4617_v47 = vrot.slane %v2874_v35, %v12652_v16 }
 0x67b   : > { %v4621_v38 = vrot.slane %v2874_v35, %v10385_v10  ;;  %v4625_v3 = vrot.slane %v2874_v35, %v12788_v33  ;;  %v4629_v20 = vrot.slane %v2874_v35, %v12789_v31  ;;  %v4633_v53 = vrot.slane %v2874_v35, %v12790_v4 }
 0x67c   : > { %8312 = vperm.xlu0 %9001, %v7937_v34   ;;  %v4637_v8 = vrot.slane %v2874_v35, %v12791_v43  ;;  %v4641_v61 = vrot.slane %v2874_v35, %v12792_v39  ;;  %v4645_v45 = vrot.slane %v2874_v35, %v10404_v19  ;;  %v2876_v28 = vadd.f32 %v10379_v32, %v11524_v59  ;;  %v12830_v35 = vld [vmem:[#allocation45_spill] sm:$0xff] }
 0x67d   : > { %v7397_v44 = vrot.slane %v7383_v15, %v12655_v9  ;;  %v4425_v60 = vrot.slane %v11649_v2, %v12652_v16  ;;  %v4429_v17 = vrot.slane %v11649_v2, %v10385_v10  ;;  %8261 = vperm.xlu1 %9000, %v7104_v25   ;;  %v7986_v30 = vcombine.low %v7978_v1, %v7985_v27 }
 0x67e   : > { %v7458_v54 = vrot.slane %v7448_v0, %v12655_v9  ;;  %v7465_v50 = vrot.slane %v7449_v29, %v12655_v9  ;;  %v7472_v13 = vrot.slane %v7450_v63, %v12655_v9  ;;  %v7479_v56 = vrot.slane %v7451_v11, %v12655_v9 }
 0x67f   : > { %v4433_v59 = vrot.slane %v11649_v2, %v12788_v33  ;;  %v4437_v55 = vrot.slane %v11649_v2, %v12789_v31  ;;  %v4441_v41 = vrot.slane %v11649_v2, %v12790_v4  ;;  %v7546_v7 = vcombine.low %v4617_v47, %v4621_v38 }
 0x680   : > { %8315 = vperm.xlu0 %9001, %v7986_v30   ;;  %v7547_v18 = vcombine.low %v4625_v3, %v4629_v20  ;;  %v7548_v6 = vcombine.low %v4633_v53, %v4637_v8  ;;  %v7549_v51 = vcombine.low %v4641_v61, %v4645_v45  ;;  %v4681_v57 = vrot.slane %v2876_v28, %v12652_v16 }
 0x681   : > { %v4685_v37 = vrot.slane %v2876_v28, %v10385_v10  ;;  %v4689_v42 = vrot.slane %v2876_v28, %v12788_v33  ;;  %v4693_v22 = vrot.slane %v2876_v28, %v12789_v31  ;;  %8264 = vperm.xlu1 %9000, %v7153_v49   ;;  %v4697_v58 = vrot.slane %v2876_v28, %v12790_v4 }
 0x682   : > { %v4701_v52 = vrot.slane %v2876_v28, %v12791_v43  ;;  %v4705_v14 = vrot.slane %v2876_v28, %v12792_v39  ;;  %v4709_v5 = vrot.slane %v2876_v28, %v10404_v19  ;;  %v2878_v46 = vadd.f32 %v10379_v32, %v12830_v35 }
 0x683   : > { %v7398_v25 = vcombine.low %v7390_v21, %v7397_v44  ;;  %v7480_v36 = vcombine.low %v7458_v54, %v7465_v50  ;;  %v4445_v48 = vrot.slane %v11649_v2, %v12791_v43  ;;  %v7481_v15 = vcombine.low %v7472_v13, %v7479_v56 }
 0x684   : > { %v4449_v49 = vrot.slane %v11649_v2, %v12792_v39  ;;  %v4453_v0 = vrot.slane %v11649_v2, %v10404_v19  ;;  %v12235_v29 = vcombine.low %v4425_v60, %v4429_v17  ;;  %v7556_v63 = vrot.slane %v7546_v7, %v12655_v9 }
 0x685   : > { %v7563_v34 = vrot.slane %v7547_v18, %v12655_v9  ;;  %v7570_v1 = vrot.slane %v7548_v6, %v12655_v9  ;;  %v7577_v21 = vrot.slane %v7549_v51, %v12655_v9  ;;  %8267 = vperm.xlu1 %9000, %v7202_v24   ;;  %v7644_v27 = vcombine.low %v4681_v57, %v4685_v37 }
 0x686   : > { %v7645_v11 = vcombine.low %v4689_v42, %v4693_v22  ;;  %v7646_v47 = vcombine.low %v4697_v58, %v4701_v52  ;;  %v7647_v38 = vcombine.low %v4705_v14, %v4709_v5  ;;  %v4745_v3 = vrot.slane %v2878_v46, %v12652_v16 }
 0x687   : > { %v4749_v20 = vrot.slane %v2878_v46, %v10385_v10  ;;  %v4753_v2 = vrot.slane %v2878_v46, %v12788_v33  ;;  %v4757_v53 = vrot.slane %v2878_v46, %v12789_v31  ;;  %v4761_v8 = vrot.slane %v2878_v46, %v12790_v4 }
 0x688   : > { %v4765_v61 = vrot.slane %v2878_v46, %v12791_v43  ;;  %v4769_v45 = vrot.slane %v2878_v46, %v12792_v39  ;;  %v4773_v24 = vrot.slane %v2878_v46, %v10404_v19  ;;  %v7488_v28 = vrot.slane %v7480_v36, %v12655_v9 }
 0x689   : > { %v7253_v44 = vcombine.low %v4433_v59, %v4437_v55  ;;  %v7254_v60 = vcombine.low %v4441_v41, %v4445_v48  ;;  %v4457_v17 = vrot.slane %v12038_v62, %v12652_v16  ;;  %8270 = vperm.xlu1 %9000, %v12187_v12   ;;  %v7495_v30 = vrot.slane %v7481_v15, %v12655_v9  ;;  %v12274_v48 = vpop.permute.xlu0 %8204 }
 0x68a   : > { %v7578_v54 = vcombine.low %v7556_v63, %v7563_v34  ;;  %v7579_v50 = vcombine.low %v7570_v1, %v7577_v21  ;;  %v4461_v13 = vrot.slane %v12038_v62, %v10385_v10  ;;  %v7654_v56 = vrot.slane %v7644_v27, %v12655_v9 }
 0x68b   : > { %v7661_v7 = vrot.slane %v7645_v11, %v12655_v9  ;;  %v7668_v18 = vrot.slane %v7646_v47, %v12655_v9  ;;  %v7675_v59 = vrot.slane %v7647_v38, %v12655_v9  ;;  %v7742_v55 = vcombine.low %v4745_v3, %v4749_v20 }
 0x68c   : > { %v7743_v41 = vcombine.low %v4753_v2, %v4757_v53  ;;  %v7744_v6 = vcombine.low %v4761_v8, %v4765_v61  ;;  %v7745_v51 = vcombine.low %v4769_v45, %v4773_v24  ;;  %v7255_v12 = vcombine.low %v4449_v49, %v4453_v0 }
 0x68d   : > { %v4465_v57 = vrot.slane %v12038_v62, %v12788_v33  ;;  %v4469_v37 = vrot.slane %v12038_v62, %v12789_v31  ;;  %v4473_v42 = vrot.slane %v12038_v62, %v12790_v4  ;;  %8279 = vperm.xlu1 %9000, %v7398_v25   ;;  %v7496_v22 = vcombine.low %v7488_v28, %v7495_v30  ;;  %v2817_v3 = vpop.xlane.xlu0 %2816 }
 0x68e   : > { %v4477_v58 = vrot.slane %v12038_v62, %v12791_v43  ;;  %v4481_v52 = vrot.slane %v12038_v62, %v12792_v39  ;;  %v4485_v14 = vrot.slane %v12038_v62, %v10404_v19  ;;  %v7586_v5 = vrot.slane %v7578_v54, %v12655_v9 }
 0x68f   : > { %v7593_v35 = vrot.slane %v7579_v50, %v12655_v9  ;;  %v7676_v46 = vcombine.low %v7654_v56, %v7661_v7  ;;  %v7677_v36 = vcombine.low %v7668_v18, %v7675_v59  ;;  %v7752_v25 = vrot.slane %v7742_v55, %v12655_v9 }
 0x690   : > { %v7759_v15 = vrot.slane %v7743_v41, %v12655_v9  ;;  %v7766_v49 = vrot.slane %v7744_v6, %v12655_v9  ;;  %v7773_v0 = vrot.slane %v7745_v51, %v12655_v9  ;;  %v7301_v63 = vcombine.low %v4457_v17, %v4461_v13 }
 0x691   : > { %v7302_v34 = vcombine.low %v4465_v57, %v4469_v37  ;;  %8285 = vperm.xlu1 %9000, %v7496_v22   ;;  %v7262_v62 = vrot.slane %v12235_v29, %v12655_v9  ;;  %v7303_v1 = vcombine.low %v4473_v42, %v4477_v58  ;;  %v7304_v21 = vcombine.low %v4481_v52, %v4485_v14 }
 0x692   : > { %v7594_v27 = vcombine.low %v7586_v5, %v7593_v35  ;;  %v7269_v11 = vrot.slane %v7253_v44, %v12655_v9  ;;  %v7276_v47 = vrot.slane %v7254_v60, %v12655_v9  ;;  %v7283_v38 = vrot.slane %v7255_v12, %v12655_v9 }
 0x693   : > { %v7684_v20 = vrot.slane %v7676_v46, %v12655_v9  ;;  %v7691_v2 = vrot.slane %v7677_v36, %v12655_v9  ;;  %v7774_v53 = vcombine.low %v7752_v25, %v7759_v15  ;;  %v7775_v8 = vcombine.low %v7766_v49, %v7773_v0  ;;  %v12831_v36 = vld [vmem:[#allocation62_spill] sm:$0xff] }
 0x694   : > { %v7311_v61 = vrot.slane %v7301_v63, %v12655_v9  ;;  %v7318_v29 = vrot.slane %v7302_v34, %v12655_v9  ;;  %v7325_v45 = vrot.slane %v7303_v1, %v12655_v9  ;;  %v7332_v24 = vrot.slane %v7304_v21, %v12655_v9 }
 0x695   : > { %8291 = vperm.xlu1 %9000, %v7594_v27   ;;  %v2884_v28 = vadd.f32 %v10379_v32, %v2817_v3  ;;  %v7284_v44 = vcombine.low %v7262_v62, %v7269_v11  ;;  %v7692_v60 = vcombine.low %v7684_v20, %v7691_v2  ;;  %v7782_v17 = vrot.slane %v7774_v53, %v12655_v9 }
 0x696   : > { %v7789_v30 = vrot.slane %v7775_v8, %v12655_v9  ;;  %v7285_v54 = vcombine.low %v7276_v47, %v7283_v38  ;;  %v7333_v50 = vcombine.low %v7311_v61, %v7318_v29  ;;  %v7334_v13 = vcombine.low %v7325_v45, %v7332_v24  ;;  %v12832_v38 = vld [vmem:[#allocation61_spill] sm:$0xff] }
 0x697   : > { %v4937_v56 = vrot.slane %v2884_v28, %v12652_v16  ;;  %v4941_v7 = vrot.slane %v2884_v28, %v10385_v10  ;;  %v7292_v59 = vrot.slane %v7284_v44, %v12655_v9  ;;  %v4945_v51 = vrot.slane %v2884_v28, %v12788_v33 }
 0x698   : > { %v7790_v18 = vcombine.low %v7782_v17, %v7789_v30  ;;  %v7299_v55 = vrot.slane %v7285_v54, %v12655_v9  ;;  %v7341_v41 = vrot.slane %v7333_v50, %v12655_v9  ;;  %v7348_v6 = vrot.slane %v7334_v13, %v12655_v9 }
 0x699   : > { %8297 = vperm.xlu1 %9000, %v7692_v60   ;;  %v4949_v12 = vrot.slane %v2884_v28, %v12789_v31  ;;  %v4953_v57 = vrot.slane %v2884_v28, %v12790_v4  ;;  %v4957_v37 = vrot.slane %v2884_v28, %v12791_v43  ;;  %v4961_v42 = vrot.slane %v2884_v28, %v12792_v39 }
 0x69a   : > { %v4965_v22 = vrot.slane %v2884_v28, %v10404_v19  ;;  %v8036_v58 = vcombine.low %v4937_v56, %v4941_v7  ;;  %v7300_v52 = vcombine.low %v7292_v59, %v7299_v55  ;;  %v7349_v35 = vcombine.low %v7341_v41, %v7348_v6  ;;  %v8211_v6 = vpop.permute.xlu0 %8210 }
 0x69b   : > { %v8037_v46 = vcombine.low %v4945_v51, %v4949_v12  ;;  %v8474_v25 = vrot.slane %v12274_v48, %v12831_v36  ;;  %v8038_v15 = vcombine.low %v4953_v57, %v4957_v37 }
 0x69c   : > { %v8039_v49 = vcombine.low %v4961_v42, %v4965_v22  ;;  %v8046_v0 = vrot.slane %v8036_v58, %v12655_v9 }
 0x69d   : > { %8303 = vperm.xlu1 %9000, %v7790_v18   ;;  %v8053_v53 = vrot.slane %v8037_v46, %v12655_v9  ;;  %v8060_v29 = vrot.slane %v8038_v15, %v12655_v9 }
 0x69e   : > { %v8067_v45 = vrot.slane %v8039_v49, %v12655_v9  ;;  %v8217_v57 = vpop.permute.xlu0 %8216 }
 0x69f   : > { %v8068_v13 = vcombine.low %v8046_v0, %v8053_v53 }
 0x6a0   : > { %v2815_v14 = vpop.xlane.xlu1 %2814  ;;  %v8069_v56 = vcombine.low %v8060_v29, %v8067_v45  ;;  %v12838_v45 = vld [vmem:[#allocation70_spill] sm:$0xff] }
 0x6a1   : > { %v2883_v5 = vadd.f32 %v10379_v32, %v2815_v14  ;;  %8273 = vperm.xlu1 %9000, %v7300_v52  }
 0x6a2   : > { %v8083_v55 = vrot.slane %v8069_v56, %v12655_v9 }
 0x6a3   : > { %v4905_v63 = vrot.slane %v2883_v5, %v12652_v16  ;;  %v4909_v34 = vrot.slane %v2883_v5, %v10385_v10  ;;  %v4913_v62 = vrot.slane %v2883_v5, %v12788_v33  ;;  %v4917_v1 = vrot.slane %v2883_v5, %v12789_v31 }
 0x6a4   : > { %v8202_v21 = vpop.permute.xlu1 %8201  ;;  %v4921_v27 = vrot.slane %v2883_v5, %v12790_v4  ;;  %v4925_v11 = vrot.slane %v2883_v5, %v12791_v43  ;;  %v4929_v47 = vrot.slane %v2883_v5, %v12792_v39  ;;  %v4933_v48 = vrot.slane %v2883_v5, %v10404_v19 }
 0x6a5   : > { %v8469_v3 = vrot.slane %v8202_v21, %v12832_v38  ;;  %8276 = vperm.xlu1 %9000, %v7349_v35   ;;  %v7987_v20 = vcombine.low %v4905_v63, %v4909_v34  ;;  %v7988_v2 = vcombine.low %v4913_v62, %v4917_v1  ;;  %v8223_v62 = vpop.permute.xlu0 %8222  ;;  %v12835_v1 = vld [vmem:[#allocation66_spill] sm:$0xff] }
 0x6a6   : > { %v7989_v8 = vcombine.low %v4921_v27, %v4925_v11  ;;  %v7990_v61 = vcombine.low %v4929_v47, %v4933_v48  ;;  %v12836_v11 = vld [vmem:[#allocation63_spill] sm:$0xff] }
 0x6a7   : > { %v8470_v24 = vsel %vm8372_vm5, %v8469_v3, %v12157_v26  ;;  %v7997_v28 = vrot.slane %v7987_v20, %v12655_v9  ;;  %v8004_v44 = vrot.slane %v7988_v2, %v12655_v9  ;;  %v8076_v26 = vrot.slane %v8068_v13, %v12655_v9  ;;  %v12840_v13 = vld [vmem:[#allocation36_spill] sm:$0xff] }
 0x6a8   : > { %v8011_v60 = vrot.slane %v7989_v8, %v12655_v9  ;;  %v8018_v17 = vrot.slane %v7990_v61, %v12655_v9  ;;  %v8475_v30 = vsel %vm8379_vm6, %v8474_v25, %v8470_v24  ;;  %v12833_v25 = vld [vmem:[#allocation65_spill] sm:$0xff]  ;;  %v8494_v47 = vrot.slane %v8217_v57, %v12836_v11 }
 0x6a9   : > { %v8019_v54 = vcombine.low %v7997_v28, %v8004_v44  ;;  %v8084_v41 = vcombine.low %v8076_v26, %v8083_v55  ;;  %v12837_v61 = vld [vmem:[#allocation69_spill] sm:$0xff]  ;;  %v8504_v24 = vrot.slane %v8223_v62, %v12838_v45  ;;  %v8229_v44 = vpop.permute.xlu0 %8228 }
 0x6aa   : > { %v8020_v50 = vcombine.low %v8011_v60, %v8018_v17  ;;  %v8514_v56 = vrot.slane %v8229_v44, %v12840_v13 }
 0x6ab   : > { %v8027_v7 = vrot.slane %v8019_v54, %v12655_v9  ;;  %v12839_v54 = vld [vmem:[#allocation25_spill] sm:$0xff] }
 0x6ac   : > { %v8034_v18 = vrot.slane %v8020_v50, %v12655_v9 }
 0x6ae   : > { %v8035_v59 = vcombine.low %v8027_v7, %v8034_v18 }
 0x6b0   : > { %8318 = vperm.xlu0 %9001, %v8035_v59   ;;  %v12841_v59 = vld [vmem:[#allocation26_spill] sm:$0xff] }
 0x6b4   : > { %8321 = vperm.xlu0 %9001, %v8084_v41  }
 0x6d5   : > { %v2819_v51 = vpop.xlane.xlu1 %2818 }
 0x6d6   : > { %v2885_v12 = vadd.f32 %v10379_v32, %v2819_v51  ;;  %v8235_v51 = vpop.permute.xlu0 %8234 }
 0x6d8   : > { %v4969_v37 = vrot.slane %v2885_v12, %v12652_v16  ;;  %v4973_v42 = vrot.slane %v2885_v12, %v10385_v10  ;;  %v4977_v22 = vrot.slane %v2885_v12, %v12788_v33  ;;  %v4981_v58 = vrot.slane %v2885_v12, %v12789_v31  ;;  %v12834_v16 = vld [vmem:[#allocation60_spill] sm:$0xff] }
 0x6d9   : > { %v8208_v52 = vpop.permute.xlu1 %8207  ;;  %v4985_v14 = vrot.slane %v2885_v12, %v12790_v4  ;;  %v4989_v5 = vrot.slane %v2885_v12, %v12791_v43  ;;  %v4993_v35 = vrot.slane %v2885_v12, %v12792_v39  ;;  %v4997_v46 = vrot.slane %v2885_v12, %v10404_v19 }
 0x6da   : > { %v8479_v32 = vrot.slane %v8208_v52, %v12833_v25  ;;  %v8085_v15 = vcombine.low %v4969_v37, %v4973_v42  ;;  %v8086_v49 = vcombine.low %v4977_v22, %v4981_v58  ;;  %v8484_v0 = vrot.slane %v8211_v6, %v12834_v16  ;;  %v8241_v57 = vpop.permute.xlu0 %8240 }
 0x6db   : > { %v8087_v10 = vcombine.low %v4985_v14, %v4989_v5  ;;  %v8088_v63 = vcombine.low %v4993_v35, %v4997_v46 }
 0x6dc   : > { %v8480_v33 = vsel %vm8386_vm7, %v8479_v32, %v8475_v30  ;;  %v8095_v31 = vrot.slane %v8085_v15, %v12655_v9  ;;  %v8102_v4 = vrot.slane %v8086_v49, %v12655_v9 }
 0x6dd   : > { %v8485_v43 = vsel %vm8393_vm8, %v8484_v0, %v8480_v33  ;;  %v8214_v34 = vpop.permute.xlu1 %8213  ;;  %v8109_v39 = vrot.slane %v8087_v10, %v12655_v9  ;;  %v8116_v19 = vrot.slane %v8088_v63, %v12655_v9 }
 0x6de   : > { %v8489_v21 = vrot.slane %v8214_v34, %v12835_v1  ;;  %v8117_v27 = vcombine.low %v8095_v31, %v8102_v4  ;;  %v8247_v42 = vpop.permute.xlu0 %8246  ;;  %v12842_v31 = vld [vmem:[#allocation54_spill] sm:$0xff] }
 0x6df   : > { %v8118_v48 = vcombine.low %v8109_v39, %v8116_v19  ;;  %v12844_v39 = vld [vmem:[#allocation55_spill] sm:$0xff] }
 0x6e0   : > { %v8490_v3 = vsel %vm8400_vm9, %v8489_v21, %v8485_v43  ;;  %v8125_v20 = vrot.slane %v8117_v27, %v12655_v9  ;;  %v12843_v43 = vld [vmem:[#allocation56_spill] sm:$0xff] }
 0x6e1   : > { %v8495_v2 = vsel %vm8407_vm10, %v8494_v47, %v8490_v3  ;;  %v8220_v53 = vpop.permute.xlu1 %8219  ;;  %v8132_v8 = vrot.slane %v8118_v48, %v12655_v9  ;;  %v12845_v3 = vld [vmem:[#allocation57_spill] sm:$0xff] }
 0x6e2   : > { %v8499_v29 = vrot.slane %v8220_v53, %v12837_v61  ;;  %v8253_v58 = vpop.permute.xlu0 %8252 }
 0x6e3   : > { %v8133_v28 = vcombine.low %v8125_v20, %v8132_v8  ;;  %v8523_v8 = vrot.slane %v8235_v51, %v12844_v39 }
 0x6e4   : > { %v8500_v60 = vsel %vm8414_vm11, %v8499_v29, %v8495_v2 }
 0x6e5   : > { %8324 = vperm.xlu0 %9001, %v8133_v28   ;;  %v8505_v17 = vsel %vm8421_vm12, %v8504_v24, %v8500_v60  ;;  %v8226_v30 = vpop.permute.xlu1 %8225 }
 0x6e6   : > { %v8509_v50 = vrot.slane %v8226_v30, %v12839_v54  ;;  %v12372_v14 = vpop.permute.xlu0 %8258 }
 0x6e8   : > { %v8510_v7 = vsel %vm8428_vm13, %v8509_v50, %v8505_v17 }
 0x6e9   : > { %v12364_v18 = vsel %vm8435_vm14, %v8514_v56, %v8510_v7  ;;  %v8232_v55 = vpop.permute.xlu1 %8231  ;;  %v8533_v7 = vrot.slane %v8241_v57, %v12845_v3 }
 0x6ea   : > { %v8674_v26 = vcombine.low %v12841_v59, %v12364_v18  ;;  %v8283_v35 = vpop.permute.xlu0 %8282  ;;  %v8519_v2 = vrot.slane %v8232_v55, %v12842_v31 }
 0x6eb   : > { %v8602_v19 = vrot.slane %v8283_v35, %v12844_v39  ;;  %v8553_v39 = vrot.slane %v8253_v58, %v12831_v36 }
 0x6ec   : > { %v8524_v17 = vsel %vm8337_vm0, %v8523_v8, %v8519_v2 }
 0x6ed   : > { %v8238_v41 = vpop.permute.xlu1 %8237 }
 0x6ee   : > { %v8289_v32 = vpop.permute.xlu0 %8288  ;;  %v8528_v53 = vrot.slane %v8238_v41, %v12843_v43 }
 0x6ef   : > { %v8612_v20 = vrot.slane %v8289_v32, %v12845_v3 }
 0x6f0   : > { %v8529_v50 = vsel %vm8344_vm1, %v8528_v53, %v8524_v17 }
 0x6f1   : > { %v8244_v6 = vpop.permute.xlu1 %8243  ;;  %v8534_v32 = vsel %vm8351_vm2, %v8533_v7, %v8529_v50 }
 0x6f2   : > { %v8295_v49 = vpop.permute.xlu0 %8294  ;;  %v8538_v56 = vrot.slane %v8244_v6, %v12827_v40 }
 0x6f3   : > { %v8622_v60 = vrot.slane %v8295_v49, %v12826_v23 }
 0x6f4   : > { %v8539_v49 = vsel %vm8358_vm3, %v8538_v56, %v8534_v32 }
 0x6f5   : > { %v8250_v12 = vpop.permute.xlu1 %8249 }
 0x6f6   : > { %v8301_v10 = vpop.permute.xlu0 %8300 }
 0x6f7   : > { %v8632_v35 = vrot.slane %v8301_v10, %v12831_v36 }
 0x6f9   : > { %v8256_v37 = vpop.permute.xlu1 %8255 }
 0x6fa   : > { %v8307_v63 = vpop.permute.xlu0 %8306 }
 0x6fb   : > { %v8642_v57 = vrot.slane %v8307_v63, %v12834_v16 }
 0x6fd   : > { %v12368_v22 = vpop.permute.xlu1 %8261 }
 0x6fe   : > { %v8310_v62 = vpop.permute.xlu0 %8309  ;;  %v8568_v63 = vrot.slane %v12368_v22, %v12835_v1 }
 0x701   : > { %v12370_v52 = vpop.permute.xlu1 %8264 }
 0x702   : > { %v8313_v29 = vpop.permute.xlu0 %8312  ;;  %v8573_v36 = vrot.slane %v12370_v52, %v12836_v11 }
 0x705   : > { %v12374_v5 = vpop.permute.xlu1 %8267 }
 0x706   : > { %v8578_v58 = vrot.slane %v12374_v5, %v12837_v61 }
 0x709   : > { %v12376_v46 = vpop.permute.xlu1 %8270 }
 0x70d   : > { %v8280_v15 = vpop.permute.xlu1 %8279 }
 0x70e   : > { %v8598_v4 = vrot.slane %v8280_v15, %v12842_v31  ;;  %v8316_v15 = vpop.permute.xlu0 %8315 }
 0x710   : > { %v8603_v21 = vsel %vm8337_vm0, %v8602_v19, %v8598_v4 }
 0x711   : > { %v8286_v0 = vpop.permute.xlu1 %8285 }
 0x712   : > { %v8607_v34 = vrot.slane %v8286_v0, %v12843_v43  ;;  %v8548_v0 = vrot.slane %v8250_v12, %v12832_v38  ;;  %v8558_v43 = vrot.slane %v8256_v37, %v12833_v25 }
 0x714   : > { %v8608_v47 = vsel %vm8344_vm1, %v8607_v34, %v8603_v21  ;;  %v8563_v21 = vrot.slane %v12372_v14, %v12834_v16  ;;  %v8657_v14 = vrot.slane %v8316_v15, %v12837_v61 }
 0x715   : > { %v8292_v33 = vpop.permute.xlu1 %8291  ;;  %v8613_v24 = vsel %vm8351_vm2, %v8612_v20, %v8608_v47 }
 0x716   : > { %v8617_v48 = vrot.slane %v8292_v33, %v12827_v40  ;;  %v8543_v33 = vrot.slane %v8247_v42, %v12826_v23  ;;  %v8647_v23 = vrot.slane %v8310_v62, %v12835_v1  ;;  %v8583_v1 = vrot.slane %v12376_v46, %v12838_v45 }
 0x718   : > { %v8618_v28 = vsel %vm8358_vm3, %v8617_v48, %v8613_v24  ;;  %v8544_v31 = vsel %vm8365_vm4, %v8543_v33, %v8539_v49 }
 0x719   : > { %v8298_v27 = vpop.permute.xlu1 %8297  ;;  %v8623_v55 = vsel %vm8365_vm4, %v8622_v60, %v8618_v28  ;;  %v8549_v10 = vsel %vm8372_vm5, %v8548_v0, %v8544_v31  ;;  %v8682_v28 = vrot.slane %v8674_v26, %v12655_v9  ;;  %v12846_v60 = vlaneseq }
 0x71a   : > { %v8627_v44 = vrot.slane %v8298_v27, %v12832_v38  ;;  %v8554_v12 = vsel %vm8379_vm6, %v8553_v39, %v8549_v10 }
 0x71b   : > { %v8559_v42 = vsel %vm8386_vm7, %v8558_v43, %v8554_v12  ;;  %vm8701_vm15 = vcmp.lt.s32.totalorder %v12846_v60, 512 }
 0x71c   : > { %v8628_v41 = vsel %vm8372_vm5, %v8627_v44, %v8623_v55  ;;  %v8564_v27 = vsel %vm8393_vm8, %v8563_v21, %v8559_v42 }
 0x71d   : > { %v8304_v30 = vpop.permute.xlu1 %8303  ;;  %v8633_v40 = vsel %vm8379_vm6, %v8632_v35, %v8628_v41  ;;  %v8569_v47 = vsel %vm8400_vm9, %v8568_v63, %v8564_v27 }
 0x71e   : > { %v8637_v51 = vrot.slane %v8304_v30, %v12833_v25  ;;  %v8652_v25 = vrot.slane %v8313_v29, %v12836_v11  ;;  %v8574_v5 = vsel %vm8407_vm10, %v8573_v36, %v8569_v47 }
 0x71f   : > { %v8579_v3 = vsel %vm8414_vm11, %v8578_v58, %v8574_v5 }
 0x720   : > { %v8638_v6 = vsel %vm8386_vm7, %v8637_v51, %v8633_v40 }
 0x721   : > { %v8274_v34 = vpop.permute.xlu1 %8273  ;;  %v8643_v38 = vsel %vm8393_vm8, %v8642_v57, %v8638_v6 }
 0x722   : > { %v8648_v19 = vsel %vm8400_vm9, %v8647_v23, %v8643_v38  ;;  %v8588_v11 = vrot.slane %v8274_v34, %v12839_v54 }
 0x723   : > { %v8653_v22 = vsel %vm8407_vm10, %v8652_v25, %v8648_v19 }
 0x724   : > { %v8658_v46 = vsel %vm8414_vm11, %v8657_v14, %v8653_v22 }
 0x725   : > { %v8277_v62 = vpop.permute.xlu1 %8276 }
 0x726   : > { %v8593_v48 = vrot.slane %v8277_v62, %v12840_v13 }
 0x72f   : > { %v8319_v4 = vpop.permute.xlu0 %8318 }
 0x730   : > { %v8662_v16 = vrot.slane %v8319_v4, %v12838_v45  ;;  %v8584_v45 = vsel %vm8421_vm12, %v8583_v1, %v8579_v3 }
 0x731   : > { %v8589_v53 = vsel %vm8428_vm13, %v8588_v11, %v8584_v45 }
 0x732   : > { %v8663_v61 = vsel %vm8421_vm12, %v8662_v16, %v8658_v46  ;;  %v8594_v8 = vsel %vm8435_vm14, %v8593_v48, %v8589_v53 }
 0x733   : > { %v8322_v37 = vpop.permute.xlu0 %8321 }
 0x734   : > { %v8667_v52 = vrot.slane %v8322_v37, %v12839_v54 }
 0x736   : > { %v8668_v54 = vsel %vm8428_vm13, %v8667_v52, %v8663_v61 }
 0x764   : > { %v8325_v20 = vpop.permute.xlu0 %8324 }
 0x765   : > { %v8672_v2 = vrot.slane %v8325_v20, %v12840_v13 }
 0x767   : > { %v8673_v29 = vsel %vm8435_vm14, %v8672_v2, %v8668_v54 }
 0x768   : > { %v8675_v24 = vcombine.low %v8594_v8, %v8673_v29 }
 0x76a   : > { %v8689_v44 = vrot.slane %v8675_v24, %v12655_v9 }
 0x76c   : > { %v8690_v13 = vcombine.low %v8682_v28, %v8689_v44 }
 0x76e   : > { %v8697_v17 = vrot.slane %v8690_v13, %v12655_v9 }
 0x770   : > { %8703 = vst.msk [vmem:[%s366_s15] sm:$0xf] %vm8701_vm15, %v8697_v17 }
 0x771   : > { %9173 = shalt.err (!%p9170_p5)
}
 0x772   : > { %s9174_s16 = scalar_lea.hbm %s12457_s10, 64  ;;  %s9178_s4 = scalar_lea.hbm %s12508_s7, 128 }
 0x773   : > { %p9175_p9 = scmp.ne.s32.totalorder %s12457_s10, %s9174_s16  ;;  %p9179_p11 = scmp.lt.u32.totalorder %s12457_s10, %s12508_s7 }
 0x774   : > { %p9180_p2 = scmp.lt.u32.totalorder %s9178_s4, %s9174_s16  ;;  %p9182_p1 = scmp.lt.u32.totalorder %s9174_s16, %s12457_s10 }
 0x775   : > { %p9176_p0 = pnand %p9175_p9, %p12847_p13 }
 0x776   : > { %p9181_p12 = por %p9180_p2, %p9179_p11 }
 0x777   : > { %p9177_p8 = pneg %p9176_p0 }
 0x778   : > { %p9183_p6 = por %p9182_p1, %p9181_p12 }
 0x77a   : > { %p9184_p10 = pnand %p9183_p6, %p9177_p8 }
 0x77c   : > { %9187 = shalt.err (!%p9184_p10)
}
 0x77d   : > { %8934 = dma.vmem_to_hbm [thread:$0]  (%p12847_p13), %s12459_s13, 64, %s12457_s10, %s8705_s11  }
 0x77e PF: > { %s8731_s22 = sand.u32 1, %s9226_s26   ;;  %p12848_p4 = scmp.ne.s32.totalorder %s12607_s9, 0 }
 0x77f   : > { %p12849_p7 = scmp.ge.s32.totalorder %s9238_s29, 2  ;;  %s8732_s30 = scalar_lea.sflag [#allocation5], %s8731_s22 }
 0x781   : > { %p8951_p3 = pnand %p12849_p7, %p12848_p4 }
 0x783   : > { %9221 = dma.done.wait (!%p8951_p3), %s8732_s30, 64  }
 0x784   : > { %9223 = vsyncadd (!%p8951_p3), %s8732_s30, 4294967232  ;;  %p25_p5 = scmp.ge.s32.totalorder %s9407_s14, 4   ;;  %s12850_s26 = smov %s9230_s27 }
 0x785   : > { %s12851_s27 = smov %s9234_s28  ;;  %s12852_s28 = smov %s9416_s18 }
 0x786   : > { %s12853_s29 = smov %s9407_s14  ;;  %27 = sbr.rel (!%p25_p5) target bundleno = 13 (0xd), region = 114 }
 0x78d   :  { %8737 = vsyncpa [#allocation4], 1 }
 0x78e   :  { %8739 = vsyncpa [#allocation4 + $0x1], 1 }
 0x78f   :  { %8740 = vsyncpa [#allocation7], 1 }
 0x790   :  { %8742 = vsyncpa [#allocation7 + $0x1], 1 }
 0x791   :  { %8743 = vsyncpa [#allocation10], 1 }
 0x792   :  { %8744 = vsyncpa [#allocation5], 1 }
 0x793   :  { %8746 = vsyncpa [#allocation5 + $0x1], 1 }

</bundles_post_ra>
